<compile_context>
chip_gen: v7x
topology: tpu7x:2x2x1
jax: 0.10.0
libtpu: 0.0.40
codegen_flags: <defaults>
</compile_context>

<pallas_src>
import functools

import jax
import jax.numpy as jnp
from jax import lax
from jax.experimental import pallas as pl
from jax.experimental.pallas import tpu as pltpu


# ----------------------------------------------------------------------------
# Fused kernel: embedding + 2-layer bi-GRU + exp(-L1) distance
# ----------------------------------------------------------------------------

def _siam_kernel(tok_ref, emb_ref,
                 w0i_ref, b0i_ref, w0h_ref, b0n_ref,
                 w1i_ref, b1i_ref, w1h_ref, b1n_ref,
                 pred_ref, y0_scr, *, T, BB, B, H):
    """Whole Siam_RNN forward for both sentences (stacked along batch).

    tok_ref : [T*BB, 1] int32   time-major token ids (row = t*BB + b)
    emb_ref : [V, E]    f32     embedding table (padding row already zeroed)
    w{l}i   : [2, D_l, 3H] f32  fused input->hidden weights (dir, in, r|z|n)
    b{l}i   : [2, 1, 3H]   f32  folded biases (b_ih all gates + b_hh for r,z)
    w{l}h   : [2, H, 3H]   f32  fused hidden->hidden weights
    b{l}n   : [2, 1, H]    f32  b_hh of the n gate (stays under r*)
    pred_ref: [B, 1]       f32  exp(-L1) Siamese prediction
    y0_scr  : [2, T*BB, H] f32  layer-0 per-step outputs (layer-1 input)
    """
    TB = T * BB
    V = emb_ref.shape[0]

    # ---- Embedding lookup as a one-hot matmul (vocab is tiny) --------------
    tok = tok_ref[...]                                          # [TB, 1] int32
    vocab_iota = lax.broadcasted_iota(jnp.int32, (TB, V), 1)    # [TB, V]
    onehot = (tok == vocab_iota).astype(jnp.float32)            # [TB, V]
    x0 = jnp.dot(onehot, emb_ref[...],
                 preferred_element_type=jnp.float32)            # [TB, E]

    def cell(gi, h, whh, bhn):
        """One fused GRU cell step.  gi: [BB, 3H] precomputed input proj."""
        gh = jnp.dot(h, whh, preferred_element_type=jnp.float32)   # [BB, 3H]
        r = jax.nn.sigmoid(gi[:, 0:H] + gh[:, 0:H])
        z = jax.nn.sigmoid(gi[:, H:2 * H] + gh[:, H:2 * H])
        n = jnp.tanh(gi[:, 2 * H:3 * H] + r * (gh[:, 2 * H:3 * H] + bhn))
        return (1.0 - z) * n + z * h

    # ======================= Layer 0 =========================================
    # Hoisted input projection: one [TB, E] x [E, 3H] matmul per direction.
    gi0 = [jnp.dot(x0, w0i_ref[d], preferred_element_type=jnp.float32)
           + b0i_ref[d] for d in range(2)]                      # each [TB, 3H]
    w0h = [w0h_ref[d] for d in range(2)]
    b0n = [b0n_ref[d] for d in range(2)]

    h0f = jnp.zeros((BB, H), jnp.float32)
    h0b = jnp.zeros((BB, H), jnp.float32)
    for t in range(T):                       # static unroll; h stays in vregs
        tb = T - 1 - t                       # reverse-direction time index
        h0f = cell(gi0[0][t * BB:(t + 1) * BB], h0f, w0h[0], b0n[0])
        h0b = cell(gi0[1][tb * BB:(tb + 1) * BB], h0b, w0h[1], b0n[1])
        y0_scr[0, t * BB:(t + 1) * BB, :] = h0f
        y0_scr[1, tb * BB:(tb + 1) * BB, :] = h0b

    # ======================= Layer 1 =========================================
    # Input = concat(fwd, bwd) along features; realized as two slab matmuls.
    y0f = y0_scr[0]                                             # [TB, H]
    y0b = y0_scr[1]                                             # [TB, H]
    gi1 = []
    for d in range(2):
        w1i_d = w1i_ref[d]                                      # [2H, 3H]
        gi1.append(jnp.dot(y0f, w1i_d[0:H], preferred_element_type=jnp.float32)
                   + jnp.dot(y0b, w1i_d[H:2 * H],
                             preferred_element_type=jnp.float32)
                   + b1i_ref[d])                                # [TB, 3H]
    w1h = [w1h_ref[d] for d in range(2)]
    b1n = [b1n_ref[d] for d in range(2)]

    h1f = jnp.zeros((BB, H), jnp.float32)
    h1b = jnp.zeros((BB, H), jnp.float32)
    for t in range(T):
        tb = T - 1 - t
        h1f = cell(gi1[0][t * BB:(t + 1) * BB], h1f, w1h[0], b1n[0])
        h1b = cell(gi1[1][tb * BB:(tb + 1) * BB], h1b, w1h[1], b1n[1])

    # ======================= Siamese distance ================================
    # PyTorch ht = [l0_fwd, l0_bwd, l1_fwd, l1_bwd]; prediction =
    # exp(-||ht1 - ht2||_1 over dims [layers*dirs, hidden]).
    dist = jnp.zeros((B, 1), jnp.float32)
    for hm in (h0f, h0b, h1f, h1b):          # final hidden states, [BB, H]
        diff = jnp.abs(hm[0:B] - hm[B:2 * B])          # sent1 rows vs sent2
        dist = dist + jnp.sum(diff, axis=1, keepdims=True)
    pred_ref[...] = jnp.exp(-dist)


# ----------------------------------------------------------------------------
# pallas_call wrapper
# ----------------------------------------------------------------------------

_VMEM = pl.BlockSpec(memory_space=pltpu.MemorySpace.VMEM)
_CPARAMS = pltpu.CompilerParams(vmem_limit_bytes=32 * 1024 * 1024)


def siam_rnn_forward(params, sent1, sent2):
    """sent1, sent2: [B, T] int32 token ids -> [B] exp(-L1) predictions."""
    layers = params["layers"]
    assert len(layers) == 2, "fused kernel assumes num_layers == 2"
    B, T = sent1.shape
    BB = 2 * B
    (w0i, b0i, w0h, b0n), (w1i, b1i, w1h, b1n) = layers
    H = w0h.shape[-1] // 3

    # Both sentences stacked along batch; tokens in time-major row order so
    # the in-kernel gather directly yields the [T*BB, E] layout.
    tokens = jnp.concatenate([sent1, sent2], axis=0)             # [BB, T]
    tok_tm = jnp.transpose(tokens).reshape(T * BB, 1).astype(jnp.int32)

    # TODO(synk): nn.Dropout(p=0.6) on embeddings and GRU inter-layer dropout
    # (p=0.5) are stochastic training-only ops; eval-mode identity here.

    kernel = functools.partial(_siam_kernel, T=T, BB=BB, B=B, H=H)
    pred = pl.pallas_call(
        kernel,
        out_shape=jax.ShapeDtypeStruct((B, 1), jnp.float32),
        in_specs=[_VMEM] * 10,
        out_specs=_VMEM,
        scratch_shapes=[pltpu.VMEM((2, T * BB, H), jnp.float32)],
        compiler_params=_CPARAMS,
    )(tok_tm, params["embedding"], w0i, b0i, w0h, b0n, w1i, b1i, w1h, b1n)
    return pred[:, 0]


# ----------------------------------------------------------------------------
# Parameter init (PyTorch GRU layout -> gate-fused kernel layout)
# ----------------------------------------------------------------------------

def init_params(key, vocab_size, embed_size, hidden_size, num_layers,
                padding_index=0):
    key, ek = jax.random.split(key)
    emb = jax.random.normal(ek, (vocab_size, embed_size), jnp.float32)
    emb = emb.at[padding_index].set(0.0)   # nn.Embedding padding_idx row = 0

    H = hidden_size
    bound = 1.0 / (H ** 0.5)               # PyTorch GRU uniform init bound
    layers = []
    for layer in range(num_layers):
        d_in = embed_size if layer == 0 else 2 * H
        wi_l, bi_l, wh_l, bn_l = [], [], [], []
        for _d in range(2):                # 0 = forward, 1 = reverse
            key, k1, k2, k3, k4 = jax.random.split(key, 5)
            w_ih = jax.random.uniform(k1, (3 * H, d_in), jnp.float32, -bound, bound)
            w_hh = jax.random.uniform(k2, (3 * H, H), jnp.float32, -bound, bound)
            b_ih = jax.random.uniform(k3, (3 * H,), jnp.float32, -bound, bound)
            b_hh = jax.random.uniform(k4, (3 * H,), jnp.float32, -bound, bound)
            # Gate-fused transposed weights: columns ordered [r | z | n].
            wi_l.append(w_ih.T)                                  # [d_in, 3H]
            wh_l.append(w_hh.T)                                  # [H, 3H]
            # Bias folding: r/z get b_ih + b_hh, n gets b_ih only.
            bi = jnp.concatenate([b_ih[0:H] + b_hh[0:H],
                                  b_ih[H:2 * H] + b_hh[H:2 * H],
                                  b_ih[2 * H:3 * H]])
            bi_l.append(bi[None, :])                             # [1, 3H]
            bn_l.append(b_hh[2 * H:3 * H][None, :])              # [1, H]
        layers.append((jnp.stack(wi_l, 0),   # [2, d_in, 3H]
                       jnp.stack(bi_l, 0),   # [2, 1, 3H]
                       jnp.stack(wh_l, 0),   # [2, H, 3H]
                       jnp.stack(bn_l, 0)))  # [2, 1, H]
    return {"embedding": emb, "layers": layers}


# ----------------------------------------------------------------------------
# Main
# ----------------------------------------------------------------------------

if __name__ == "__main__":
    VOCAB_SIZE = 50
    EMBED_SIZE = 32
    HIDDEN_SIZE = 32
    NUM_LAYERS = 2
    BATCH = 2
    SEQ = 8

    key = jax.random.PRNGKey(0)
    kp, ks1, ks2 = jax.random.split(key, 3)

    params = init_params(kp, VOCAB_SIZE, EMBED_SIZE, HIDDEN_SIZE, NUM_LAYERS)
    sent1 = jax.random.randint(ks1, (BATCH, SEQ), 0, VOCAB_SIZE, dtype=jnp.int32)
    sent2 = jax.random.randint(ks2, (BATCH, SEQ), 0, VOCAB_SIZE, dtype=jnp.int32)

    pred = jax.jit(siam_rnn_forward)(params, sent1, sent2)
    pred = jax.block_until_ready(pred)

    assert pred.shape == (BATCH,), pred.shape
    assert bool(jnp.all(jnp.isfinite(pred)))
    assert bool(jnp.all((pred >= 0.0) & (pred <= 1.0)))
    print("KERNEL_OK")
</pallas_src>

<mosaic_0001>
module attributes {stable_mosaic.version = 11 : i64} {
  func.func @_siam_kernel(%arg0: memref<32x1xi32, #tpu.memory_space<vmem>>, %arg1: memref<50x32xf32, #tpu.memory_space<vmem>>, %arg2: memref<2x32x96xf32, #tpu.memory_space<vmem>>, %arg3: memref<2x1x96xf32, #tpu.memory_space<vmem>>, %arg4: memref<2x32x96xf32, #tpu.memory_space<vmem>>, %arg5: memref<2x1x32xf32, #tpu.memory_space<vmem>>, %arg6: memref<2x64x96xf32, #tpu.memory_space<vmem>>, %arg7: memref<2x1x96xf32, #tpu.memory_space<vmem>>, %arg8: memref<2x32x96xf32, #tpu.memory_space<vmem>>, %arg9: memref<2x1x32xf32, #tpu.memory_space<vmem>>, %arg10: memref<2x1xf32, #tpu.memory_space<vmem>>, %arg11: memref<2x32x32xf32, #tpu.memory_space<vmem>>) attributes {dimension_semantics = [], scalar_prefetch = 0 : i64, scratch_operands = 1 : i64, tpu.core_type = #tpu.core_type<tc>} {
    %c0 = arith.constant 0 : index
    %c0_0 = arith.constant 0 : index
    %0 = vector.load %arg0[%c0, %c0_0] : memref<32x1xi32, #tpu.memory_space<vmem>>, vector<32x1xi32>
    %1 = tpu.iota {dimensions = array<i32: 1>} : vector<32x50xi32>
    %2 = vector.broadcast %0 : vector<32x1xi32> to vector<32x50xi32>
    %3 = arith.cmpi eq, %2, %1 : vector<32x50xi32>
    %4 = arith.extui %3 : vector<32x50xi1> to vector<32x50xi32>
    %5 = arith.sitofp %4 : vector<32x50xi32> to vector<32x50xf32>
    %c0_1 = arith.constant 0 : index
    %c0_2 = arith.constant 0 : index
    %6 = vector.load %arg1[%c0_1, %c0_2] : memref<50x32xf32, #tpu.memory_space<vmem>>, vector<50x32xf32>
    %cst = arith.constant dense<0.000000e+00> : vector<32x32xf32>
    %7 = tpu.matmul %5, %6, %cst {dimension_numbers = #tpu.dot_dimension_numbers<[1], [0], [0], [1], [0, 0, 1, 1], [], []>} : vector<32x50xf32>, vector<50x32xf32>, vector<32x32xf32> -> vector<32x32xf32>
    %c0_3 = arith.constant 0 : index
    %c0_4 = arith.constant 0 : index
    %c0_5 = arith.constant 0 : index
    %8 = vector.load %arg2[%c0_3, %c0_4, %c0_5] : memref<2x32x96xf32, #tpu.memory_space<vmem>>, vector<1x32x96xf32>
    %9 = vector.shape_cast %8 : vector<1x32x96xf32> to vector<32x96xf32>
    %cst_6 = arith.constant dense<0.000000e+00> : vector<32x96xf32>
    %10 = tpu.matmul %7, %9, %cst_6 {dimension_numbers = #tpu.dot_dimension_numbers<[1], [0], [0], [1], [0, 0, 1, 1], [], []>} : vector<32x32xf32>, vector<32x96xf32>, vector<32x96xf32> -> vector<32x96xf32>
    %c0_7 = arith.constant 0 : index
    %c0_8 = arith.constant 0 : index
    %c0_9 = arith.constant 0 : index
    %11 = vector.load %arg3[%c0_7, %c0_8, %c0_9] : memref<2x1x96xf32, #tpu.memory_space<vmem>>, vector<1x1x96xf32>
    %12 = vector.shape_cast %11 : vector<1x1x96xf32> to vector<1x96xf32>
    %13 = vector.broadcast %12 : vector<1x96xf32> to vector<32x96xf32>
    %14 = arith.addf %10, %13 : vector<32x96xf32>
    %c1 = arith.constant 1 : index
    %c0_10 = arith.constant 0 : index
    %c0_11 = arith.constant 0 : index
    %15 = vector.load %arg2[%c1, %c0_10, %c0_11] : memref<2x32x96xf32, #tpu.memory_space<vmem>>, vector<1x32x96xf32>
    %16 = vector.shape_cast %15 : vector<1x32x96xf32> to vector<32x96xf32>
    %cst_12 = arith.constant dense<0.000000e+00> : vector<32x96xf32>
    %17 = tpu.matmul %7, %16, %cst_12 {dimension_numbers = #tpu.dot_dimension_numbers<[1], [0], [0], [1], [0, 0, 1, 1], [], []>} : vector<32x32xf32>, vector<32x96xf32>, vector<32x96xf32> -> vector<32x96xf32>
    %c1_13 = arith.constant 1 : index
    %c0_14 = arith.constant 0 : index
    %c0_15 = arith.constant 0 : index
    %18 = vector.load %arg3[%c1_13, %c0_14, %c0_15] : memref<2x1x96xf32, #tpu.memory_space<vmem>>, vector<1x1x96xf32>
    %19 = vector.shape_cast %18 : vector<1x1x96xf32> to vector<1x96xf32>
    %20 = vector.broadcast %19 : vector<1x96xf32> to vector<32x96xf32>
    %21 = arith.addf %17, %20 : vector<32x96xf32>
    %c0_16 = arith.constant 0 : index
    %c0_17 = arith.constant 0 : index
    %c0_18 = arith.constant 0 : index
    %22 = vector.load %arg4[%c0_16, %c0_17, %c0_18] : memref<2x32x96xf32, #tpu.memory_space<vmem>>, vector<1x32x96xf32>
    %23 = vector.shape_cast %22 : vector<1x32x96xf32> to vector<32x96xf32>
    %c1_19 = arith.constant 1 : index
    %c0_20 = arith.constant 0 : index
    %c0_21 = arith.constant 0 : index
    %24 = vector.load %arg4[%c1_19, %c0_20, %c0_21] : memref<2x32x96xf32, #tpu.memory_space<vmem>>, vector<1x32x96xf32>
    %25 = vector.shape_cast %24 : vector<1x32x96xf32> to vector<32x96xf32>
    %c0_22 = arith.constant 0 : index
    %c0_23 = arith.constant 0 : index
    %c0_24 = arith.constant 0 : index
    %26 = vector.load %arg5[%c0_22, %c0_23, %c0_24] : memref<2x1x32xf32, #tpu.memory_space<vmem>>, vector<1x1x32xf32>
    %27 = vector.shape_cast %26 : vector<1x1x32xf32> to vector<1x32xf32>
    %c1_25 = arith.constant 1 : index
    %c0_26 = arith.constant 0 : index
    %c0_27 = arith.constant 0 : index
    %28 = vector.load %arg5[%c1_25, %c0_26, %c0_27] : memref<2x1x32xf32, #tpu.memory_space<vmem>>, vector<1x1x32xf32>
    %29 = vector.shape_cast %28 : vector<1x1x32xf32> to vector<1x32xf32>
    %cst_28 = arith.constant 0.000000e+00 : f32
    %30 = vector.broadcast %cst_28 : f32 to vector<4x32xf32>
    %cst_29 = arith.constant 0.000000e+00 : f32
    %31 = vector.broadcast %cst_29 : f32 to vector<4x32xf32>
    %32 = vector.extract_strided_slice %14 {offsets = [0, 0], sizes = [4, 96], strides = [1, 1]} : vector<32x96xf32> to vector<4x96xf32>
    %cst_30 = arith.constant dense<0.000000e+00> : vector<4x96xf32>
    %33 = tpu.matmul %30, %23, %cst_30 {dimension_numbers = #tpu.dot_dimension_numbers<[1], [0], [0], [1], [0, 0, 1, 1], [], []>} : vector<4x32xf32>, vector<32x96xf32>, vector<4x96xf32> -> vector<4x96xf32>
    %34 = vector.extract_strided_slice %32 {offsets = [0, 0], sizes = [4, 32], strides = [1, 1]} : vector<4x96xf32> to vector<4x32xf32>
    %35 = vector.extract_strided_slice %33 {offsets = [0, 0], sizes = [4, 32], strides = [1, 1]} : vector<4x96xf32> to vector<4x32xf32>
    %36 = arith.addf %34, %35 : vector<4x32xf32>
    %37 = arith.negf %36 : vector<4x32xf32>
    %38 = math.exp %37 : vector<4x32xf32>
    %cst_31 = arith.constant 1.000000e+00 : f32
    %39 = vector.broadcast %cst_31 : f32 to vector<4x32xf32>
    %40 = arith.addf %39, %38 : vector<4x32xf32>
    %41 = arith.divf %39, %40 : vector<4x32xf32>
    %42 = vector.extract_strided_slice %32 {offsets = [0, 32], sizes = [4, 32], strides = [1, 1]} : vector<4x96xf32> to vector<4x32xf32>
    %43 = vector.extract_strided_slice %33 {offsets = [0, 32], sizes = [4, 32], strides = [1, 1]} : vector<4x96xf32> to vector<4x32xf32>
    %44 = arith.addf %42, %43 : vector<4x32xf32>
    %45 = arith.negf %44 : vector<4x32xf32>
    %46 = math.exp %45 : vector<4x32xf32>
    %cst_32 = arith.constant 1.000000e+00 : f32
    %47 = vector.broadcast %cst_32 : f32 to vector<4x32xf32>
    %48 = arith.addf %47, %46 : vector<4x32xf32>
    %49 = arith.divf %47, %48 : vector<4x32xf32>
    %50 = vector.extract_strided_slice %32 {offsets = [0, 64], sizes = [4, 32], strides = [1, 1]} : vector<4x96xf32> to vector<4x32xf32>
    %51 = vector.extract_strided_slice %33 {offsets = [0, 64], sizes = [4, 32], strides = [1, 1]} : vector<4x96xf32> to vector<4x32xf32>
    %52 = vector.broadcast %27 : vector<1x32xf32> to vector<4x32xf32>
    %53 = arith.addf %51, %52 : vector<4x32xf32>
    %54 = arith.mulf %41, %53 : vector<4x32xf32>
    %55 = arith.addf %50, %54 : vector<4x32xf32>
    %56 = math.tanh %55 : vector<4x32xf32>
    %cst_33 = arith.constant 1.000000e+00 : f32
    %57 = vector.broadcast %cst_33 : f32 to vector<4x32xf32>
    %58 = arith.subf %57, %49 : vector<4x32xf32>
    %59 = arith.mulf %58, %56 : vector<4x32xf32>
    %60 = arith.mulf %49, %30 : vector<4x32xf32>
    %61 = arith.addf %59, %60 : vector<4x32xf32>
    %62 = vector.extract_strided_slice %21 {offsets = [28, 0], sizes = [4, 96], strides = [1, 1]} : vector<32x96xf32> to vector<4x96xf32>
    %cst_34 = arith.constant dense<0.000000e+00> : vector<4x96xf32>
    %63 = tpu.matmul %31, %25, %cst_34 {dimension_numbers = #tpu.dot_dimension_numbers<[1], [0], [0], [1], [0, 0, 1, 1], [], []>} : vector<4x32xf32>, vector<32x96xf32>, vector<4x96xf32> -> vector<4x96xf32>
    %64 = vector.extract_strided_slice %62 {offsets = [0, 0], sizes = [4, 32], strides = [1, 1]} : vector<4x96xf32> to vector<4x32xf32>
    %65 = vector.extract_strided_slice %63 {offsets = [0, 0], sizes = [4, 32], strides = [1, 1]} : vector<4x96xf32> to vector<4x32xf32>
    %66 = arith.addf %64, %65 : vector<4x32xf32>
    %67 = arith.negf %66 : vector<4x32xf32>
    %68 = math.exp %67 : vector<4x32xf32>
    %cst_35 = arith.constant 1.000000e+00 : f32
    %69 = vector.broadcast %cst_35 : f32 to vector<4x32xf32>
    %70 = arith.addf %69, %68 : vector<4x32xf32>
    %71 = arith.divf %69, %70 : vector<4x32xf32>
    %72 = vector.extract_strided_slice %62 {offsets = [0, 32], sizes = [4, 32], strides = [1, 1]} : vector<4x96xf32> to vector<4x32xf32>
    %73 = vector.extract_strided_slice %63 {offsets = [0, 32], sizes = [4, 32], strides = [1, 1]} : vector<4x96xf32> to vector<4x32xf32>
    %74 = arith.addf %72, %73 : vector<4x32xf32>
    %75 = arith.negf %74 : vector<4x32xf32>
    %76 = math.exp %75 : vector<4x32xf32>
    %cst_36 = arith.constant 1.000000e+00 : f32
    %77 = vector.broadcast %cst_36 : f32 to vector<4x32xf32>
    %78 = arith.addf %77, %76 : vector<4x32xf32>
    %79 = arith.divf %77, %78 : vector<4x32xf32>
    %80 = vector.extract_strided_slice %62 {offsets = [0, 64], sizes = [4, 32], strides = [1, 1]} : vector<4x96xf32> to vector<4x32xf32>
    %81 = vector.extract_strided_slice %63 {offsets = [0, 64], sizes = [4, 32], strides = [1, 1]} : vector<4x96xf32> to vector<4x32xf32>
    %82 = vector.broadcast %29 : vector<1x32xf32> to vector<4x32xf32>
    %83 = arith.addf %81, %82 : vector<4x32xf32>
    %84 = arith.mulf %71, %83 : vector<4x32xf32>
    %85 = arith.addf %80, %84 : vector<4x32xf32>
    %86 = math.tanh %85 : vector<4x32xf32>
    %cst_37 = arith.constant 1.000000e+00 : f32
    %87 = vector.broadcast %cst_37 : f32 to vector<4x32xf32>
    %88 = arith.subf %87, %79 : vector<4x32xf32>
    %89 = arith.mulf %88, %86 : vector<4x32xf32>
    %90 = arith.mulf %79, %31 : vector<4x32xf32>
    %91 = arith.addf %89, %90 : vector<4x32xf32>
    %c0_38 = arith.constant 0 : index
    %c0_39 = arith.constant 0 : index
    %c0_40 = arith.constant 0 : index
    %92 = vector.load %arg11[%c0_38, %c0_39, %c0_40] : memref<2x32x32xf32, #tpu.memory_space<vmem>>, vector<1x4x32xf32>
    %93 = vector.shape_cast %92 : vector<1x4x32xf32> to vector<4x32xf32>
    %94 = vector.shape_cast %61 : vector<4x32xf32> to vector<1x4x32xf32>
    tpu.vector_store %arg11[%c0_38, %c0_39, %c0_40], %94 {strides = array<i32>} : memref<2x32x32xf32, #tpu.memory_space<vmem>>, vector<1x4x32xf32>,
    %c1_41 = arith.constant 1 : index
    %c28 = arith.constant 28 : index
    %c0_42 = arith.constant 0 : index
    %95 = vector.load %arg11[%c1_41, %c28, %c0_42] : memref<2x32x32xf32, #tpu.memory_space<vmem>>, vector<1x4x32xf32>
    %96 = vector.shape_cast %95 : vector<1x4x32xf32> to vector<4x32xf32>
    %97 = vector.shape_cast %91 : vector<4x32xf32> to vector<1x4x32xf32>
    tpu.vector_store %arg11[%c1_41, %c28, %c0_42], %97 {strides = array<i32>} : memref<2x32x32xf32, #tpu.memory_space<vmem>>, vector<1x4x32xf32>,
    %98 = vector.extract_strided_slice %14 {offsets = [4, 0], sizes = [4, 96], strides = [1, 1]} : vector<32x96xf32> to vector<4x96xf32>
    %cst_43 = arith.constant dense<0.000000e+00> : vector<4x96xf32>
    %99 = tpu.matmul %61, %23, %cst_43 {dimension_numbers = #tpu.dot_dimension_numbers<[1], [0], [0], [1], [0, 0, 1, 1], [], []>} : vector<4x32xf32>, vector<32x96xf32>, vector<4x96xf32> -> vector<4x96xf32>
    %100 = vector.extract_strided_slice %98 {offsets = [0, 0], sizes = [4, 32], strides = [1, 1]} : vector<4x96xf32> to vector<4x32xf32>
    %101 = vector.extract_strided_slice %99 {offsets = [0, 0], sizes = [4, 32], strides = [1, 1]} : vector<4x96xf32> to vector<4x32xf32>
    %102 = arith.addf %100, %101 : vector<4x32xf32>
    %103 = arith.negf %102 : vector<4x32xf32>
    %104 = math.exp %103 : vector<4x32xf32>
    %cst_44 = arith.constant 1.000000e+00 : f32
    %105 = vector.broadcast %cst_44 : f32 to vector<4x32xf32>
    %106 = arith.addf %105, %104 : vector<4x32xf32>
    %107 = arith.divf %105, %106 : vector<4x32xf32>
    %108 = vector.extract_strided_slice %98 {offsets = [0, 32], sizes = [4, 32], strides = [1, 1]} : vector<4x96xf32> to vector<4x32xf32>
    %109 = vector.extract_strided_slice %99 {offsets = [0, 32], sizes = [4, 32], strides = [1, 1]} : vector<4x96xf32> to vector<4x32xf32>
    %110 = arith.addf %108, %109 : vector<4x32xf32>
    %111 = arith.negf %110 : vector<4x32xf32>
    %112 = math.exp %111 : vector<4x32xf32>
    %cst_45 = arith.constant 1.000000e+00 : f32
    %113 = vector.broadcast %cst_45 : f32 to vector<4x32xf32>
    %114 = arith.addf %113, %112 : vector<4x32xf32>
    %115 = arith.divf %113, %114 : vector<4x32xf32>
    %116 = vector.extract_strided_slice %98 {offsets = [0, 64], sizes = [4, 32], strides = [1, 1]} : vector<4x96xf32> to vector<4x32xf32>
    %117 = vector.extract_strided_slice %99 {offsets = [0, 64], sizes = [4, 32], strides = [1, 1]} : vector<4x96xf32> to vector<4x32xf32>
    %118 = vector.broadcast %27 : vector<1x32xf32> to vector<4x32xf32>
    %119 = arith.addf %117, %118 : vector<4x32xf32>
    %120 = arith.mulf %107, %119 : vector<4x32xf32>
    %121 = arith.addf %116, %120 : vector<4x32xf32>
    %122 = math.tanh %121 : vector<4x32xf32>
    %cst_46 = arith.constant 1.000000e+00 : f32
    %123 = vector.broadcast %cst_46 : f32 to vector<4x32xf32>
    %124 = arith.subf %123, %115 : vector<4x32xf32>
    %125 = arith.mulf %124, %122 : vector<4x32xf32>
    %126 = arith.mulf %115, %61 : vector<4x32xf32>
    %127 = arith.addf %125, %126 : vector<4x32xf32>
    %128 = vector.extract_strided_slice %21 {offsets = [24, 0], sizes = [4, 96], strides = [1, 1]} : vector<32x96xf32> to vector<4x96xf32>
    %cst_47 = arith.constant dense<0.000000e+00> : vector<4x96xf32>
    %129 = tpu.matmul %91, %25, %cst_47 {dimension_numbers = #tpu.dot_dimension_numbers<[1], [0], [0], [1], [0, 0, 1, 1], [], []>} : vector<4x32xf32>, vector<32x96xf32>, vector<4x96xf32> -> vector<4x96xf32>
    %130 = vector.extract_strided_slice %128 {offsets = [0, 0], sizes = [4, 32], strides = [1, 1]} : vector<4x96xf32> to vector<4x32xf32>
    %131 = vector.extract_strided_slice %129 {offsets = [0, 0], sizes = [4, 32], strides = [1, 1]} : vector<4x96xf32> to vector<4x32xf32>
    %132 = arith.addf %130, %131 : vector<4x32xf32>
    %133 = arith.negf %132 : vector<4x32xf32>
    %134 = math.exp %133 : vector<4x32xf32>
    %cst_48 = arith.constant 1.000000e+00 : f32
    %135 = vector.broadcast %cst_48 : f32 to vector<4x32xf32>
    %136 = arith.addf %135, %134 : vector<4x32xf32>
    %137 = arith.divf %135, %136 : vector<4x32xf32>
    %138 = vector.extract_strided_slice %128 {offsets = [0, 32], sizes = [4, 32], strides = [1, 1]} : vector<4x96xf32> to vector<4x32xf32>
    %139 = vector.extract_strided_slice %129 {offsets = [0, 32], sizes = [4, 32], strides = [1, 1]} : vector<4x96xf32> to vector<4x32xf32>
    %140 = arith.addf %138, %139 : vector<4x32xf32>
    %141 = arith.negf %140 : vector<4x32xf32>
    %142 = math.exp %141 : vector<4x32xf32>
    %cst_49 = arith.constant 1.000000e+00 : f32
    %143 = vector.broadcast %cst_49 : f32 to vector<4x32xf32>
    %144 = arith.addf %143, %142 : vector<4x32xf32>
    %145 = arith.divf %143, %144 : vector<4x32xf32>
    %146 = vector.extract_strided_slice %128 {offsets = [0, 64], sizes = [4, 32], strides = [1, 1]} : vector<4x96xf32> to vector<4x32xf32>
    %147 = vector.extract_strided_slice %129 {offsets = [0, 64], sizes = [4, 32], strides = [1, 1]} : vector<4x96xf32> to vector<4x32xf32>
    %148 = vector.broadcast %29 : vector<1x32xf32> to vector<4x32xf32>
    %149 = arith.addf %147, %148 : vector<4x32xf32>
    %150 = arith.mulf %137, %149 : vector<4x32xf32>
    %151 = arith.addf %146, %150 : vector<4x32xf32>
    %152 = math.tanh %151 : vector<4x32xf32>
    %cst_50 = arith.constant 1.000000e+00 : f32
    %153 = vector.broadcast %cst_50 : f32 to vector<4x32xf32>
    %154 = arith.subf %153, %145 : vector<4x32xf32>
    %155 = arith.mulf %154, %152 : vector<4x32xf32>
    %156 = arith.mulf %145, %91 : vector<4x32xf32>
    %157 = arith.addf %155, %156 : vector<4x32xf32>
    %c0_51 = arith.constant 0 : index
    %c4 = arith.constant 4 : index
    %c0_52 = arith.constant 0 : index
    %158 = vector.load %arg11[%c0_51, %c4, %c0_52] : memref<2x32x32xf32, #tpu.memory_space<vmem>>, vector<1x4x32xf32>
    %159 = vector.shape_cast %158 : vector<1x4x32xf32> to vector<4x32xf32>
    %160 = vector.shape_cast %127 : vector<4x32xf32> to vector<1x4x32xf32>
    tpu.vector_store %arg11[%c0_51, %c4, %c0_52], %160 {strides = array<i32>} : memref<2x32x32xf32, #tpu.memory_space<vmem>>, vector<1x4x32xf32>,
    %c1_53 = arith.constant 1 : index
    %c24 = arith.constant 24 : index
    %c0_54 = arith.constant 0 : index
    %161 = vector.load %arg11[%c1_53, %c24, %c0_54] : memref<2x32x32xf32, #tpu.memory_space<vmem>>, vector<1x4x32xf32>
    %162 = vector.shape_cast %161 : vector<1x4x32xf32> to vector<4x32xf32>
    %163 = vector.shape_cast %157 : vector<4x32xf32> to vector<1x4x32xf32>
    tpu.vector_store %arg11[%c1_53, %c24, %c0_54], %163 {strides = array<i32>} : memref<2x32x32xf32, #tpu.memory_space<vmem>>, vector<1x4x32xf32>,
    %164 = vector.extract_strided_slice %14 {offsets = [8, 0], sizes = [4, 96], strides = [1, 1]} : vector<32x96xf32> to vector<4x96xf32>
    %cst_55 = arith.constant dense<0.000000e+00> : vector<4x96xf32>
    %165 = tpu.matmul %127, %23, %cst_55 {dimension_numbers = #tpu.dot_dimension_numbers<[1], [0], [0], [1], [0, 0, 1, 1], [], []>} : vector<4x32xf32>, vector<32x96xf32>, vector<4x96xf32> -> vector<4x96xf32>
    %166 = vector.extract_strided_slice %164 {offsets = [0, 0], sizes = [4, 32], strides = [1, 1]} : vector<4x96xf32> to vector<4x32xf32>
    %167 = vector.extract_strided_slice %165 {offsets = [0, 0], sizes = [4, 32], strides = [1, 1]} : vector<4x96xf32> to vector<4x32xf32>
    %168 = arith.addf %166, %167 : vector<4x32xf32>
    %169 = arith.negf %168 : vector<4x32xf32>
    %170 = math.exp %169 : vector<4x32xf32>
    %cst_56 = arith.constant 1.000000e+00 : f32
    %171 = vector.broadcast %cst_56 : f32 to vector<4x32xf32>
    %172 = arith.addf %171, %170 : vector<4x32xf32>
    %173 = arith.divf %171, %172 : vector<4x32xf32>
    %174 = vector.extract_strided_slice %164 {offsets = [0, 32], sizes = [4, 32], strides = [1, 1]} : vector<4x96xf32> to vector<4x32xf32>
    %175 = vector.extract_strided_slice %165 {offsets = [0, 32], sizes = [4, 32], strides = [1, 1]} : vector<4x96xf32> to vector<4x32xf32>
    %176 = arith.addf %174, %175 : vector<4x32xf32>
    %177 = arith.negf %176 : vector<4x32xf32>
    %178 = math.exp %177 : vector<4x32xf32>
    %cst_57 = arith.constant 1.000000e+00 : f32
    %179 = vector.broadcast %cst_57 : f32 to vector<4x32xf32>
    %180 = arith.addf %179, %178 : vector<4x32xf32>
    %181 = arith.divf %179, %180 : vector<4x32xf32>
    %182 = vector.extract_strided_slice %164 {offsets = [0, 64], sizes = [4, 32], strides = [1, 1]} : vector<4x96xf32> to vector<4x32xf32>
    %183 = vector.extract_strided_slice %165 {offsets = [0, 64], sizes = [4, 32], strides = [1, 1]} : vector<4x96xf32> to vector<4x32xf32>
    %184 = vector.broadcast %27 : vector<1x32xf32> to vector<4x32xf32>
    %185 = arith.addf %183, %184 : vector<4x32xf32>
    %186 = arith.mulf %173, %185 : vector<4x32xf32>
    %187 = arith.addf %182, %186 : vector<4x32xf32>
    %188 = math.tanh %187 : vector<4x32xf32>
    %cst_58 = arith.constant 1.000000e+00 : f32
    %189 = vector.broadcast %cst_58 : f32 to vector<4x32xf32>
    %190 = arith.subf %189, %181 : vector<4x32xf32>
    %191 = arith.mulf %190, %188 : vector<4x32xf32>
    %192 = arith.mulf %181, %127 : vector<4x32xf32>
    %193 = arith.addf %191, %192 : vector<4x32xf32>
    %194 = vector.extract_strided_slice %21 {offsets = [20, 0], sizes = [4, 96], strides = [1, 1]} : vector<32x96xf32> to vector<4x96xf32>
    %cst_59 = arith.constant dense<0.000000e+00> : vector<4x96xf32>
    %195 = tpu.matmul %157, %25, %cst_59 {dimension_numbers = #tpu.dot_dimension_numbers<[1], [0], [0], [1], [0, 0, 1, 1], [], []>} : vector<4x32xf32>, vector<32x96xf32>, vector<4x96xf32> -> vector<4x96xf32>
    %196 = vector.extract_strided_slice %194 {offsets = [0, 0], sizes = [4, 32], strides = [1, 1]} : vector<4x96xf32> to vector<4x32xf32>
    %197 = vector.extract_strided_slice %195 {offsets = [0, 0], sizes = [4, 32], strides = [1, 1]} : vector<4x96xf32> to vector<4x32xf32>
    %198 = arith.addf %196, %197 : vector<4x32xf32>
    %199 = arith.negf %198 : vector<4x32xf32>
    %200 = math.exp %199 : vector<4x32xf32>
    %cst_60 = arith.constant 1.000000e+00 : f32
    %201 = vector.broadcast %cst_60 : f32 to vector<4x32xf32>
    %202 = arith.addf %201, %200 : vector<4x32xf32>
    %203 = arith.divf %201, %202 : vector<4x32xf32>
    %204 = vector.extract_strided_slice %194 {offsets = [0, 32], sizes = [4, 32], strides = [1, 1]} : vector<4x96xf32> to vector<4x32xf32>
    %205 = vector.extract_strided_slice %195 {offsets = [0, 32], sizes = [4, 32], strides = [1, 1]} : vector<4x96xf32> to vector<4x32xf32>
    %206 = arith.addf %204, %205 : vector<4x32xf32>
    %207 = arith.negf %206 : vector<4x32xf32>
    %208 = math.exp %207 : vector<4x32xf32>
    %cst_61 = arith.constant 1.000000e+00 : f32
    %209 = vector.broadcast %cst_61 : f32 to vector<4x32xf32>
    %210 = arith.addf %209, %208 : vector<4x32xf32>
    %211 = arith.divf %209, %210 : vector<4x32xf32>
    %212 = vector.extract_strided_slice %194 {offsets = [0, 64], sizes = [4, 32], strides = [1, 1]} : vector<4x96xf32> to vector<4x32xf32>
    %213 = vector.extract_strided_slice %195 {offsets = [0, 64], sizes = [4, 32], strides = [1, 1]} : vector<4x96xf32> to vector<4x32xf32>
    %214 = vector.broadcast %29 : vector<1x32xf32> to vector<4x32xf32>
    %215 = arith.addf %213, %214 : vector<4x32xf32>
    %216 = arith.mulf %203, %215 : vector<4x32xf32>
    %217 = arith.addf %212, %216 : vector<4x32xf32>
    %218 = math.tanh %217 : vector<4x32xf32>
    %cst_62 = arith.constant 1.000000e+00 : f32
    %219 = vector.broadcast %cst_62 : f32 to vector<4x32xf32>
    %220 = arith.subf %219, %211 : vector<4x32xf32>
    %221 = arith.mulf %220, %218 : vector<4x32xf32>
    %222 = arith.mulf %211, %157 : vector<4x32xf32>
    %223 = arith.addf %221, %222 : vector<4x32xf32>
    %c0_63 = arith.constant 0 : index
    %c8 = arith.constant 8 : index
    %c0_64 = arith.constant 0 : index
    %224 = vector.load %arg11[%c0_63, %c8, %c0_64] : memref<2x32x32xf32, #tpu.memory_space<vmem>>, vector<1x4x32xf32>
    %225 = vector.shape_cast %224 : vector<1x4x32xf32> to vector<4x32xf32>
    %226 = vector.shape_cast %193 : vector<4x32xf32> to vector<1x4x32xf32>
    tpu.vector_store %arg11[%c0_63, %c8, %c0_64], %226 {strides = array<i32>} : memref<2x32x32xf32, #tpu.memory_space<vmem>>, vector<1x4x32xf32>,
    %c1_65 = arith.constant 1 : index
    %c20 = arith.constant 20 : index
    %c0_66 = arith.constant 0 : index
    %227 = vector.load %arg11[%c1_65, %c20, %c0_66] : memref<2x32x32xf32, #tpu.memory_space<vmem>>, vector<1x4x32xf32>
    %228 = vector.shape_cast %227 : vector<1x4x32xf32> to vector<4x32xf32>
    %229 = vector.shape_cast %223 : vector<4x32xf32> to vector<1x4x32xf32>
    tpu.vector_store %arg11[%c1_65, %c20, %c0_66], %229 {strides = array<i32>} : memref<2x32x32xf32, #tpu.memory_space<vmem>>, vector<1x4x32xf32>,
    %230 = vector.extract_strided_slice %14 {offsets = [12, 0], sizes = [4, 96], strides = [1, 1]} : vector<32x96xf32> to vector<4x96xf32>
    %cst_67 = arith.constant dense<0.000000e+00> : vector<4x96xf32>
    %231 = tpu.matmul %193, %23, %cst_67 {dimension_numbers = #tpu.dot_dimension_numbers<[1], [0], [0], [1], [0, 0, 1, 1], [], []>} : vector<4x32xf32>, vector<32x96xf32>, vector<4x96xf32> -> vector<4x96xf32>
    %232 = vector.extract_strided_slice %230 {offsets = [0, 0], sizes = [4, 32], strides = [1, 1]} : vector<4x96xf32> to vector<4x32xf32>
    %233 = vector.extract_strided_slice %231 {offsets = [0, 0], sizes = [4, 32], strides = [1, 1]} : vector<4x96xf32> to vector<4x32xf32>
    %234 = arith.addf %232, %233 : vector<4x32xf32>
    %235 = arith.negf %234 : vector<4x32xf32>
    %236 = math.exp %235 : vector<4x32xf32>
    %cst_68 = arith.constant 1.000000e+00 : f32
    %237 = vector.broadcast %cst_68 : f32 to vector<4x32xf32>
    %238 = arith.addf %237, %236 : vector<4x32xf32>
    %239 = arith.divf %237, %238 : vector<4x32xf32>
    %240 = vector.extract_strided_slice %230 {offsets = [0, 32], sizes = [4, 32], strides = [1, 1]} : vector<4x96xf32> to vector<4x32xf32>
    %241 = vector.extract_strided_slice %231 {offsets = [0, 32], sizes = [4, 32], strides = [1, 1]} : vector<4x96xf32> to vector<4x32xf32>
    %242 = arith.addf %240, %241 : vector<4x32xf32>
    %243 = arith.negf %242 : vector<4x32xf32>
    %244 = math.exp %243 : vector<4x32xf32>
    %cst_69 = arith.constant 1.000000e+00 : f32
    %245 = vector.broadcast %cst_69 : f32 to vector<4x32xf32>
    %246 = arith.addf %245, %244 : vector<4x32xf32>
    %247 = arith.divf %245, %246 : vector<4x32xf32>
    %248 = vector.extract_strided_slice %230 {offsets = [0, 64], sizes = [4, 32], strides = [1, 1]} : vector<4x96xf32> to vector<4x32xf32>
    %249 = vector.extract_strided_slice %231 {offsets = [0, 64], sizes = [4, 32], strides = [1, 1]} : vector<4x96xf32> to vector<4x32xf32>
    %250 = vector.broadcast %27 : vector<1x32xf32> to vector<4x32xf32>
    %251 = arith.addf %249, %250 : vector<4x32xf32>
    %252 = arith.mulf %239, %251 : vector<4x32xf32>
    %253 = arith.addf %248, %252 : vector<4x32xf32>
    %254 = math.tanh %253 : vector<4x32xf32>
    %cst_70 = arith.constant 1.000000e+00 : f32
    %255 = vector.broadcast %cst_70 : f32 to vector<4x32xf32>
    %256 = arith.subf %255, %247 : vector<4x32xf32>
    %257 = arith.mulf %256, %254 : vector<4x32xf32>
    %258 = arith.mulf %247, %193 : vector<4x32xf32>
    %259 = arith.addf %257, %258 : vector<4x32xf32>
    %260 = vector.extract_strided_slice %21 {offsets = [16, 0], sizes = [4, 96], strides = [1, 1]} : vector<32x96xf32> to vector<4x96xf32>
    %cst_71 = arith.constant dense<0.000000e+00> : vector<4x96xf32>
    %261 = tpu.matmul %223, %25, %cst_71 {dimension_numbers = #tpu.dot_dimension_numbers<[1], [0], [0], [1], [0, 0, 1, 1], [], []>} : vector<4x32xf32>, vector<32x96xf32>, vector<4x96xf32> -> vector<4x96xf32>
    %262 = vector.extract_strided_slice %260 {offsets = [0, 0], sizes = [4, 32], strides = [1, 1]} : vector<4x96xf32> to vector<4x32xf32>
    %263 = vector.extract_strided_slice %261 {offsets = [0, 0], sizes = [4, 32], strides = [1, 1]} : vector<4x96xf32> to vector<4x32xf32>
    %264 = arith.addf %262, %263 : vector<4x32xf32>
    %265 = arith.negf %264 : vector<4x32xf32>
    %266 = math.exp %265 : vector<4x32xf32>
    %cst_72 = arith.constant 1.000000e+00 : f32
    %267 = vector.broadcast %cst_72 : f32 to vector<4x32xf32>
    %268 = arith.addf %267, %266 : vector<4x32xf32>
    %269 = arith.divf %267, %268 : vector<4x32xf32>
    %270 = vector.extract_strided_slice %260 {offsets = [0, 32], sizes = [4, 32], strides = [1, 1]} : vector<4x96xf32> to vector<4x32xf32>
    %271 = vector.extract_strided_slice %261 {offsets = [0, 32], sizes = [4, 32], strides = [1, 1]} : vector<4x96xf32> to vector<4x32xf32>
    %272 = arith.addf %270, %271 : vector<4x32xf32>
    %273 = arith.negf %272 : vector<4x32xf32>
    %274 = math.exp %273 : vector<4x32xf32>
    %cst_73 = arith.constant 1.000000e+00 : f32
    %275 = vector.broadcast %cst_73 : f32 to vector<4x32xf32>
    %276 = arith.addf %275, %274 : vector<4x32xf32>
    %277 = arith.divf %275, %276 : vector<4x32xf32>
    %278 = vector.extract_strided_slice %260 {offsets = [0, 64], sizes = [4, 32], strides = [1, 1]} : vector<4x96xf32> to vector<4x32xf32>
    %279 = vector.extract_strided_slice %261 {offsets = [0, 64], sizes = [4, 32], strides = [1, 1]} : vector<4x96xf32> to vector<4x32xf32>
    %280 = vector.broadcast %29 : vector<1x32xf32> to vector<4x32xf32>
    %281 = arith.addf %279, %280 : vector<4x32xf32>
    %282 = arith.mulf %269, %281 : vector<4x32xf32>
    %283 = arith.addf %278, %282 : vector<4x32xf32>
    %284 = math.tanh %283 : vector<4x32xf32>
    %cst_74 = arith.constant 1.000000e+00 : f32
    %285 = vector.broadcast %cst_74 : f32 to vector<4x32xf32>
    %286 = arith.subf %285, %277 : vector<4x32xf32>
    %287 = arith.mulf %286, %284 : vector<4x32xf32>
    %288 = arith.mulf %277, %223 : vector<4x32xf32>
    %289 = arith.addf %287, %288 : vector<4x32xf32>
    %c0_75 = arith.constant 0 : index
    %c12 = arith.constant 12 : index
    %c0_76 = arith.constant 0 : index
    %290 = vector.load %arg11[%c0_75, %c12, %c0_76] : memref<2x32x32xf32, #tpu.memory_space<vmem>>, vector<1x4x32xf32>
    %291 = vector.shape_cast %290 : vector<1x4x32xf32> to vector<4x32xf32>
    %292 = vector.shape_cast %259 : vector<4x32xf32> to vector<1x4x32xf32>
    tpu.vector_store %arg11[%c0_75, %c12, %c0_76], %292 {strides = array<i32>} : memref<2x32x32xf32, #tpu.memory_space<vmem>>, vector<1x4x32xf32>,
    %c1_77 = arith.constant 1 : index
    %c16 = arith.constant 16 : index
    %c0_78 = arith.constant 0 : index
    %293 = vector.load %arg11[%c1_77, %c16, %c0_78] : memref<2x32x32xf32, #tpu.memory_space<vmem>>, vector<1x4x32xf32>
    %294 = vector.shape_cast %293 : vector<1x4x32xf32> to vector<4x32xf32>
    %295 = vector.shape_cast %289 : vector<4x32xf32> to vector<1x4x32xf32>
    tpu.vector_store %arg11[%c1_77, %c16, %c0_78], %295 {strides = array<i32>} : memref<2x32x32xf32, #tpu.memory_space<vmem>>, vector<1x4x32xf32>,
    %296 = vector.extract_strided_slice %14 {offsets = [16, 0], sizes = [4, 96], strides = [1, 1]} : vector<32x96xf32> to vector<4x96xf32>
    %cst_79 = arith.constant dense<0.000000e+00> : vector<4x96xf32>
    %297 = tpu.matmul %259, %23, %cst_79 {dimension_numbers = #tpu.dot_dimension_numbers<[1], [0], [0], [1], [0, 0, 1, 1], [], []>} : vector<4x32xf32>, vector<32x96xf32>, vector<4x96xf32> -> vector<4x96xf32>
    %298 = vector.extract_strided_slice %296 {offsets = [0, 0], sizes = [4, 32], strides = [1, 1]} : vector<4x96xf32> to vector<4x32xf32>
    %299 = vector.extract_strided_slice %297 {offsets = [0, 0], sizes = [4, 32], strides = [1, 1]} : vector<4x96xf32> to vector<4x32xf32>
    %300 = arith.addf %298, %299 : vector<4x32xf32>
    %301 = arith.negf %300 : vector<4x32xf32>
    %302 = math.exp %301 : vector<4x32xf32>
    %cst_80 = arith.constant 1.000000e+00 : f32
    %303 = vector.broadcast %cst_80 : f32 to vector<4x32xf32>
    %304 = arith.addf %303, %302 : vector<4x32xf32>
    %305 = arith.divf %303, %304 : vector<4x32xf32>
    %306 = vector.extract_strided_slice %296 {offsets = [0, 32], sizes = [4, 32], strides = [1, 1]} : vector<4x96xf32> to vector<4x32xf32>
    %307 = vector.extract_strided_slice %297 {offsets = [0, 32], sizes = [4, 32], strides = [1, 1]} : vector<4x96xf32> to vector<4x32xf32>
    %308 = arith.addf %306, %307 : vector<4x32xf32>
    %309 = arith.negf %308 : vector<4x32xf32>
    %310 = math.exp %309 : vector<4x32xf32>
    %cst_81 = arith.constant 1.000000e+00 : f32
    %311 = vector.broadcast %cst_81 : f32 to vector<4x32xf32>
    %312 = arith.addf %311, %310 : vector<4x32xf32>
    %313 = arith.divf %311, %312 : vector<4x32xf32>
    %314 = vector.extract_strided_slice %296 {offsets = [0, 64], sizes = [4, 32], strides = [1, 1]} : vector<4x96xf32> to vector<4x32xf32>
    %315 = vector.extract_strided_slice %297 {offsets = [0, 64], sizes = [4, 32], strides = [1, 1]} : vector<4x96xf32> to vector<4x32xf32>
    %316 = vector.broadcast %27 : vector<1x32xf32> to vector<4x32xf32>
    %317 = arith.addf %315, %316 : vector<4x32xf32>
    %318 = arith.mulf %305, %317 : vector<4x32xf32>
    %319 = arith.addf %314, %318 : vector<4x32xf32>
    %320 = math.tanh %319 : vector<4x32xf32>
    %cst_82 = arith.constant 1.000000e+00 : f32
    %321 = vector.broadcast %cst_82 : f32 to vector<4x32xf32>
    %322 = arith.subf %321, %313 : vector<4x32xf32>
    %323 = arith.mulf %322, %320 : vector<4x32xf32>
    %324 = arith.mulf %313, %259 : vector<4x32xf32>
    %325 = arith.addf %323, %324 : vector<4x32xf32>
    %326 = vector.extract_strided_slice %21 {offsets = [12, 0], sizes = [4, 96], strides = [1, 1]} : vector<32x96xf32> to vector<4x96xf32>
    %cst_83 = arith.constant dense<0.000000e+00> : vector<4x96xf32>
    %327 = tpu.matmul %289, %25, %cst_83 {dimension_numbers = #tpu.dot_dimension_numbers<[1], [0], [0], [1], [0, 0, 1, 1], [], []>} : vector<4x32xf32>, vector<32x96xf32>, vector<4x96xf32> -> vector<4x96xf32>
    %328 = vector.extract_strided_slice %326 {offsets = [0, 0], sizes = [4, 32], strides = [1, 1]} : vector<4x96xf32> to vector<4x32xf32>
    %329 = vector.extract_strided_slice %327 {offsets = [0, 0], sizes = [4, 32], strides = [1, 1]} : vector<4x96xf32> to vector<4x32xf32>
    %330 = arith.addf %328, %329 : vector<4x32xf32>
    %331 = arith.negf %330 : vector<4x32xf32>
    %332 = math.exp %331 : vector<4x32xf32>
    %cst_84 = arith.constant 1.000000e+00 : f32
    %333 = vector.broadcast %cst_84 : f32 to vector<4x32xf32>
    %334 = arith.addf %333, %332 : vector<4x32xf32>
    %335 = arith.divf %333, %334 : vector<4x32xf32>
    %336 = vector.extract_strided_slice %326 {offsets = [0, 32], sizes = [4, 32], strides = [1, 1]} : vector<4x96xf32> to vector<4x32xf32>
    %337 = vector.extract_strided_slice %327 {offsets = [0, 32], sizes = [4, 32], strides = [1, 1]} : vector<4x96xf32> to vector<4x32xf32>
    %338 = arith.addf %336, %337 : vector<4x32xf32>
    %339 = arith.negf %338 : vector<4x32xf32>
    %340 = math.exp %339 : vector<4x32xf32>
    %cst_85 = arith.constant 1.000000e+00 : f32
    %341 = vector.broadcast %cst_85 : f32 to vector<4x32xf32>
    %342 = arith.addf %341, %340 : vector<4x32xf32>
    %343 = arith.divf %341, %342 : vector<4x32xf32>
    %344 = vector.extract_strided_slice %326 {offsets = [0, 64], sizes = [4, 32], strides = [1, 1]} : vector<4x96xf32> to vector<4x32xf32>
    %345 = vector.extract_strided_slice %327 {offsets = [0, 64], sizes = [4, 32], strides = [1, 1]} : vector<4x96xf32> to vector<4x32xf32>
    %346 = vector.broadcast %29 : vector<1x32xf32> to vector<4x32xf32>
    %347 = arith.addf %345, %346 : vector<4x32xf32>
    %348 = arith.mulf %335, %347 : vector<4x32xf32>
    %349 = arith.addf %344, %348 : vector<4x32xf32>
    %350 = math.tanh %349 : vector<4x32xf32>
    %cst_86 = arith.constant 1.000000e+00 : f32
    %351 = vector.broadcast %cst_86 : f32 to vector<4x32xf32>
    %352 = arith.subf %351, %343 : vector<4x32xf32>
    %353 = arith.mulf %352, %350 : vector<4x32xf32>
    %354 = arith.mulf %343, %289 : vector<4x32xf32>
    %355 = arith.addf %353, %354 : vector<4x32xf32>
    %c0_87 = arith.constant 0 : index
    %c16_88 = arith.constant 16 : index
    %c0_89 = arith.constant 0 : index
    %356 = vector.load %arg11[%c0_87, %c16_88, %c0_89] : memref<2x32x32xf32, #tpu.memory_space<vmem>>, vector<1x4x32xf32>
    %357 = vector.shape_cast %356 : vector<1x4x32xf32> to vector<4x32xf32>
    %358 = vector.shape_cast %325 : vector<4x32xf32> to vector<1x4x32xf32>
    tpu.vector_store %arg11[%c0_87, %c16_88, %c0_89], %358 {strides = array<i32>} : memref<2x32x32xf32, #tpu.memory_space<vmem>>, vector<1x4x32xf32>,
    %c1_90 = arith.constant 1 : index
    %c12_91 = arith.constant 12 : index
    %c0_92 = arith.constant 0 : index
    %359 = vector.load %arg11[%c1_90, %c12_91, %c0_92] : memref<2x32x32xf32, #tpu.memory_space<vmem>>, vector<1x4x32xf32>
    %360 = vector.shape_cast %359 : vector<1x4x32xf32> to vector<4x32xf32>
    %361 = vector.shape_cast %355 : vector<4x32xf32> to vector<1x4x32xf32>
    tpu.vector_store %arg11[%c1_90, %c12_91, %c0_92], %361 {strides = array<i32>} : memref<2x32x32xf32, #tpu.memory_space<vmem>>, vector<1x4x32xf32>,
    %362 = vector.extract_strided_slice %14 {offsets = [20, 0], sizes = [4, 96], strides = [1, 1]} : vector<32x96xf32> to vector<4x96xf32>
    %cst_93 = arith.constant dense<0.000000e+00> : vector<4x96xf32>
    %363 = tpu.matmul %325, %23, %cst_93 {dimension_numbers = #tpu.dot_dimension_numbers<[1], [0], [0], [1], [0, 0, 1, 1], [], []>} : vector<4x32xf32>, vector<32x96xf32>, vector<4x96xf32> -> vector<4x96xf32>
    %364 = vector.extract_strided_slice %362 {offsets = [0, 0], sizes = [4, 32], strides = [1, 1]} : vector<4x96xf32> to vector<4x32xf32>
    %365 = vector.extract_strided_slice %363 {offsets = [0, 0], sizes = [4, 32], strides = [1, 1]} : vector<4x96xf32> to vector<4x32xf32>
    %366 = arith.addf %364, %365 : vector<4x32xf32>
    %367 = arith.negf %366 : vector<4x32xf32>
    %368 = math.exp %367 : vector<4x32xf32>
    %cst_94 = arith.constant 1.000000e+00 : f32
    %369 = vector.broadcast %cst_94 : f32 to vector<4x32xf32>
    %370 = arith.addf %369, %368 : vector<4x32xf32>
    %371 = arith.divf %369, %370 : vector<4x32xf32>
    %372 = vector.extract_strided_slice %362 {offsets = [0, 32], sizes = [4, 32], strides = [1, 1]} : vector<4x96xf32> to vector<4x32xf32>
    %373 = vector.extract_strided_slice %363 {offsets = [0, 32], sizes = [4, 32], strides = [1, 1]} : vector<4x96xf32> to vector<4x32xf32>
    %374 = arith.addf %372, %373 : vector<4x32xf32>
    %375 = arith.negf %374 : vector<4x32xf32>
    %376 = math.exp %375 : vector<4x32xf32>
    %cst_95 = arith.constant 1.000000e+00 : f32
    %377 = vector.broadcast %cst_95 : f32 to vector<4x32xf32>
    %378 = arith.addf %377, %376 : vector<4x32xf32>
    %379 = arith.divf %377, %378 : vector<4x32xf32>
    %380 = vector.extract_strided_slice %362 {offsets = [0, 64], sizes = [4, 32], strides = [1, 1]} : vector<4x96xf32> to vector<4x32xf32>
    %381 = vector.extract_strided_slice %363 {offsets = [0, 64], sizes = [4, 32], strides = [1, 1]} : vector<4x96xf32> to vector<4x32xf32>
    %382 = vector.broadcast %27 : vector<1x32xf32> to vector<4x32xf32>
    %383 = arith.addf %381, %382 : vector<4x32xf32>
    %384 = arith.mulf %371, %383 : vector<4x32xf32>
    %385 = arith.addf %380, %384 : vector<4x32xf32>
    %386 = math.tanh %385 : vector<4x32xf32>
    %cst_96 = arith.constant 1.000000e+00 : f32
    %387 = vector.broadcast %cst_96 : f32 to vector<4x32xf32>
    %388 = arith.subf %387, %379 : vector<4x32xf32>
    %389 = arith.mulf %388, %386 : vector<4x32xf32>
    %390 = arith.mulf %379, %325 : vector<4x32xf32>
    %391 = arith.addf %389, %390 : vector<4x32xf32>
    %392 = vector.extract_strided_slice %21 {offsets = [8, 0], sizes = [4, 96], strides = [1, 1]} : vector<32x96xf32> to vector<4x96xf32>
    %cst_97 = arith.constant dense<0.000000e+00> : vector<4x96xf32>
    %393 = tpu.matmul %355, %25, %cst_97 {dimension_numbers = #tpu.dot_dimension_numbers<[1], [0], [0], [1], [0, 0, 1, 1], [], []>} : vector<4x32xf32>, vector<32x96xf32>, vector<4x96xf32> -> vector<4x96xf32>
    %394 = vector.extract_strided_slice %392 {offsets = [0, 0], sizes = [4, 32], strides = [1, 1]} : vector<4x96xf32> to vector<4x32xf32>
    %395 = vector.extract_strided_slice %393 {offsets = [0, 0], sizes = [4, 32], strides = [1, 1]} : vector<4x96xf32> to vector<4x32xf32>
    %396 = arith.addf %394, %395 : vector<4x32xf32>
    %397 = arith.negf %396 : vector<4x32xf32>
    %398 = math.exp %397 : vector<4x32xf32>
    %cst_98 = arith.constant 1.000000e+00 : f32
    %399 = vector.broadcast %cst_98 : f32 to vector<4x32xf32>
    %400 = arith.addf %399, %398 : vector<4x32xf32>
    %401 = arith.divf %399, %400 : vector<4x32xf32>
    %402 = vector.extract_strided_slice %392 {offsets = [0, 32], sizes = [4, 32], strides = [1, 1]} : vector<4x96xf32> to vector<4x32xf32>
    %403 = vector.extract_strided_slice %393 {offsets = [0, 32], sizes = [4, 32], strides = [1, 1]} : vector<4x96xf32> to vector<4x32xf32>
    %404 = arith.addf %402, %403 : vector<4x32xf32>
    %405 = arith.negf %404 : vector<4x32xf32>
    %406 = math.exp %405 : vector<4x32xf32>
    %cst_99 = arith.constant 1.000000e+00 : f32
    %407 = vector.broadcast %cst_99 : f32 to vector<4x32xf32>
    %408 = arith.addf %407, %406 : vector<4x32xf32>
    %409 = arith.divf %407, %408 : vector<4x32xf32>
    %410 = vector.extract_strided_slice %392 {offsets = [0, 64], sizes = [4, 32], strides = [1, 1]} : vector<4x96xf32> to vector<4x32xf32>
    %411 = vector.extract_strided_slice %393 {offsets = [0, 64], sizes = [4, 32], strides = [1, 1]} : vector<4x96xf32> to vector<4x32xf32>
    %412 = vector.broadcast %29 : vector<1x32xf32> to vector<4x32xf32>
    %413 = arith.addf %411, %412 : vector<4x32xf32>
    %414 = arith.mulf %401, %413 : vector<4x32xf32>
    %415 = arith.addf %410, %414 : vector<4x32xf32>
    %416 = math.tanh %415 : vector<4x32xf32>
    %cst_100 = arith.constant 1.000000e+00 : f32
    %417 = vector.broadcast %cst_100 : f32 to vector<4x32xf32>
    %418 = arith.subf %417, %409 : vector<4x32xf32>
    %419 = arith.mulf %418, %416 : vector<4x32xf32>
    %420 = arith.mulf %409, %355 : vector<4x32xf32>
    %421 = arith.addf %419, %420 : vector<4x32xf32>
    %c0_101 = arith.constant 0 : index
    %c20_102 = arith.constant 20 : index
    %c0_103 = arith.constant 0 : index
    %422 = vector.load %arg11[%c0_101, %c20_102, %c0_103] : memref<2x32x32xf32, #tpu.memory_space<vmem>>, vector<1x4x32xf32>
    %423 = vector.shape_cast %422 : vector<1x4x32xf32> to vector<4x32xf32>
    %424 = vector.shape_cast %391 : vector<4x32xf32> to vector<1x4x32xf32>
    tpu.vector_store %arg11[%c0_101, %c20_102, %c0_103], %424 {strides = array<i32>} : memref<2x32x32xf32, #tpu.memory_space<vmem>>, vector<1x4x32xf32>,
    %c1_104 = arith.constant 1 : index
    %c8_105 = arith.constant 8 : index
    %c0_106 = arith.constant 0 : index
    %425 = vector.load %arg11[%c1_104, %c8_105, %c0_106] : memref<2x32x32xf32, #tpu.memory_space<vmem>>, vector<1x4x32xf32>
    %426 = vector.shape_cast %425 : vector<1x4x32xf32> to vector<4x32xf32>
    %427 = vector.shape_cast %421 : vector<4x32xf32> to vector<1x4x32xf32>
    tpu.vector_store %arg11[%c1_104, %c8_105, %c0_106], %427 {strides = array<i32>} : memref<2x32x32xf32, #tpu.memory_space<vmem>>, vector<1x4x32xf32>,
    %428 = vector.extract_strided_slice %14 {offsets = [24, 0], sizes = [4, 96], strides = [1, 1]} : vector<32x96xf32> to vector<4x96xf32>
    %cst_107 = arith.constant dense<0.000000e+00> : vector<4x96xf32>
    %429 = tpu.matmul %391, %23, %cst_107 {dimension_numbers = #tpu.dot_dimension_numbers<[1], [0], [0], [1], [0, 0, 1, 1], [], []>} : vector<4x32xf32>, vector<32x96xf32>, vector<4x96xf32> -> vector<4x96xf32>
    %430 = vector.extract_strided_slice %428 {offsets = [0, 0], sizes = [4, 32], strides = [1, 1]} : vector<4x96xf32> to vector<4x32xf32>
    %431 = vector.extract_strided_slice %429 {offsets = [0, 0], sizes = [4, 32], strides = [1, 1]} : vector<4x96xf32> to vector<4x32xf32>
    %432 = arith.addf %430, %431 : vector<4x32xf32>
    %433 = arith.negf %432 : vector<4x32xf32>
    %434 = math.exp %433 : vector<4x32xf32>
    %cst_108 = arith.constant 1.000000e+00 : f32
    %435 = vector.broadcast %cst_108 : f32 to vector<4x32xf32>
    %436 = arith.addf %435, %434 : vector<4x32xf32>
    %437 = arith.divf %435, %436 : vector<4x32xf32>
    %438 = vector.extract_strided_slice %428 {offsets = [0, 32], sizes = [4, 32], strides = [1, 1]} : vector<4x96xf32> to vector<4x32xf32>
    %439 = vector.extract_strided_slice %429 {offsets = [0, 32], sizes = [4, 32], strides = [1, 1]} : vector<4x96xf32> to vector<4x32xf32>
    %440 = arith.addf %438, %439 : vector<4x32xf32>
    %441 = arith.negf %440 : vector<4x32xf32>
    %442 = math.exp %441 : vector<4x32xf32>
    %cst_109 = arith.constant 1.000000e+00 : f32
    %443 = vector.broadcast %cst_109 : f32 to vector<4x32xf32>
    %444 = arith.addf %443, %442 : vector<4x32xf32>
    %445 = arith.divf %443, %444 : vector<4x32xf32>
    %446 = vector.extract_strided_slice %428 {offsets = [0, 64], sizes = [4, 32], strides = [1, 1]} : vector<4x96xf32> to vector<4x32xf32>
    %447 = vector.extract_strided_slice %429 {offsets = [0, 64], sizes = [4, 32], strides = [1, 1]} : vector<4x96xf32> to vector<4x32xf32>
    %448 = vector.broadcast %27 : vector<1x32xf32> to vector<4x32xf32>
    %449 = arith.addf %447, %448 : vector<4x32xf32>
    %450 = arith.mulf %437, %449 : vector<4x32xf32>
    %451 = arith.addf %446, %450 : vector<4x32xf32>
    %452 = math.tanh %451 : vector<4x32xf32>
    %cst_110 = arith.constant 1.000000e+00 : f32
    %453 = vector.broadcast %cst_110 : f32 to vector<4x32xf32>
    %454 = arith.subf %453, %445 : vector<4x32xf32>
    %455 = arith.mulf %454, %452 : vector<4x32xf32>
    %456 = arith.mulf %445, %391 : vector<4x32xf32>
    %457 = arith.addf %455, %456 : vector<4x32xf32>
    %458 = vector.extract_strided_slice %21 {offsets = [4, 0], sizes = [4, 96], strides = [1, 1]} : vector<32x96xf32> to vector<4x96xf32>
    %cst_111 = arith.constant dense<0.000000e+00> : vector<4x96xf32>
    %459 = tpu.matmul %421, %25, %cst_111 {dimension_numbers = #tpu.dot_dimension_numbers<[1], [0], [0], [1], [0, 0, 1, 1], [], []>} : vector<4x32xf32>, vector<32x96xf32>, vector<4x96xf32> -> vector<4x96xf32>
    %460 = vector.extract_strided_slice %458 {offsets = [0, 0], sizes = [4, 32], strides = [1, 1]} : vector<4x96xf32> to vector<4x32xf32>
    %461 = vector.extract_strided_slice %459 {offsets = [0, 0], sizes = [4, 32], strides = [1, 1]} : vector<4x96xf32> to vector<4x32xf32>
    %462 = arith.addf %460, %461 : vector<4x32xf32>
    %463 = arith.negf %462 : vector<4x32xf32>
    %464 = math.exp %463 : vector<4x32xf32>
    %cst_112 = arith.constant 1.000000e+00 : f32
    %465 = vector.broadcast %cst_112 : f32 to vector<4x32xf32>
    %466 = arith.addf %465, %464 : vector<4x32xf32>
    %467 = arith.divf %465, %466 : vector<4x32xf32>
    %468 = vector.extract_strided_slice %458 {offsets = [0, 32], sizes = [4, 32], strides = [1, 1]} : vector<4x96xf32> to vector<4x32xf32>
    %469 = vector.extract_strided_slice %459 {offsets = [0, 32], sizes = [4, 32], strides = [1, 1]} : vector<4x96xf32> to vector<4x32xf32>
    %470 = arith.addf %468, %469 : vector<4x32xf32>
    %471 = arith.negf %470 : vector<4x32xf32>
    %472 = math.exp %471 : vector<4x32xf32>
    %cst_113 = arith.constant 1.000000e+00 : f32
    %473 = vector.broadcast %cst_113 : f32 to vector<4x32xf32>
    %474 = arith.addf %473, %472 : vector<4x32xf32>
    %475 = arith.divf %473, %474 : vector<4x32xf32>
    %476 = vector.extract_strided_slice %458 {offsets = [0, 64], sizes = [4, 32], strides = [1, 1]} : vector<4x96xf32> to vector<4x32xf32>
    %477 = vector.extract_strided_slice %459 {offsets = [0, 64], sizes = [4, 32], strides = [1, 1]} : vector<4x96xf32> to vector<4x32xf32>
    %478 = vector.broadcast %29 : vector<1x32xf32> to vector<4x32xf32>
    %479 = arith.addf %477, %478 : vector<4x32xf32>
    %480 = arith.mulf %467, %479 : vector<4x32xf32>
    %481 = arith.addf %476, %480 : vector<4x32xf32>
    %482 = math.tanh %481 : vector<4x32xf32>
    %cst_114 = arith.constant 1.000000e+00 : f32
    %483 = vector.broadcast %cst_114 : f32 to vector<4x32xf32>
    %484 = arith.subf %483, %475 : vector<4x32xf32>
    %485 = arith.mulf %484, %482 : vector<4x32xf32>
    %486 = arith.mulf %475, %421 : vector<4x32xf32>
    %487 = arith.addf %485, %486 : vector<4x32xf32>
    %c0_115 = arith.constant 0 : index
    %c24_116 = arith.constant 24 : index
    %c0_117 = arith.constant 0 : index
    %488 = vector.load %arg11[%c0_115, %c24_116, %c0_117] : memref<2x32x32xf32, #tpu.memory_space<vmem>>, vector<1x4x32xf32>
    %489 = vector.shape_cast %488 : vector<1x4x32xf32> to vector<4x32xf32>
    %490 = vector.shape_cast %457 : vector<4x32xf32> to vector<1x4x32xf32>
    tpu.vector_store %arg11[%c0_115, %c24_116, %c0_117], %490 {strides = array<i32>} : memref<2x32x32xf32, #tpu.memory_space<vmem>>, vector<1x4x32xf32>,
    %c1_118 = arith.constant 1 : index
    %c4_119 = arith.constant 4 : index
    %c0_120 = arith.constant 0 : index
    %491 = vector.load %arg11[%c1_118, %c4_119, %c0_120] : memref<2x32x32xf32, #tpu.memory_space<vmem>>, vector<1x4x32xf32>
    %492 = vector.shape_cast %491 : vector<1x4x32xf32> to vector<4x32xf32>
    %493 = vector.shape_cast %487 : vector<4x32xf32> to vector<1x4x32xf32>
    tpu.vector_store %arg11[%c1_118, %c4_119, %c0_120], %493 {strides = array<i32>} : memref<2x32x32xf32, #tpu.memory_space<vmem>>, vector<1x4x32xf32>,
    %494 = vector.extract_strided_slice %14 {offsets = [28, 0], sizes = [4, 96], strides = [1, 1]} : vector<32x96xf32> to vector<4x96xf32>
    %cst_121 = arith.constant dense<0.000000e+00> : vector<4x96xf32>
    %495 = tpu.matmul %457, %23, %cst_121 {dimension_numbers = #tpu.dot_dimension_numbers<[1], [0], [0], [1], [0, 0, 1, 1], [], []>} : vector<4x32xf32>, vector<32x96xf32>, vector<4x96xf32> -> vector<4x96xf32>
    %496 = vector.extract_strided_slice %494 {offsets = [0, 0], sizes = [4, 32], strides = [1, 1]} : vector<4x96xf32> to vector<4x32xf32>
    %497 = vector.extract_strided_slice %495 {offsets = [0, 0], sizes = [4, 32], strides = [1, 1]} : vector<4x96xf32> to vector<4x32xf32>
    %498 = arith.addf %496, %497 : vector<4x32xf32>
    %499 = arith.negf %498 : vector<4x32xf32>
    %500 = math.exp %499 : vector<4x32xf32>
    %cst_122 = arith.constant 1.000000e+00 : f32
    %501 = vector.broadcast %cst_122 : f32 to vector<4x32xf32>
    %502 = arith.addf %501, %500 : vector<4x32xf32>
    %503 = arith.divf %501, %502 : vector<4x32xf32>
    %504 = vector.extract_strided_slice %494 {offsets = [0, 32], sizes = [4, 32], strides = [1, 1]} : vector<4x96xf32> to vector<4x32xf32>
    %505 = vector.extract_strided_slice %495 {offsets = [0, 32], sizes = [4, 32], strides = [1, 1]} : vector<4x96xf32> to vector<4x32xf32>
    %506 = arith.addf %504, %505 : vector<4x32xf32>
    %507 = arith.negf %506 : vector<4x32xf32>
    %508 = math.exp %507 : vector<4x32xf32>
    %cst_123 = arith.constant 1.000000e+00 : f32
    %509 = vector.broadcast %cst_123 : f32 to vector<4x32xf32>
    %510 = arith.addf %509, %508 : vector<4x32xf32>
    %511 = arith.divf %509, %510 : vector<4x32xf32>
    %512 = vector.extract_strided_slice %494 {offsets = [0, 64], sizes = [4, 32], strides = [1, 1]} : vector<4x96xf32> to vector<4x32xf32>
    %513 = vector.extract_strided_slice %495 {offsets = [0, 64], sizes = [4, 32], strides = [1, 1]} : vector<4x96xf32> to vector<4x32xf32>
    %514 = vector.broadcast %27 : vector<1x32xf32> to vector<4x32xf32>
    %515 = arith.addf %513, %514 : vector<4x32xf32>
    %516 = arith.mulf %503, %515 : vector<4x32xf32>
    %517 = arith.addf %512, %516 : vector<4x32xf32>
    %518 = math.tanh %517 : vector<4x32xf32>
    %cst_124 = arith.constant 1.000000e+00 : f32
    %519 = vector.broadcast %cst_124 : f32 to vector<4x32xf32>
    %520 = arith.subf %519, %511 : vector<4x32xf32>
    %521 = arith.mulf %520, %518 : vector<4x32xf32>
    %522 = arith.mulf %511, %457 : vector<4x32xf32>
    %523 = arith.addf %521, %522 : vector<4x32xf32>
    %524 = vector.extract_strided_slice %21 {offsets = [0, 0], sizes = [4, 96], strides = [1, 1]} : vector<32x96xf32> to vector<4x96xf32>
    %cst_125 = arith.constant dense<0.000000e+00> : vector<4x96xf32>
    %525 = tpu.matmul %487, %25, %cst_125 {dimension_numbers = #tpu.dot_dimension_numbers<[1], [0], [0], [1], [0, 0, 1, 1], [], []>} : vector<4x32xf32>, vector<32x96xf32>, vector<4x96xf32> -> vector<4x96xf32>
    %526 = vector.extract_strided_slice %524 {offsets = [0, 0], sizes = [4, 32], strides = [1, 1]} : vector<4x96xf32> to vector<4x32xf32>
    %527 = vector.extract_strided_slice %525 {offsets = [0, 0], sizes = [4, 32], strides = [1, 1]} : vector<4x96xf32> to vector<4x32xf32>
    %528 = arith.addf %526, %527 : vector<4x32xf32>
    %529 = arith.negf %528 : vector<4x32xf32>
    %530 = math.exp %529 : vector<4x32xf32>
    %cst_126 = arith.constant 1.000000e+00 : f32
    %531 = vector.broadcast %cst_126 : f32 to vector<4x32xf32>
    %532 = arith.addf %531, %530 : vector<4x32xf32>
    %533 = arith.divf %531, %532 : vector<4x32xf32>
    %534 = vector.extract_strided_slice %524 {offsets = [0, 32], sizes = [4, 32], strides = [1, 1]} : vector<4x96xf32> to vector<4x32xf32>
    %535 = vector.extract_strided_slice %525 {offsets = [0, 32], sizes = [4, 32], strides = [1, 1]} : vector<4x96xf32> to vector<4x32xf32>
    %536 = arith.addf %534, %535 : vector<4x32xf32>
    %537 = arith.negf %536 : vector<4x32xf32>
    %538 = math.exp %537 : vector<4x32xf32>
    %cst_127 = arith.constant 1.000000e+00 : f32
    %539 = vector.broadcast %cst_127 : f32 to vector<4x32xf32>
    %540 = arith.addf %539, %538 : vector<4x32xf32>
    %541 = arith.divf %539, %540 : vector<4x32xf32>
    %542 = vector.extract_strided_slice %524 {offsets = [0, 64], sizes = [4, 32], strides = [1, 1]} : vector<4x96xf32> to vector<4x32xf32>
    %543 = vector.extract_strided_slice %525 {offsets = [0, 64], sizes = [4, 32], strides = [1, 1]} : vector<4x96xf32> to vector<4x32xf32>
    %544 = vector.broadcast %29 : vector<1x32xf32> to vector<4x32xf32>
    %545 = arith.addf %543, %544 : vector<4x32xf32>
    %546 = arith.mulf %533, %545 : vector<4x32xf32>
    %547 = arith.addf %542, %546 : vector<4x32xf32>
    %548 = math.tanh %547 : vector<4x32xf32>
    %cst_128 = arith.constant 1.000000e+00 : f32
    %549 = vector.broadcast %cst_128 : f32 to vector<4x32xf32>
    %550 = arith.subf %549, %541 : vector<4x32xf32>
    %551 = arith.mulf %550, %548 : vector<4x32xf32>
    %552 = arith.mulf %541, %487 : vector<4x32xf32>
    %553 = arith.addf %551, %552 : vector<4x32xf32>
    %c0_129 = arith.constant 0 : index
    %c28_130 = arith.constant 28 : index
    %c0_131 = arith.constant 0 : index
    %554 = vector.load %arg11[%c0_129, %c28_130, %c0_131] : memref<2x32x32xf32, #tpu.memory_space<vmem>>, vector<1x4x32xf32>
    %555 = vector.shape_cast %554 : vector<1x4x32xf32> to vector<4x32xf32>
    %556 = vector.shape_cast %523 : vector<4x32xf32> to vector<1x4x32xf32>
    tpu.vector_store %arg11[%c0_129, %c28_130, %c0_131], %556 {strides = array<i32>} : memref<2x32x32xf32, #tpu.memory_space<vmem>>, vector<1x4x32xf32>,
    %c1_132 = arith.constant 1 : index
    %c0_133 = arith.constant 0 : index
    %c0_134 = arith.constant 0 : index
    %557 = vector.load %arg11[%c1_132, %c0_133, %c0_134] : memref<2x32x32xf32, #tpu.memory_space<vmem>>, vector<1x4x32xf32>
    %558 = vector.shape_cast %557 : vector<1x4x32xf32> to vector<4x32xf32>
    %559 = vector.shape_cast %553 : vector<4x32xf32> to vector<1x4x32xf32>
    tpu.vector_store %arg11[%c1_132, %c0_133, %c0_134], %559 {strides = array<i32>} : memref<2x32x32xf32, #tpu.memory_space<vmem>>, vector<1x4x32xf32>,
    %c0_135 = arith.constant 0 : index
    %c0_136 = arith.constant 0 : index
    %c0_137 = arith.constant 0 : index
    %560 = vector.load %arg11[%c0_135, %c0_136, %c0_137] : memref<2x32x32xf32, #tpu.memory_space<vmem>>, vector<1x32x32xf32>
    %561 = vector.shape_cast %560 : vector<1x32x32xf32> to vector<32x32xf32>
    %c1_138 = arith.constant 1 : index
    %c0_139 = arith.constant 0 : index
    %c0_140 = arith.constant 0 : index
    %562 = vector.load %arg11[%c1_138, %c0_139, %c0_140] : memref<2x32x32xf32, #tpu.memory_space<vmem>>, vector<1x32x32xf32>
    %563 = vector.shape_cast %562 : vector<1x32x32xf32> to vector<32x32xf32>
    %c0_141 = arith.constant 0 : index
    %c0_142 = arith.constant 0 : index
    %c0_143 = arith.constant 0 : index
    %564 = vector.load %arg6[%c0_141, %c0_142, %c0_143] : memref<2x64x96xf32, #tpu.memory_space<vmem>>, vector<1x64x96xf32>
    %565 = vector.shape_cast %564 : vector<1x64x96xf32> to vector<64x96xf32>
    %566 = vector.extract_strided_slice %565 {offsets = [0, 0], sizes = [32, 96], strides = [1, 1]} : vector<64x96xf32> to vector<32x96xf32>
    %cst_144 = arith.constant dense<0.000000e+00> : vector<32x96xf32>
    %567 = tpu.matmul %561, %566, %cst_144 {dimension_numbers = #tpu.dot_dimension_numbers<[1], [0], [0], [1], [0, 0, 1, 1], [], []>} : vector<32x32xf32>, vector<32x96xf32>, vector<32x96xf32> -> vector<32x96xf32>
    %568 = vector.extract_strided_slice %565 {offsets = [32, 0], sizes = [32, 96], strides = [1, 1]} : vector<64x96xf32> to vector<32x96xf32>
    %cst_145 = arith.constant dense<0.000000e+00> : vector<32x96xf32>
    %569 = tpu.matmul %563, %568, %cst_145 {dimension_numbers = #tpu.dot_dimension_numbers<[1], [0], [0], [1], [0, 0, 1, 1], [], []>} : vector<32x32xf32>, vector<32x96xf32>, vector<32x96xf32> -> vector<32x96xf32>
    %570 = arith.addf %567, %569 : vector<32x96xf32>
    %c0_146 = arith.constant 0 : index
    %c0_147 = arith.constant 0 : index
    %c0_148 = arith.constant 0 : index
    %571 = vector.load %arg7[%c0_146, %c0_147, %c0_148] : memref<2x1x96xf32, #tpu.memory_space<vmem>>, vector<1x1x96xf32>
    %572 = vector.shape_cast %571 : vector<1x1x96xf32> to vector<1x96xf32>
    %573 = vector.broadcast %572 : vector<1x96xf32> to vector<32x96xf32>
    %574 = arith.addf %570, %573 : vector<32x96xf32>
    %c1_149 = arith.constant 1 : index
    %c0_150 = arith.constant 0 : index
    %c0_151 = arith.constant 0 : index
    %575 = vector.load %arg6[%c1_149, %c0_150, %c0_151] : memref<2x64x96xf32, #tpu.memory_space<vmem>>, vector<1x64x96xf32>
    %576 = vector.shape_cast %575 : vector<1x64x96xf32> to vector<64x96xf32>
    %577 = vector.extract_strided_slice %576 {offsets = [0, 0], sizes = [32, 96], strides = [1, 1]} : vector<64x96xf32> to vector<32x96xf32>
    %cst_152 = arith.constant dense<0.000000e+00> : vector<32x96xf32>
    %578 = tpu.matmul %561, %577, %cst_152 {dimension_numbers = #tpu.dot_dimension_numbers<[1], [0], [0], [1], [0, 0, 1, 1], [], []>} : vector<32x32xf32>, vector<32x96xf32>, vector<32x96xf32> -> vector<32x96xf32>
    %579 = vector.extract_strided_slice %576 {offsets = [32, 0], sizes = [32, 96], strides = [1, 1]} : vector<64x96xf32> to vector<32x96xf32>
    %cst_153 = arith.constant dense<0.000000e+00> : vector<32x96xf32>
    %580 = tpu.matmul %563, %579, %cst_153 {dimension_numbers = #tpu.dot_dimension_numbers<[1], [0], [0], [1], [0, 0, 1, 1], [], []>} : vector<32x32xf32>, vector<32x96xf32>, vector<32x96xf32> -> vector<32x96xf32>
    %581 = arith.addf %578, %580 : vector<32x96xf32>
    %c1_154 = arith.constant 1 : index
    %c0_155 = arith.constant 0 : index
    %c0_156 = arith.constant 0 : index
    %582 = vector.load %arg7[%c1_154, %c0_155, %c0_156] : memref<2x1x96xf32, #tpu.memory_space<vmem>>, vector<1x1x96xf32>
    %583 = vector.shape_cast %582 : vector<1x1x96xf32> to vector<1x96xf32>
    %584 = vector.broadcast %583 : vector<1x96xf32> to vector<32x96xf32>
    %585 = arith.addf %581, %584 : vector<32x96xf32>
    %c0_157 = arith.constant 0 : index
    %c0_158 = arith.constant 0 : index
    %c0_159 = arith.constant 0 : index
    %586 = vector.load %arg8[%c0_157, %c0_158, %c0_159] : memref<2x32x96xf32, #tpu.memory_space<vmem>>, vector<1x32x96xf32>
    %587 = vector.shape_cast %586 : vector<1x32x96xf32> to vector<32x96xf32>
    %c1_160 = arith.constant 1 : index
    %c0_161 = arith.constant 0 : index
    %c0_162 = arith.constant 0 : index
    %588 = vector.load %arg8[%c1_160, %c0_161, %c0_162] : memref<2x32x96xf32, #tpu.memory_space<vmem>>, vector<1x32x96xf32>
    %589 = vector.shape_cast %588 : vector<1x32x96xf32> to vector<32x96xf32>
    %c0_163 = arith.constant 0 : index
    %c0_164 = arith.constant 0 : index
    %c0_165 = arith.constant 0 : index
    %590 = vector.load %arg9[%c0_163, %c0_164, %c0_165] : memref<2x1x32xf32, #tpu.memory_space<vmem>>, vector<1x1x32xf32>
    %591 = vector.shape_cast %590 : vector<1x1x32xf32> to vector<1x32xf32>
    %c1_166 = arith.constant 1 : index
    %c0_167 = arith.constant 0 : index
    %c0_168 = arith.constant 0 : index
    %592 = vector.load %arg9[%c1_166, %c0_167, %c0_168] : memref<2x1x32xf32, #tpu.memory_space<vmem>>, vector<1x1x32xf32>
    %593 = vector.shape_cast %592 : vector<1x1x32xf32> to vector<1x32xf32>
    %cst_169 = arith.constant 0.000000e+00 : f32
    %594 = vector.broadcast %cst_169 : f32 to vector<4x32xf32>
    %cst_170 = arith.constant 0.000000e+00 : f32
    %595 = vector.broadcast %cst_170 : f32 to vector<4x32xf32>
    %596 = vector.extract_strided_slice %574 {offsets = [0, 0], sizes = [4, 96], strides = [1, 1]} : vector<32x96xf32> to vector<4x96xf32>
    %cst_171 = arith.constant dense<0.000000e+00> : vector<4x96xf32>
    %597 = tpu.matmul %594, %587, %cst_171 {dimension_numbers = #tpu.dot_dimension_numbers<[1], [0], [0], [1], [0, 0, 1, 1], [], []>} : vector<4x32xf32>, vector<32x96xf32>, vector<4x96xf32> -> vector<4x96xf32>
    %598 = vector.extract_strided_slice %596 {offsets = [0, 0], sizes = [4, 32], strides = [1, 1]} : vector<4x96xf32> to vector<4x32xf32>
    %599 = vector.extract_strided_slice %597 {offsets = [0, 0], sizes = [4, 32], strides = [1, 1]} : vector<4x96xf32> to vector<4x32xf32>
    %600 = arith.addf %598, %599 : vector<4x32xf32>
    %601 = arith.negf %600 : vector<4x32xf32>
    %602 = math.exp %601 : vector<4x32xf32>
    %cst_172 = arith.constant 1.000000e+00 : f32
    %603 = vector.broadcast %cst_172 : f32 to vector<4x32xf32>
    %604 = arith.addf %603, %602 : vector<4x32xf32>
    %605 = arith.divf %603, %604 : vector<4x32xf32>
    %606 = vector.extract_strided_slice %596 {offsets = [0, 32], sizes = [4, 32], strides = [1, 1]} : vector<4x96xf32> to vector<4x32xf32>
    %607 = vector.extract_strided_slice %597 {offsets = [0, 32], sizes = [4, 32], strides = [1, 1]} : vector<4x96xf32> to vector<4x32xf32>
    %608 = arith.addf %606, %607 : vector<4x32xf32>
    %609 = arith.negf %608 : vector<4x32xf32>
    %610 = math.exp %609 : vector<4x32xf32>
    %cst_173 = arith.constant 1.000000e+00 : f32
    %611 = vector.broadcast %cst_173 : f32 to vector<4x32xf32>
    %612 = arith.addf %611, %610 : vector<4x32xf32>
    %613 = arith.divf %611, %612 : vector<4x32xf32>
    %614 = vector.extract_strided_slice %596 {offsets = [0, 64], sizes = [4, 32], strides = [1, 1]} : vector<4x96xf32> to vector<4x32xf32>
    %615 = vector.extract_strided_slice %597 {offsets = [0, 64], sizes = [4, 32], strides = [1, 1]} : vector<4x96xf32> to vector<4x32xf32>
    %616 = vector.broadcast %591 : vector<1x32xf32> to vector<4x32xf32>
    %617 = arith.addf %615, %616 : vector<4x32xf32>
    %618 = arith.mulf %605, %617 : vector<4x32xf32>
    %619 = arith.addf %614, %618 : vector<4x32xf32>
    %620 = math.tanh %619 : vector<4x32xf32>
    %cst_174 = arith.constant 1.000000e+00 : f32
    %621 = vector.broadcast %cst_174 : f32 to vector<4x32xf32>
    %622 = arith.subf %621, %613 : vector<4x32xf32>
    %623 = arith.mulf %622, %620 : vector<4x32xf32>
    %624 = arith.mulf %613, %594 : vector<4x32xf32>
    %625 = arith.addf %623, %624 : vector<4x32xf32>
    %626 = vector.extract_strided_slice %585 {offsets = [28, 0], sizes = [4, 96], strides = [1, 1]} : vector<32x96xf32> to vector<4x96xf32>
    %cst_175 = arith.constant dense<0.000000e+00> : vector<4x96xf32>
    %627 = tpu.matmul %595, %589, %cst_175 {dimension_numbers = #tpu.dot_dimension_numbers<[1], [0], [0], [1], [0, 0, 1, 1], [], []>} : vector<4x32xf32>, vector<32x96xf32>, vector<4x96xf32> -> vector<4x96xf32>
    %628 = vector.extract_strided_slice %626 {offsets = [0, 0], sizes = [4, 32], strides = [1, 1]} : vector<4x96xf32> to vector<4x32xf32>
    %629 = vector.extract_strided_slice %627 {offsets = [0, 0], sizes = [4, 32], strides = [1, 1]} : vector<4x96xf32> to vector<4x32xf32>
    %630 = arith.addf %628, %629 : vector<4x32xf32>
    %631 = arith.negf %630 : vector<4x32xf32>
    %632 = math.exp %631 : vector<4x32xf32>
    %cst_176 = arith.constant 1.000000e+00 : f32
    %633 = vector.broadcast %cst_176 : f32 to vector<4x32xf32>
    %634 = arith.addf %633, %632 : vector<4x32xf32>
    %635 = arith.divf %633, %634 : vector<4x32xf32>
    %636 = vector.extract_strided_slice %626 {offsets = [0, 32], sizes = [4, 32], strides = [1, 1]} : vector<4x96xf32> to vector<4x32xf32>
    %637 = vector.extract_strided_slice %627 {offsets = [0, 32], sizes = [4, 32], strides = [1, 1]} : vector<4x96xf32> to vector<4x32xf32>
    %638 = arith.addf %636, %637 : vector<4x32xf32>
    %639 = arith.negf %638 : vector<4x32xf32>
    %640 = math.exp %639 : vector<4x32xf32>
    %cst_177 = arith.constant 1.000000e+00 : f32
    %641 = vector.broadcast %cst_177 : f32 to vector<4x32xf32>
    %642 = arith.addf %641, %640 : vector<4x32xf32>
    %643 = arith.divf %641, %642 : vector<4x32xf32>
    %644 = vector.extract_strided_slice %626 {offsets = [0, 64], sizes = [4, 32], strides = [1, 1]} : vector<4x96xf32> to vector<4x32xf32>
    %645 = vector.extract_strided_slice %627 {offsets = [0, 64], sizes = [4, 32], strides = [1, 1]} : vector<4x96xf32> to vector<4x32xf32>
    %646 = vector.broadcast %593 : vector<1x32xf32> to vector<4x32xf32>
    %647 = arith.addf %645, %646 : vector<4x32xf32>
    %648 = arith.mulf %635, %647 : vector<4x32xf32>
    %649 = arith.addf %644, %648 : vector<4x32xf32>
    %650 = math.tanh %649 : vector<4x32xf32>
    %cst_178 = arith.constant 1.000000e+00 : f32
    %651 = vector.broadcast %cst_178 : f32 to vector<4x32xf32>
    %652 = arith.subf %651, %643 : vector<4x32xf32>
    %653 = arith.mulf %652, %650 : vector<4x32xf32>
    %654 = arith.mulf %643, %595 : vector<4x32xf32>
    %655 = arith.addf %653, %654 : vector<4x32xf32>
    %656 = vector.extract_strided_slice %574 {offsets = [4, 0], sizes = [4, 96], strides = [1, 1]} : vector<32x96xf32> to vector<4x96xf32>
    %cst_179 = arith.constant dense<0.000000e+00> : vector<4x96xf32>
    %657 = tpu.matmul %625, %587, %cst_179 {dimension_numbers = #tpu.dot_dimension_numbers<[1], [0], [0], [1], [0, 0, 1, 1], [], []>} : vector<4x32xf32>, vector<32x96xf32>, vector<4x96xf32> -> vector<4x96xf32>
    %658 = vector.extract_strided_slice %656 {offsets = [0, 0], sizes = [4, 32], strides = [1, 1]} : vector<4x96xf32> to vector<4x32xf32>
    %659 = vector.extract_strided_slice %657 {offsets = [0, 0], sizes = [4, 32], strides = [1, 1]} : vector<4x96xf32> to vector<4x32xf32>
    %660 = arith.addf %658, %659 : vector<4x32xf32>
    %661 = arith.negf %660 : vector<4x32xf32>
    %662 = math.exp %661 : vector<4x32xf32>
    %cst_180 = arith.constant 1.000000e+00 : f32
    %663 = vector.broadcast %cst_180 : f32 to vector<4x32xf32>
    %664 = arith.addf %663, %662 : vector<4x32xf32>
    %665 = arith.divf %663, %664 : vector<4x32xf32>
    %666 = vector.extract_strided_slice %656 {offsets = [0, 32], sizes = [4, 32], strides = [1, 1]} : vector<4x96xf32> to vector<4x32xf32>
    %667 = vector.extract_strided_slice %657 {offsets = [0, 32], sizes = [4, 32], strides = [1, 1]} : vector<4x96xf32> to vector<4x32xf32>
    %668 = arith.addf %666, %667 : vector<4x32xf32>
    %669 = arith.negf %668 : vector<4x32xf32>
    %670 = math.exp %669 : vector<4x32xf32>
    %cst_181 = arith.constant 1.000000e+00 : f32
    %671 = vector.broadcast %cst_181 : f32 to vector<4x32xf32>
    %672 = arith.addf %671, %670 : vector<4x32xf32>
    %673 = arith.divf %671, %672 : vector<4x32xf32>
    %674 = vector.extract_strided_slice %656 {offsets = [0, 64], sizes = [4, 32], strides = [1, 1]} : vector<4x96xf32> to vector<4x32xf32>
    %675 = vector.extract_strided_slice %657 {offsets = [0, 64], sizes = [4, 32], strides = [1, 1]} : vector<4x96xf32> to vector<4x32xf32>
    %676 = vector.broadcast %591 : vector<1x32xf32> to vector<4x32xf32>
    %677 = arith.addf %675, %676 : vector<4x32xf32>
    %678 = arith.mulf %665, %677 : vector<4x32xf32>
    %679 = arith.addf %674, %678 : vector<4x32xf32>
    %680 = math.tanh %679 : vector<4x32xf32>
    %cst_182 = arith.constant 1.000000e+00 : f32
    %681 = vector.broadcast %cst_182 : f32 to vector<4x32xf32>
    %682 = arith.subf %681, %673 : vector<4x32xf32>
    %683 = arith.mulf %682, %680 : vector<4x32xf32>
    %684 = arith.mulf %673, %625 : vector<4x32xf32>
    %685 = arith.addf %683, %684 : vector<4x32xf32>
    %686 = vector.extract_strided_slice %585 {offsets = [24, 0], sizes = [4, 96], strides = [1, 1]} : vector<32x96xf32> to vector<4x96xf32>
    %cst_183 = arith.constant dense<0.000000e+00> : vector<4x96xf32>
    %687 = tpu.matmul %655, %589, %cst_183 {dimension_numbers = #tpu.dot_dimension_numbers<[1], [0], [0], [1], [0, 0, 1, 1], [], []>} : vector<4x32xf32>, vector<32x96xf32>, vector<4x96xf32> -> vector<4x96xf32>
    %688 = vector.extract_strided_slice %686 {offsets = [0, 0], sizes = [4, 32], strides = [1, 1]} : vector<4x96xf32> to vector<4x32xf32>
    %689 = vector.extract_strided_slice %687 {offsets = [0, 0], sizes = [4, 32], strides = [1, 1]} : vector<4x96xf32> to vector<4x32xf32>
    %690 = arith.addf %688, %689 : vector<4x32xf32>
    %691 = arith.negf %690 : vector<4x32xf32>
    %692 = math.exp %691 : vector<4x32xf32>
    %cst_184 = arith.constant 1.000000e+00 : f32
    %693 = vector.broadcast %cst_184 : f32 to vector<4x32xf32>
    %694 = arith.addf %693, %692 : vector<4x32xf32>
    %695 = arith.divf %693, %694 : vector<4x32xf32>
    %696 = vector.extract_strided_slice %686 {offsets = [0, 32], sizes = [4, 32], strides = [1, 1]} : vector<4x96xf32> to vector<4x32xf32>
    %697 = vector.extract_strided_slice %687 {offsets = [0, 32], sizes = [4, 32], strides = [1, 1]} : vector<4x96xf32> to vector<4x32xf32>
    %698 = arith.addf %696, %697 : vector<4x32xf32>
    %699 = arith.negf %698 : vector<4x32xf32>
    %700 = math.exp %699 : vector<4x32xf32>
    %cst_185 = arith.constant 1.000000e+00 : f32
    %701 = vector.broadcast %cst_185 : f32 to vector<4x32xf32>
    %702 = arith.addf %701, %700 : vector<4x32xf32>
    %703 = arith.divf %701, %702 : vector<4x32xf32>
    %704 = vector.extract_strided_slice %686 {offsets = [0, 64], sizes = [4, 32], strides = [1, 1]} : vector<4x96xf32> to vector<4x32xf32>
    %705 = vector.extract_strided_slice %687 {offsets = [0, 64], sizes = [4, 32], strides = [1, 1]} : vector<4x96xf32> to vector<4x32xf32>
    %706 = vector.broadcast %593 : vector<1x32xf32> to vector<4x32xf32>
    %707 = arith.addf %705, %706 : vector<4x32xf32>
    %708 = arith.mulf %695, %707 : vector<4x32xf32>
    %709 = arith.addf %704, %708 : vector<4x32xf32>
    %710 = math.tanh %709 : vector<4x32xf32>
    %cst_186 = arith.constant 1.000000e+00 : f32
    %711 = vector.broadcast %cst_186 : f32 to vector<4x32xf32>
    %712 = arith.subf %711, %703 : vector<4x32xf32>
    %713 = arith.mulf %712, %710 : vector<4x32xf32>
    %714 = arith.mulf %703, %655 : vector<4x32xf32>
    %715 = arith.addf %713, %714 : vector<4x32xf32>
    %716 = vector.extract_strided_slice %574 {offsets = [8, 0], sizes = [4, 96], strides = [1, 1]} : vector<32x96xf32> to vector<4x96xf32>
    %cst_187 = arith.constant dense<0.000000e+00> : vector<4x96xf32>
    %717 = tpu.matmul %685, %587, %cst_187 {dimension_numbers = #tpu.dot_dimension_numbers<[1], [0], [0], [1], [0, 0, 1, 1], [], []>} : vector<4x32xf32>, vector<32x96xf32>, vector<4x96xf32> -> vector<4x96xf32>
    %718 = vector.extract_strided_slice %716 {offsets = [0, 0], sizes = [4, 32], strides = [1, 1]} : vector<4x96xf32> to vector<4x32xf32>
    %719 = vector.extract_strided_slice %717 {offsets = [0, 0], sizes = [4, 32], strides = [1, 1]} : vector<4x96xf32> to vector<4x32xf32>
    %720 = arith.addf %718, %719 : vector<4x32xf32>
    %721 = arith.negf %720 : vector<4x32xf32>
    %722 = math.exp %721 : vector<4x32xf32>
    %cst_188 = arith.constant 1.000000e+00 : f32
    %723 = vector.broadcast %cst_188 : f32 to vector<4x32xf32>
    %724 = arith.addf %723, %722 : vector<4x32xf32>
    %725 = arith.divf %723, %724 : vector<4x32xf32>
    %726 = vector.extract_strided_slice %716 {offsets = [0, 32], sizes = [4, 32], strides = [1, 1]} : vector<4x96xf32> to vector<4x32xf32>
    %727 = vector.extract_strided_slice %717 {offsets = [0, 32], sizes = [4, 32], strides = [1, 1]} : vector<4x96xf32> to vector<4x32xf32>
    %728 = arith.addf %726, %727 : vector<4x32xf32>
    %729 = arith.negf %728 : vector<4x32xf32>
    %730 = math.exp %729 : vector<4x32xf32>
    %cst_189 = arith.constant 1.000000e+00 : f32
    %731 = vector.broadcast %cst_189 : f32 to vector<4x32xf32>
    %732 = arith.addf %731, %730 : vector<4x32xf32>
    %733 = arith.divf %731, %732 : vector<4x32xf32>
    %734 = vector.extract_strided_slice %716 {offsets = [0, 64], sizes = [4, 32], strides = [1, 1]} : vector<4x96xf32> to vector<4x32xf32>
    %735 = vector.extract_strided_slice %717 {offsets = [0, 64], sizes = [4, 32], strides = [1, 1]} : vector<4x96xf32> to vector<4x32xf32>
    %736 = vector.broadcast %591 : vector<1x32xf32> to vector<4x32xf32>
    %737 = arith.addf %735, %736 : vector<4x32xf32>
    %738 = arith.mulf %725, %737 : vector<4x32xf32>
    %739 = arith.addf %734, %738 : vector<4x32xf32>
    %740 = math.tanh %739 : vector<4x32xf32>
    %cst_190 = arith.constant 1.000000e+00 : f32
    %741 = vector.broadcast %cst_190 : f32 to vector<4x32xf32>
    %742 = arith.subf %741, %733 : vector<4x32xf32>
    %743 = arith.mulf %742, %740 : vector<4x32xf32>
    %744 = arith.mulf %733, %685 : vector<4x32xf32>
    %745 = arith.addf %743, %744 : vector<4x32xf32>
    %746 = vector.extract_strided_slice %585 {offsets = [20, 0], sizes = [4, 96], strides = [1, 1]} : vector<32x96xf32> to vector<4x96xf32>
    %cst_191 = arith.constant dense<0.000000e+00> : vector<4x96xf32>
    %747 = tpu.matmul %715, %589, %cst_191 {dimension_numbers = #tpu.dot_dimension_numbers<[1], [0], [0], [1], [0, 0, 1, 1], [], []>} : vector<4x32xf32>, vector<32x96xf32>, vector<4x96xf32> -> vector<4x96xf32>
    %748 = vector.extract_strided_slice %746 {offsets = [0, 0], sizes = [4, 32], strides = [1, 1]} : vector<4x96xf32> to vector<4x32xf32>
    %749 = vector.extract_strided_slice %747 {offsets = [0, 0], sizes = [4, 32], strides = [1, 1]} : vector<4x96xf32> to vector<4x32xf32>
    %750 = arith.addf %748, %749 : vector<4x32xf32>
    %751 = arith.negf %750 : vector<4x32xf32>
    %752 = math.exp %751 : vector<4x32xf32>
    %cst_192 = arith.constant 1.000000e+00 : f32
    %753 = vector.broadcast %cst_192 : f32 to vector<4x32xf32>
    %754 = arith.addf %753, %752 : vector<4x32xf32>
    %755 = arith.divf %753, %754 : vector<4x32xf32>
    %756 = vector.extract_strided_slice %746 {offsets = [0, 32], sizes = [4, 32], strides = [1, 1]} : vector<4x96xf32> to vector<4x32xf32>
    %757 = vector.extract_strided_slice %747 {offsets = [0, 32], sizes = [4, 32], strides = [1, 1]} : vector<4x96xf32> to vector<4x32xf32>
    %758 = arith.addf %756, %757 : vector<4x32xf32>
    %759 = arith.negf %758 : vector<4x32xf32>
    %760 = math.exp %759 : vector<4x32xf32>
    %cst_193 = arith.constant 1.000000e+00 : f32
    %761 = vector.broadcast %cst_193 : f32 to vector<4x32xf32>
    %762 = arith.addf %761, %760 : vector<4x32xf32>
    %763 = arith.divf %761, %762 : vector<4x32xf32>
    %764 = vector.extract_strided_slice %746 {offsets = [0, 64], sizes = [4, 32], strides = [1, 1]} : vector<4x96xf32> to vector<4x32xf32>
    %765 = vector.extract_strided_slice %747 {offsets = [0, 64], sizes = [4, 32], strides = [1, 1]} : vector<4x96xf32> to vector<4x32xf32>
    %766 = vector.broadcast %593 : vector<1x32xf32> to vector<4x32xf32>
    %767 = arith.addf %765, %766 : vector<4x32xf32>
    %768 = arith.mulf %755, %767 : vector<4x32xf32>
    %769 = arith.addf %764, %768 : vector<4x32xf32>
    %770 = math.tanh %769 : vector<4x32xf32>
    %cst_194 = arith.constant 1.000000e+00 : f32
    %771 = vector.broadcast %cst_194 : f32 to vector<4x32xf32>
    %772 = arith.subf %771, %763 : vector<4x32xf32>
    %773 = arith.mulf %772, %770 : vector<4x32xf32>
    %774 = arith.mulf %763, %715 : vector<4x32xf32>
    %775 = arith.addf %773, %774 : vector<4x32xf32>
    %776 = vector.extract_strided_slice %574 {offsets = [12, 0], sizes = [4, 96], strides = [1, 1]} : vector<32x96xf32> to vector<4x96xf32>
    %cst_195 = arith.constant dense<0.000000e+00> : vector<4x96xf32>
    %777 = tpu.matmul %745, %587, %cst_195 {dimension_numbers = #tpu.dot_dimension_numbers<[1], [0], [0], [1], [0, 0, 1, 1], [], []>} : vector<4x32xf32>, vector<32x96xf32>, vector<4x96xf32> -> vector<4x96xf32>
    %778 = vector.extract_strided_slice %776 {offsets = [0, 0], sizes = [4, 32], strides = [1, 1]} : vector<4x96xf32> to vector<4x32xf32>
    %779 = vector.extract_strided_slice %777 {offsets = [0, 0], sizes = [4, 32], strides = [1, 1]} : vector<4x96xf32> to vector<4x32xf32>
    %780 = arith.addf %778, %779 : vector<4x32xf32>
    %781 = arith.negf %780 : vector<4x32xf32>
    %782 = math.exp %781 : vector<4x32xf32>
    %cst_196 = arith.constant 1.000000e+00 : f32
    %783 = vector.broadcast %cst_196 : f32 to vector<4x32xf32>
    %784 = arith.addf %783, %782 : vector<4x32xf32>
    %785 = arith.divf %783, %784 : vector<4x32xf32>
    %786 = vector.extract_strided_slice %776 {offsets = [0, 32], sizes = [4, 32], strides = [1, 1]} : vector<4x96xf32> to vector<4x32xf32>
    %787 = vector.extract_strided_slice %777 {offsets = [0, 32], sizes = [4, 32], strides = [1, 1]} : vector<4x96xf32> to vector<4x32xf32>
    %788 = arith.addf %786, %787 : vector<4x32xf32>
    %789 = arith.negf %788 : vector<4x32xf32>
    %790 = math.exp %789 : vector<4x32xf32>
    %cst_197 = arith.constant 1.000000e+00 : f32
    %791 = vector.broadcast %cst_197 : f32 to vector<4x32xf32>
    %792 = arith.addf %791, %790 : vector<4x32xf32>
    %793 = arith.divf %791, %792 : vector<4x32xf32>
    %794 = vector.extract_strided_slice %776 {offsets = [0, 64], sizes = [4, 32], strides = [1, 1]} : vector<4x96xf32> to vector<4x32xf32>
    %795 = vector.extract_strided_slice %777 {offsets = [0, 64], sizes = [4, 32], strides = [1, 1]} : vector<4x96xf32> to vector<4x32xf32>
    %796 = vector.broadcast %591 : vector<1x32xf32> to vector<4x32xf32>
    %797 = arith.addf %795, %796 : vector<4x32xf32>
    %798 = arith.mulf %785, %797 : vector<4x32xf32>
    %799 = arith.addf %794, %798 : vector<4x32xf32>
    %800 = math.tanh %799 : vector<4x32xf32>
    %cst_198 = arith.constant 1.000000e+00 : f32
    %801 = vector.broadcast %cst_198 : f32 to vector<4x32xf32>
    %802 = arith.subf %801, %793 : vector<4x32xf32>
    %803 = arith.mulf %802, %800 : vector<4x32xf32>
    %804 = arith.mulf %793, %745 : vector<4x32xf32>
    %805 = arith.addf %803, %804 : vector<4x32xf32>
    %806 = vector.extract_strided_slice %585 {offsets = [16, 0], sizes = [4, 96], strides = [1, 1]} : vector<32x96xf32> to vector<4x96xf32>
    %cst_199 = arith.constant dense<0.000000e+00> : vector<4x96xf32>
    %807 = tpu.matmul %775, %589, %cst_199 {dimension_numbers = #tpu.dot_dimension_numbers<[1], [0], [0], [1], [0, 0, 1, 1], [], []>} : vector<4x32xf32>, vector<32x96xf32>, vector<4x96xf32> -> vector<4x96xf32>
    %808 = vector.extract_strided_slice %806 {offsets = [0, 0], sizes = [4, 32], strides = [1, 1]} : vector<4x96xf32> to vector<4x32xf32>
    %809 = vector.extract_strided_slice %807 {offsets = [0, 0], sizes = [4, 32], strides = [1, 1]} : vector<4x96xf32> to vector<4x32xf32>
    %810 = arith.addf %808, %809 : vector<4x32xf32>
    %811 = arith.negf %810 : vector<4x32xf32>
    %812 = math.exp %811 : vector<4x32xf32>
    %cst_200 = arith.constant 1.000000e+00 : f32
    %813 = vector.broadcast %cst_200 : f32 to vector<4x32xf32>
    %814 = arith.addf %813, %812 : vector<4x32xf32>
    %815 = arith.divf %813, %814 : vector<4x32xf32>
    %816 = vector.extract_strided_slice %806 {offsets = [0, 32], sizes = [4, 32], strides = [1, 1]} : vector<4x96xf32> to vector<4x32xf32>
    %817 = vector.extract_strided_slice %807 {offsets = [0, 32], sizes = [4, 32], strides = [1, 1]} : vector<4x96xf32> to vector<4x32xf32>
    %818 = arith.addf %816, %817 : vector<4x32xf32>
    %819 = arith.negf %818 : vector<4x32xf32>
    %820 = math.exp %819 : vector<4x32xf32>
    %cst_201 = arith.constant 1.000000e+00 : f32
    %821 = vector.broadcast %cst_201 : f32 to vector<4x32xf32>
    %822 = arith.addf %821, %820 : vector<4x32xf32>
    %823 = arith.divf %821, %822 : vector<4x32xf32>
    %824 = vector.extract_strided_slice %806 {offsets = [0, 64], sizes = [4, 32], strides = [1, 1]} : vector<4x96xf32> to vector<4x32xf32>
    %825 = vector.extract_strided_slice %807 {offsets = [0, 64], sizes = [4, 32], strides = [1, 1]} : vector<4x96xf32> to vector<4x32xf32>
    %826 = vector.broadcast %593 : vector<1x32xf32> to vector<4x32xf32>
    %827 = arith.addf %825, %826 : vector<4x32xf32>
    %828 = arith.mulf %815, %827 : vector<4x32xf32>
    %829 = arith.addf %824, %828 : vector<4x32xf32>
    %830 = math.tanh %829 : vector<4x32xf32>
    %cst_202 = arith.constant 1.000000e+00 : f32
    %831 = vector.broadcast %cst_202 : f32 to vector<4x32xf32>
    %832 = arith.subf %831, %823 : vector<4x32xf32>
    %833 = arith.mulf %832, %830 : vector<4x32xf32>
    %834 = arith.mulf %823, %775 : vector<4x32xf32>
    %835 = arith.addf %833, %834 : vector<4x32xf32>
    %836 = vector.extract_strided_slice %574 {offsets = [16, 0], sizes = [4, 96], strides = [1, 1]} : vector<32x96xf32> to vector<4x96xf32>
    %cst_203 = arith.constant dense<0.000000e+00> : vector<4x96xf32>
    %837 = tpu.matmul %805, %587, %cst_203 {dimension_numbers = #tpu.dot_dimension_numbers<[1], [0], [0], [1], [0, 0, 1, 1], [], []>} : vector<4x32xf32>, vector<32x96xf32>, vector<4x96xf32> -> vector<4x96xf32>
    %838 = vector.extract_strided_slice %836 {offsets = [0, 0], sizes = [4, 32], strides = [1, 1]} : vector<4x96xf32> to vector<4x32xf32>
    %839 = vector.extract_strided_slice %837 {offsets = [0, 0], sizes = [4, 32], strides = [1, 1]} : vector<4x96xf32> to vector<4x32xf32>
    %840 = arith.addf %838, %839 : vector<4x32xf32>
    %841 = arith.negf %840 : vector<4x32xf32>
    %842 = math.exp %841 : vector<4x32xf32>
    %cst_204 = arith.constant 1.000000e+00 : f32
    %843 = vector.broadcast %cst_204 : f32 to vector<4x32xf32>
    %844 = arith.addf %843, %842 : vector<4x32xf32>
    %845 = arith.divf %843, %844 : vector<4x32xf32>
    %846 = vector.extract_strided_slice %836 {offsets = [0, 32], sizes = [4, 32], strides = [1, 1]} : vector<4x96xf32> to vector<4x32xf32>
    %847 = vector.extract_strided_slice %837 {offsets = [0, 32], sizes = [4, 32], strides = [1, 1]} : vector<4x96xf32> to vector<4x32xf32>
    %848 = arith.addf %846, %847 : vector<4x32xf32>
    %849 = arith.negf %848 : vector<4x32xf32>
    %850 = math.exp %849 : vector<4x32xf32>
    %cst_205 = arith.constant 1.000000e+00 : f32
    %851 = vector.broadcast %cst_205 : f32 to vector<4x32xf32>
    %852 = arith.addf %851, %850 : vector<4x32xf32>
    %853 = arith.divf %851, %852 : vector<4x32xf32>
    %854 = vector.extract_strided_slice %836 {offsets = [0, 64], sizes = [4, 32], strides = [1, 1]} : vector<4x96xf32> to vector<4x32xf32>
    %855 = vector.extract_strided_slice %837 {offsets = [0, 64], sizes = [4, 32], strides = [1, 1]} : vector<4x96xf32> to vector<4x32xf32>
    %856 = vector.broadcast %591 : vector<1x32xf32> to vector<4x32xf32>
    %857 = arith.addf %855, %856 : vector<4x32xf32>
    %858 = arith.mulf %845, %857 : vector<4x32xf32>
    %859 = arith.addf %854, %858 : vector<4x32xf32>
    %860 = math.tanh %859 : vector<4x32xf32>
    %cst_206 = arith.constant 1.000000e+00 : f32
    %861 = vector.broadcast %cst_206 : f32 to vector<4x32xf32>
    %862 = arith.subf %861, %853 : vector<4x32xf32>
    %863 = arith.mulf %862, %860 : vector<4x32xf32>
    %864 = arith.mulf %853, %805 : vector<4x32xf32>
    %865 = arith.addf %863, %864 : vector<4x32xf32>
    %866 = vector.extract_strided_slice %585 {offsets = [12, 0], sizes = [4, 96], strides = [1, 1]} : vector<32x96xf32> to vector<4x96xf32>
    %cst_207 = arith.constant dense<0.000000e+00> : vector<4x96xf32>
    %867 = tpu.matmul %835, %589, %cst_207 {dimension_numbers = #tpu.dot_dimension_numbers<[1], [0], [0], [1], [0, 0, 1, 1], [], []>} : vector<4x32xf32>, vector<32x96xf32>, vector<4x96xf32> -> vector<4x96xf32>
    %868 = vector.extract_strided_slice %866 {offsets = [0, 0], sizes = [4, 32], strides = [1, 1]} : vector<4x96xf32> to vector<4x32xf32>
    %869 = vector.extract_strided_slice %867 {offsets = [0, 0], sizes = [4, 32], strides = [1, 1]} : vector<4x96xf32> to vector<4x32xf32>
    %870 = arith.addf %868, %869 : vector<4x32xf32>
    %871 = arith.negf %870 : vector<4x32xf32>
    %872 = math.exp %871 : vector<4x32xf32>
    %cst_208 = arith.constant 1.000000e+00 : f32
    %873 = vector.broadcast %cst_208 : f32 to vector<4x32xf32>
    %874 = arith.addf %873, %872 : vector<4x32xf32>
    %875 = arith.divf %873, %874 : vector<4x32xf32>
    %876 = vector.extract_strided_slice %866 {offsets = [0, 32], sizes = [4, 32], strides = [1, 1]} : vector<4x96xf32> to vector<4x32xf32>
    %877 = vector.extract_strided_slice %867 {offsets = [0, 32], sizes = [4, 32], strides = [1, 1]} : vector<4x96xf32> to vector<4x32xf32>
    %878 = arith.addf %876, %877 : vector<4x32xf32>
    %879 = arith.negf %878 : vector<4x32xf32>
    %880 = math.exp %879 : vector<4x32xf32>
    %cst_209 = arith.constant 1.000000e+00 : f32
    %881 = vector.broadcast %cst_209 : f32 to vector<4x32xf32>
    %882 = arith.addf %881, %880 : vector<4x32xf32>
    %883 = arith.divf %881, %882 : vector<4x32xf32>
    %884 = vector.extract_strided_slice %866 {offsets = [0, 64], sizes = [4, 32], strides = [1, 1]} : vector<4x96xf32> to vector<4x32xf32>
    %885 = vector.extract_strided_slice %867 {offsets = [0, 64], sizes = [4, 32], strides = [1, 1]} : vector<4x96xf32> to vector<4x32xf32>
    %886 = vector.broadcast %593 : vector<1x32xf32> to vector<4x32xf32>
    %887 = arith.addf %885, %886 : vector<4x32xf32>
    %888 = arith.mulf %875, %887 : vector<4x32xf32>
    %889 = arith.addf %884, %888 : vector<4x32xf32>
    %890 = math.tanh %889 : vector<4x32xf32>
    %cst_210 = arith.constant 1.000000e+00 : f32
    %891 = vector.broadcast %cst_210 : f32 to vector<4x32xf32>
    %892 = arith.subf %891, %883 : vector<4x32xf32>
    %893 = arith.mulf %892, %890 : vector<4x32xf32>
    %894 = arith.mulf %883, %835 : vector<4x32xf32>
    %895 = arith.addf %893, %894 : vector<4x32xf32>
    %896 = vector.extract_strided_slice %574 {offsets = [20, 0], sizes = [4, 96], strides = [1, 1]} : vector<32x96xf32> to vector<4x96xf32>
    %cst_211 = arith.constant dense<0.000000e+00> : vector<4x96xf32>
    %897 = tpu.matmul %865, %587, %cst_211 {dimension_numbers = #tpu.dot_dimension_numbers<[1], [0], [0], [1], [0, 0, 1, 1], [], []>} : vector<4x32xf32>, vector<32x96xf32>, vector<4x96xf32> -> vector<4x96xf32>
    %898 = vector.extract_strided_slice %896 {offsets = [0, 0], sizes = [4, 32], strides = [1, 1]} : vector<4x96xf32> to vector<4x32xf32>
    %899 = vector.extract_strided_slice %897 {offsets = [0, 0], sizes = [4, 32], strides = [1, 1]} : vector<4x96xf32> to vector<4x32xf32>
    %900 = arith.addf %898, %899 : vector<4x32xf32>
    %901 = arith.negf %900 : vector<4x32xf32>
    %902 = math.exp %901 : vector<4x32xf32>
    %cst_212 = arith.constant 1.000000e+00 : f32
    %903 = vector.broadcast %cst_212 : f32 to vector<4x32xf32>
    %904 = arith.addf %903, %902 : vector<4x32xf32>
    %905 = arith.divf %903, %904 : vector<4x32xf32>
    %906 = vector.extract_strided_slice %896 {offsets = [0, 32], sizes = [4, 32], strides = [1, 1]} : vector<4x96xf32> to vector<4x32xf32>
    %907 = vector.extract_strided_slice %897 {offsets = [0, 32], sizes = [4, 32], strides = [1, 1]} : vector<4x96xf32> to vector<4x32xf32>
    %908 = arith.addf %906, %907 : vector<4x32xf32>
    %909 = arith.negf %908 : vector<4x32xf32>
    %910 = math.exp %909 : vector<4x32xf32>
    %cst_213 = arith.constant 1.000000e+00 : f32
    %911 = vector.broadcast %cst_213 : f32 to vector<4x32xf32>
    %912 = arith.addf %911, %910 : vector<4x32xf32>
    %913 = arith.divf %911, %912 : vector<4x32xf32>
    %914 = vector.extract_strided_slice %896 {offsets = [0, 64], sizes = [4, 32], strides = [1, 1]} : vector<4x96xf32> to vector<4x32xf32>
    %915 = vector.extract_strided_slice %897 {offsets = [0, 64], sizes = [4, 32], strides = [1, 1]} : vector<4x96xf32> to vector<4x32xf32>
    %916 = vector.broadcast %591 : vector<1x32xf32> to vector<4x32xf32>
    %917 = arith.addf %915, %916 : vector<4x32xf32>
    %918 = arith.mulf %905, %917 : vector<4x32xf32>
    %919 = arith.addf %914, %918 : vector<4x32xf32>
    %920 = math.tanh %919 : vector<4x32xf32>
    %cst_214 = arith.constant 1.000000e+00 : f32
    %921 = vector.broadcast %cst_214 : f32 to vector<4x32xf32>
    %922 = arith.subf %921, %913 : vector<4x32xf32>
    %923 = arith.mulf %922, %920 : vector<4x32xf32>
    %924 = arith.mulf %913, %865 : vector<4x32xf32>
    %925 = arith.addf %923, %924 : vector<4x32xf32>
    %926 = vector.extract_strided_slice %585 {offsets = [8, 0], sizes = [4, 96], strides = [1, 1]} : vector<32x96xf32> to vector<4x96xf32>
    %cst_215 = arith.constant dense<0.000000e+00> : vector<4x96xf32>
    %927 = tpu.matmul %895, %589, %cst_215 {dimension_numbers = #tpu.dot_dimension_numbers<[1], [0], [0], [1], [0, 0, 1, 1], [], []>} : vector<4x32xf32>, vector<32x96xf32>, vector<4x96xf32> -> vector<4x96xf32>
    %928 = vector.extract_strided_slice %926 {offsets = [0, 0], sizes = [4, 32], strides = [1, 1]} : vector<4x96xf32> to vector<4x32xf32>
    %929 = vector.extract_strided_slice %927 {offsets = [0, 0], sizes = [4, 32], strides = [1, 1]} : vector<4x96xf32> to vector<4x32xf32>
    %930 = arith.addf %928, %929 : vector<4x32xf32>
    %931 = arith.negf %930 : vector<4x32xf32>
    %932 = math.exp %931 : vector<4x32xf32>
    %cst_216 = arith.constant 1.000000e+00 : f32
    %933 = vector.broadcast %cst_216 : f32 to vector<4x32xf32>
    %934 = arith.addf %933, %932 : vector<4x32xf32>
    %935 = arith.divf %933, %934 : vector<4x32xf32>
    %936 = vector.extract_strided_slice %926 {offsets = [0, 32], sizes = [4, 32], strides = [1, 1]} : vector<4x96xf32> to vector<4x32xf32>
    %937 = vector.extract_strided_slice %927 {offsets = [0, 32], sizes = [4, 32], strides = [1, 1]} : vector<4x96xf32> to vector<4x32xf32>
    %938 = arith.addf %936, %937 : vector<4x32xf32>
    %939 = arith.negf %938 : vector<4x32xf32>
    %940 = math.exp %939 : vector<4x32xf32>
    %cst_217 = arith.constant 1.000000e+00 : f32
    %941 = vector.broadcast %cst_217 : f32 to vector<4x32xf32>
    %942 = arith.addf %941, %940 : vector<4x32xf32>
    %943 = arith.divf %941, %942 : vector<4x32xf32>
    %944 = vector.extract_strided_slice %926 {offsets = [0, 64], sizes = [4, 32], strides = [1, 1]} : vector<4x96xf32> to vector<4x32xf32>
    %945 = vector.extract_strided_slice %927 {offsets = [0, 64], sizes = [4, 32], strides = [1, 1]} : vector<4x96xf32> to vector<4x32xf32>
    %946 = vector.broadcast %593 : vector<1x32xf32> to vector<4x32xf32>
    %947 = arith.addf %945, %946 : vector<4x32xf32>
    %948 = arith.mulf %935, %947 : vector<4x32xf32>
    %949 = arith.addf %944, %948 : vector<4x32xf32>
    %950 = math.tanh %949 : vector<4x32xf32>
    %cst_218 = arith.constant 1.000000e+00 : f32
    %951 = vector.broadcast %cst_218 : f32 to vector<4x32xf32>
    %952 = arith.subf %951, %943 : vector<4x32xf32>
    %953 = arith.mulf %952, %950 : vector<4x32xf32>
    %954 = arith.mulf %943, %895 : vector<4x32xf32>
    %955 = arith.addf %953, %954 : vector<4x32xf32>
    %956 = vector.extract_strided_slice %574 {offsets = [24, 0], sizes = [4, 96], strides = [1, 1]} : vector<32x96xf32> to vector<4x96xf32>
    %cst_219 = arith.constant dense<0.000000e+00> : vector<4x96xf32>
    %957 = tpu.matmul %925, %587, %cst_219 {dimension_numbers = #tpu.dot_dimension_numbers<[1], [0], [0], [1], [0, 0, 1, 1], [], []>} : vector<4x32xf32>, vector<32x96xf32>, vector<4x96xf32> -> vector<4x96xf32>
    %958 = vector.extract_strided_slice %956 {offsets = [0, 0], sizes = [4, 32], strides = [1, 1]} : vector<4x96xf32> to vector<4x32xf32>
    %959 = vector.extract_strided_slice %957 {offsets = [0, 0], sizes = [4, 32], strides = [1, 1]} : vector<4x96xf32> to vector<4x32xf32>
    %960 = arith.addf %958, %959 : vector<4x32xf32>
    %961 = arith.negf %960 : vector<4x32xf32>
    %962 = math.exp %961 : vector<4x32xf32>
    %cst_220 = arith.constant 1.000000e+00 : f32
    %963 = vector.broadcast %cst_220 : f32 to vector<4x32xf32>
    %964 = arith.addf %963, %962 : vector<4x32xf32>
    %965 = arith.divf %963, %964 : vector<4x32xf32>
    %966 = vector.extract_strided_slice %956 {offsets = [0, 32], sizes = [4, 32], strides = [1, 1]} : vector<4x96xf32> to vector<4x32xf32>
    %967 = vector.extract_strided_slice %957 {offsets = [0, 32], sizes = [4, 32], strides = [1, 1]} : vector<4x96xf32> to vector<4x32xf32>
    %968 = arith.addf %966, %967 : vector<4x32xf32>
    %969 = arith.negf %968 : vector<4x32xf32>
    %970 = math.exp %969 : vector<4x32xf32>
    %cst_221 = arith.constant 1.000000e+00 : f32
    %971 = vector.broadcast %cst_221 : f32 to vector<4x32xf32>
    %972 = arith.addf %971, %970 : vector<4x32xf32>
    %973 = arith.divf %971, %972 : vector<4x32xf32>
    %974 = vector.extract_strided_slice %956 {offsets = [0, 64], sizes = [4, 32], strides = [1, 1]} : vector<4x96xf32> to vector<4x32xf32>
    %975 = vector.extract_strided_slice %957 {offsets = [0, 64], sizes = [4, 32], strides = [1, 1]} : vector<4x96xf32> to vector<4x32xf32>
    %976 = vector.broadcast %591 : vector<1x32xf32> to vector<4x32xf32>
    %977 = arith.addf %975, %976 : vector<4x32xf32>
    %978 = arith.mulf %965, %977 : vector<4x32xf32>
    %979 = arith.addf %974, %978 : vector<4x32xf32>
    %980 = math.tanh %979 : vector<4x32xf32>
    %cst_222 = arith.constant 1.000000e+00 : f32
    %981 = vector.broadcast %cst_222 : f32 to vector<4x32xf32>
    %982 = arith.subf %981, %973 : vector<4x32xf32>
    %983 = arith.mulf %982, %980 : vector<4x32xf32>
    %984 = arith.mulf %973, %925 : vector<4x32xf32>
    %985 = arith.addf %983, %984 : vector<4x32xf32>
    %986 = vector.extract_strided_slice %585 {offsets = [4, 0], sizes = [4, 96], strides = [1, 1]} : vector<32x96xf32> to vector<4x96xf32>
    %cst_223 = arith.constant dense<0.000000e+00> : vector<4x96xf32>
    %987 = tpu.matmul %955, %589, %cst_223 {dimension_numbers = #tpu.dot_dimension_numbers<[1], [0], [0], [1], [0, 0, 1, 1], [], []>} : vector<4x32xf32>, vector<32x96xf32>, vector<4x96xf32> -> vector<4x96xf32>
    %988 = vector.extract_strided_slice %986 {offsets = [0, 0], sizes = [4, 32], strides = [1, 1]} : vector<4x96xf32> to vector<4x32xf32>
    %989 = vector.extract_strided_slice %987 {offsets = [0, 0], sizes = [4, 32], strides = [1, 1]} : vector<4x96xf32> to vector<4x32xf32>
    %990 = arith.addf %988, %989 : vector<4x32xf32>
    %991 = arith.negf %990 : vector<4x32xf32>
    %992 = math.exp %991 : vector<4x32xf32>
    %cst_224 = arith.constant 1.000000e+00 : f32
    %993 = vector.broadcast %cst_224 : f32 to vector<4x32xf32>
    %994 = arith.addf %993, %992 : vector<4x32xf32>
    %995 = arith.divf %993, %994 : vector<4x32xf32>
    %996 = vector.extract_strided_slice %986 {offsets = [0, 32], sizes = [4, 32], strides = [1, 1]} : vector<4x96xf32> to vector<4x32xf32>
    %997 = vector.extract_strided_slice %987 {offsets = [0, 32], sizes = [4, 32], strides = [1, 1]} : vector<4x96xf32> to vector<4x32xf32>
    %998 = arith.addf %996, %997 : vector<4x32xf32>
    %999 = arith.negf %998 : vector<4x32xf32>
    %1000 = math.exp %999 : vector<4x32xf32>
    %cst_225 = arith.constant 1.000000e+00 : f32
    %1001 = vector.broadcast %cst_225 : f32 to vector<4x32xf32>
    %1002 = arith.addf %1001, %1000 : vector<4x32xf32>
    %1003 = arith.divf %1001, %1002 : vector<4x32xf32>
    %1004 = vector.extract_strided_slice %986 {offsets = [0, 64], sizes = [4, 32], strides = [1, 1]} : vector<4x96xf32> to vector<4x32xf32>
    %1005 = vector.extract_strided_slice %987 {offsets = [0, 64], sizes = [4, 32], strides = [1, 1]} : vector<4x96xf32> to vector<4x32xf32>
    %1006 = vector.broadcast %593 : vector<1x32xf32> to vector<4x32xf32>
    %1007 = arith.addf %1005, %1006 : vector<4x32xf32>
    %1008 = arith.mulf %995, %1007 : vector<4x32xf32>
    %1009 = arith.addf %1004, %1008 : vector<4x32xf32>
    %1010 = math.tanh %1009 : vector<4x32xf32>
    %cst_226 = arith.constant 1.000000e+00 : f32
    %1011 = vector.broadcast %cst_226 : f32 to vector<4x32xf32>
    %1012 = arith.subf %1011, %1003 : vector<4x32xf32>
    %1013 = arith.mulf %1012, %1010 : vector<4x32xf32>
    %1014 = arith.mulf %1003, %955 : vector<4x32xf32>
    %1015 = arith.addf %1013, %1014 : vector<4x32xf32>
    %1016 = vector.extract_strided_slice %574 {offsets = [28, 0], sizes = [4, 96], strides = [1, 1]} : vector<32x96xf32> to vector<4x96xf32>
    %cst_227 = arith.constant dense<0.000000e+00> : vector<4x96xf32>
    %1017 = tpu.matmul %985, %587, %cst_227 {dimension_numbers = #tpu.dot_dimension_numbers<[1], [0], [0], [1], [0, 0, 1, 1], [], []>} : vector<4x32xf32>, vector<32x96xf32>, vector<4x96xf32> -> vector<4x96xf32>
    %1018 = vector.extract_strided_slice %1016 {offsets = [0, 0], sizes = [4, 32], strides = [1, 1]} : vector<4x96xf32> to vector<4x32xf32>
    %1019 = vector.extract_strided_slice %1017 {offsets = [0, 0], sizes = [4, 32], strides = [1, 1]} : vector<4x96xf32> to vector<4x32xf32>
    %1020 = arith.addf %1018, %1019 : vector<4x32xf32>
    %1021 = arith.negf %1020 : vector<4x32xf32>
    %1022 = math.exp %1021 : vector<4x32xf32>
    %cst_228 = arith.constant 1.000000e+00 : f32
    %1023 = vector.broadcast %cst_228 : f32 to vector<4x32xf32>
    %1024 = arith.addf %1023, %1022 : vector<4x32xf32>
    %1025 = arith.divf %1023, %1024 : vector<4x32xf32>
    %1026 = vector.extract_strided_slice %1016 {offsets = [0, 32], sizes = [4, 32], strides = [1, 1]} : vector<4x96xf32> to vector<4x32xf32>
    %1027 = vector.extract_strided_slice %1017 {offsets = [0, 32], sizes = [4, 32], strides = [1, 1]} : vector<4x96xf32> to vector<4x32xf32>
    %1028 = arith.addf %1026, %1027 : vector<4x32xf32>
    %1029 = arith.negf %1028 : vector<4x32xf32>
    %1030 = math.exp %1029 : vector<4x32xf32>
    %cst_229 = arith.constant 1.000000e+00 : f32
    %1031 = vector.broadcast %cst_229 : f32 to vector<4x32xf32>
    %1032 = arith.addf %1031, %1030 : vector<4x32xf32>
    %1033 = arith.divf %1031, %1032 : vector<4x32xf32>
    %1034 = vector.extract_strided_slice %1016 {offsets = [0, 64], sizes = [4, 32], strides = [1, 1]} : vector<4x96xf32> to vector<4x32xf32>
    %1035 = vector.extract_strided_slice %1017 {offsets = [0, 64], sizes = [4, 32], strides = [1, 1]} : vector<4x96xf32> to vector<4x32xf32>
    %1036 = vector.broadcast %591 : vector<1x32xf32> to vector<4x32xf32>
    %1037 = arith.addf %1035, %1036 : vector<4x32xf32>
    %1038 = arith.mulf %1025, %1037 : vector<4x32xf32>
    %1039 = arith.addf %1034, %1038 : vector<4x32xf32>
    %1040 = math.tanh %1039 : vector<4x32xf32>
    %cst_230 = arith.constant 1.000000e+00 : f32
    %1041 = vector.broadcast %cst_230 : f32 to vector<4x32xf32>
    %1042 = arith.subf %1041, %1033 : vector<4x32xf32>
    %1043 = arith.mulf %1042, %1040 : vector<4x32xf32>
    %1044 = arith.mulf %1033, %985 : vector<4x32xf32>
    %1045 = arith.addf %1043, %1044 : vector<4x32xf32>
    %1046 = vector.extract_strided_slice %585 {offsets = [0, 0], sizes = [4, 96], strides = [1, 1]} : vector<32x96xf32> to vector<4x96xf32>
    %cst_231 = arith.constant dense<0.000000e+00> : vector<4x96xf32>
    %1047 = tpu.matmul %1015, %589, %cst_231 {dimension_numbers = #tpu.dot_dimension_numbers<[1], [0], [0], [1], [0, 0, 1, 1], [], []>} : vector<4x32xf32>, vector<32x96xf32>, vector<4x96xf32> -> vector<4x96xf32>
    %1048 = vector.extract_strided_slice %1046 {offsets = [0, 0], sizes = [4, 32], strides = [1, 1]} : vector<4x96xf32> to vector<4x32xf32>
    %1049 = vector.extract_strided_slice %1047 {offsets = [0, 0], sizes = [4, 32], strides = [1, 1]} : vector<4x96xf32> to vector<4x32xf32>
    %1050 = arith.addf %1048, %1049 : vector<4x32xf32>
    %1051 = arith.negf %1050 : vector<4x32xf32>
    %1052 = math.exp %1051 : vector<4x32xf32>
    %cst_232 = arith.constant 1.000000e+00 : f32
    %1053 = vector.broadcast %cst_232 : f32 to vector<4x32xf32>
    %1054 = arith.addf %1053, %1052 : vector<4x32xf32>
    %1055 = arith.divf %1053, %1054 : vector<4x32xf32>
    %1056 = vector.extract_strided_slice %1046 {offsets = [0, 32], sizes = [4, 32], strides = [1, 1]} : vector<4x96xf32> to vector<4x32xf32>
    %1057 = vector.extract_strided_slice %1047 {offsets = [0, 32], sizes = [4, 32], strides = [1, 1]} : vector<4x96xf32> to vector<4x32xf32>
    %1058 = arith.addf %1056, %1057 : vector<4x32xf32>
    %1059 = arith.negf %1058 : vector<4x32xf32>
    %1060 = math.exp %1059 : vector<4x32xf32>
    %cst_233 = arith.constant 1.000000e+00 : f32
    %1061 = vector.broadcast %cst_233 : f32 to vector<4x32xf32>
    %1062 = arith.addf %1061, %1060 : vector<4x32xf32>
    %1063 = arith.divf %1061, %1062 : vector<4x32xf32>
    %1064 = vector.extract_strided_slice %1046 {offsets = [0, 64], sizes = [4, 32], strides = [1, 1]} : vector<4x96xf32> to vector<4x32xf32>
    %1065 = vector.extract_strided_slice %1047 {offsets = [0, 64], sizes = [4, 32], strides = [1, 1]} : vector<4x96xf32> to vector<4x32xf32>
    %1066 = vector.broadcast %593 : vector<1x32xf32> to vector<4x32xf32>
    %1067 = arith.addf %1065, %1066 : vector<4x32xf32>
    %1068 = arith.mulf %1055, %1067 : vector<4x32xf32>
    %1069 = arith.addf %1064, %1068 : vector<4x32xf32>
    %1070 = math.tanh %1069 : vector<4x32xf32>
    %cst_234 = arith.constant 1.000000e+00 : f32
    %1071 = vector.broadcast %cst_234 : f32 to vector<4x32xf32>
    %1072 = arith.subf %1071, %1063 : vector<4x32xf32>
    %1073 = arith.mulf %1072, %1070 : vector<4x32xf32>
    %1074 = arith.mulf %1063, %1015 : vector<4x32xf32>
    %1075 = arith.addf %1073, %1074 : vector<4x32xf32>
    %cst_235 = arith.constant 0.000000e+00 : f32
    %1076 = vector.broadcast %cst_235 : f32 to vector<2x1xf32>
    %1077 = vector.extract_strided_slice %523 {offsets = [0, 0], sizes = [2, 32], strides = [1, 1]} : vector<4x32xf32> to vector<2x32xf32>
    %1078 = vector.extract_strided_slice %523 {offsets = [2, 0], sizes = [2, 32], strides = [1, 1]} : vector<4x32xf32> to vector<2x32xf32>
    %1079 = arith.subf %1077, %1078 : vector<2x32xf32>
    %1080 = math.absf %1079 : vector<2x32xf32>
    %cst_236 = arith.constant dense<0.000000e+00> : vector<2xf32>
    %1081 = vector.multi_reduction <add>, %1080, %cst_236 [1] : vector<2x32xf32> to vector<2xf32>
    %1082 = vector.shape_cast %1081 : vector<2xf32> to vector<2x1xf32>
    %1083 = arith.addf %1076, %1082 : vector<2x1xf32>
    %1084 = vector.extract_strided_slice %553 {offsets = [0, 0], sizes = [2, 32], strides = [1, 1]} : vector<4x32xf32> to vector<2x32xf32>
    %1085 = vector.extract_strided_slice %553 {offsets = [2, 0], sizes = [2, 32], strides = [1, 1]} : vector<4x32xf32> to vector<2x32xf32>
    %1086 = arith.subf %1084, %1085 : vector<2x32xf32>
    %1087 = math.absf %1086 : vector<2x32xf32>
    %cst_237 = arith.constant dense<0.000000e+00> : vector<2xf32>
    %1088 = vector.multi_reduction <add>, %1087, %cst_237 [1] : vector<2x32xf32> to vector<2xf32>
    %1089 = vector.shape_cast %1088 : vector<2xf32> to vector<2x1xf32>
    %1090 = arith.addf %1083, %1089 : vector<2x1xf32>
    %1091 = vector.extract_strided_slice %1045 {offsets = [0, 0], sizes = [2, 32], strides = [1, 1]} : vector<4x32xf32> to vector<2x32xf32>
    %1092 = vector.extract_strided_slice %1045 {offsets = [2, 0], sizes = [2, 32], strides = [1, 1]} : vector<4x32xf32> to vector<2x32xf32>
    %1093 = arith.subf %1091, %1092 : vector<2x32xf32>
    %1094 = math.absf %1093 : vector<2x32xf32>
    %cst_238 = arith.constant dense<0.000000e+00> : vector<2xf32>
    %1095 = vector.multi_reduction <add>, %1094, %cst_238 [1] : vector<2x32xf32> to vector<2xf32>
    %1096 = vector.shape_cast %1095 : vector<2xf32> to vector<2x1xf32>
    %1097 = arith.addf %1090, %1096 : vector<2x1xf32>
    %1098 = vector.extract_strided_slice %1075 {offsets = [0, 0], sizes = [2, 32], strides = [1, 1]} : vector<4x32xf32> to vector<2x32xf32>
    %1099 = vector.extract_strided_slice %1075 {offsets = [2, 0], sizes = [2, 32], strides = [1, 1]} : vector<4x32xf32> to vector<2x32xf32>
    %1100 = arith.subf %1098, %1099 : vector<2x32xf32>
    %1101 = math.absf %1100 : vector<2x32xf32>
    %cst_239 = arith.constant dense<0.000000e+00> : vector<2xf32>
    %1102 = vector.multi_reduction <add>, %1101, %cst_239 [1] : vector<2x32xf32> to vector<2xf32>
    %1103 = vector.shape_cast %1102 : vector<2xf32> to vector<2x1xf32>
    %1104 = arith.addf %1097, %1103 : vector<2x1xf32>
    %cst_240 = arith.constant 0.000000e+00 : f32
    %1105 = vector.broadcast %cst_240 : f32 to vector<2x1xf32>
    %1106 = arith.subf %1105, %1104 : vector<2x1xf32>
    %1107 = math.exp %1106 : vector<2x1xf32>
    %c0_241 = arith.constant 0 : index
    %c0_242 = arith.constant 0 : index
    %1108 = vector.load %arg10[%c0_241, %c0_242] : memref<2x1xf32, #tpu.memory_space<vmem>>, vector<2x1xf32>
    tpu.vector_store %arg10[%c0_241, %c0_242], %1107 {strides = array<i32>} : memref<2x1xf32, #tpu.memory_space<vmem>>, vector<2x1xf32>,
    return
  }
}

</mosaic_0001>

<bundles_post_ra>
// kernel: siam_rnn_forward.1
= control target key start
LH: loop header
LB: loop body
LE: loop exit
PB: predicated region body
PF: predicated region fallthrough
CT: control target
= control target key end

     0   :  { %15 = vsyncpa [#allocation4], 0  ;;  %s6652_s0 = inlined_call_operand.vmem [shape: s32[32,1], index: 0, kind: input, shape index: {}]   ;;  %s6653_s1 = inlined_call_operand.vmem [shape: f32[50,32], index: 1, kind: input, shape index: {}]   ;;  %s6654_s2 = inlined_call_operand.hbm [shape: f32[2,32,96], index: 2, kind: input, shape index: {}]   ;;  %s6655_s3 = inlined_call_operand.vmem [shape: f32[2,1,96], index: 3, kind: input, shape index: {}]   ;;  %s6656_s4 = inlined_call_operand.hbm [shape: f32[2,32,96], index: 4, kind: input, shape index: {}]   ;;  %s6657_s5 = inlined_call_operand.vmem [shape: f32[2,1,32], index: 5, kind: input, shape index: {}]   ;;  %s6658_s6 = inlined_call_operand.vmem [shape: f32[2,64,96], index: 6, kind: input, shape index: {}]   ;;  %s6659_s7 = inlined_call_operand.vmem [shape: f32[2,1,96], index: 7, kind: input, shape index: {}]   ;;  %s6660_s8 = inlined_call_operand.hbm [shape: f32[2,32,96], index: 8, kind: input, shape index: {}]   ;;  %s6661_s9 = inlined_call_operand.vmem [shape: f32[2,1,32], index: 9, kind: input, shape index: {}]   ;;  %s6662_s10 = inlined_call_operand.vmem [shape: f32[2,1], index: 10, kind: output, shape index: {}]  }
   0x1   :  { %16 = vsyncpa [#allocation6], 0  ;;  %s5706_s13 = smov [#allocation5]   ;;  %s5707_s15 = smov [#allocation3]  }
   0x2   :  { %s40_s14 = sshll.u32 %s5706_s13, 4  ;;  %s26_s16 = sshll.u32 %s5707_s15, 4  ;;  %s41_s14 = int_to_ptr.vmem [resolvable:$true] %s40_s14  ;;  %s5772_s16 = int_to_ptr.vmem [resolvable:$true] %s26_s16 }
   0x3   :  { %s5636_s19 = scalar_lea.hbm %s6656_s4, 1024 }
   0x4   :  { %p5637_p0 = scmp.ne.s32.totalorder %s6656_s4, %s5636_s19  ;;  %p5640_p1 = scmp.lt.u32.totalorder %s5636_s19, %s6656_s4 }
   0x6   :  { %p5642_p2 = pnand %p5640_p1, %p5637_p0 }
   0x8   :  { %5645 = shalt.err (!%p5642_p2)
}
   0x9   :  { %s5646_s24 = scalar_lea.vmem %s41_s14, 1024  ;;  %p5651_p4 = scmp.lt.s32.totalorder %s41_s14, %s41_s14 }
   0xa   :  { %p5647_p3 = scmp.ne.s32.totalorder %s41_s14, %s5646_s24  ;;  %p5652_p5 = scmp.lt.s32.totalorder %s5646_s24, %s5646_s24 }
   0xc   :  { %p5653_p6 = por %p5652_p5, %p5651_p4 }
   0xe   :  { %p5654_p7 = pnand %p5653_p6, %p5647_p3 }
  0x10   :  { %5657 = shalt.err (!%p5654_p7)
}
  0x11   :  { %s5708_s25 = smov 128   ;;  %s5709_s26 = smov 8  }
  0x12   :  { %46 = dma.hbm_to_vmem [thread:$0]  %s6656_s4, 1024, %s41_s14, [#allocation6], %s5708_s25, %s5708_s25, %s5709_s26  }
  0x13   :  { %s5658_s11 = scalar_lea.hbm %s6654_s2, 1024 }
  0x14   :  { %p5659_p8 = scmp.ne.s32.totalorder %s6654_s2, %s5658_s11  ;;  %p5662_p9 = scmp.lt.u32.totalorder %s5658_s11, %s6654_s2 }
  0x16   :  { %p5664_p10 = pnand %p5662_p9, %p5659_p8 }
  0x18   :  { %5667 = shalt.err (!%p5664_p10)
}
  0x19   :  { %s5668_s18 = scalar_lea.vmem %s5772_s16, 1024  ;;  %p5673_p12 = scmp.lt.s32.totalorder %s5772_s16, %s5772_s16 }
  0x1a   :  { %p5669_p11 = scmp.ne.s32.totalorder %s5772_s16, %s5668_s18  ;;  %p5674_p13 = scmp.lt.s32.totalorder %s5668_s18, %s5668_s18 }
  0x1c   :  { %p5675_p0 = por %p5674_p13, %p5673_p12 }
  0x1e   :  { %p5676_p1 = pnand %p5675_p0, %p5669_p11 }
  0x20   :  { %5679 = shalt.err (!%p5676_p1)
}
  0x21   :  { %32 = dma.hbm_to_vmem [thread:$0]  %s6654_s2, 1024, %s5772_s16, [#allocation4], %s5708_s25, %s5708_s25, %s5709_s26  }
  0x22   :  { %s5710_s19 = smov [#allocation7]   ;;  %s5680_s23 = scalar_lea.hbm %s6660_s8, 1024 }
  0x23   :  { %s58_s20 = sshll.u32 %s5710_s19, 4  ;;  %p5681_p2 = scmp.ne.s32.totalorder %s6660_s8, %s5680_s23  ;;  %s59_s20 = int_to_ptr.vmem [resolvable:$true] %s58_s20 }
  0x24   :  { %p5684_p3 = scmp.lt.u32.totalorder %s5680_s23, %s6660_s8 }
  0x26   :  { %p5686_p4 = pnand %p5684_p3, %p5681_p2 }
  0x28   :  { %5689 = shalt.err (!%p5686_p4)
}
  0x29   :  { %s5690_s30 = scalar_lea.vmem %s59_s20, 1024  ;;  %p5695_p6 = scmp.lt.s32.totalorder %s59_s20, %s59_s20 }
  0x2a   :  { %p5691_p5 = scmp.ne.s32.totalorder %s59_s20, %s5690_s30  ;;  %p5696_p7 = scmp.lt.s32.totalorder %s5690_s30, %s5690_s30 }
  0x2c   :  { %p5697_p8 = por %p5696_p7, %p5695_p6 }
  0x2e   :  { %p5698_p9 = pnand %p5697_p8, %p5691_p5 }
  0x30   :  { %5701 = shalt.err (!%p5698_p9)
}
  0x31   :  { %64 = dma.hbm_to_vmem [thread:$0]  %s6660_s8, 1024, %s59_s20, [#allocation6], %s5708_s25, %s5708_s25, %s5709_s26  }
  0x32   :  { %5702 = dma.done.wait [#allocation4], 1024  }
  0x33   :  { %5703 = vsyncadd [#allocation4], 4294966272 }
  0x34   :  { %5704 = dma.done.wait [#allocation6], 2048  }
  0x35   :  { %5705 = vsyncadd [#allocation6], 4294965248  ;;  %v5711_v0 = vmov 0   ;;  %v78_v1 = vld [vmem:[%s6652_s0 + $0x10] sm:$0xff]  ;;  %v76_v2 = vld [vmem:[%s6652_s0] sm:$0xff]  ;;  %vm126_vm0 = vcmask 1041408   ;;  %v80_v22 = vlaneseq }
  0x36   :  { %5441 = vset.pattern.permute.xlu1 %v5711_v0  ;;  %5440 = vset.pattern.permute.xlu0 %v5711_v0  ;;  %v79_v3 = vld [vmem:[%s6652_s0 + $0x18] sm:$0xff]  ;;  %v106_v4 = vld [vmem:[%s6653_s1] sm:$0xff]  ;;  %v107_v5 = vld [vmem:[%s6653_s1 + $0x8] sm:$0xff]  ;;  %v5712_v21 = vmov 0.0|0.0   ;;  %vm113_vm1 = vcmask 408576   ;;  %v5713_v28 = vmov 0.0  }
  0x37   :  { %89 = vperm.xlu1 %5441, %v78_v1   ;;  %83 = vperm.xlu0 %5440, %v76_v2   ;;  %v77_v6 = vld [vmem:[%s6652_s0 + $0x8] sm:$0xff]  ;;  %v5169_v7 = vpack.c.bf16 %v107_v5, %v106_v4  ;;  %v108_v8 = vld [vmem:[%s6653_s1 + $0x10] sm:$0xff]  ;;  %v109_v9 = vld [vmem:[%s6653_s1 + $0x18] sm:$0xff]  ;;  %v81_v23 = vand.u32 127, %v80_v22  ;;  %vm5714_vm6 = vmmov 0   ;;  %s5715_s16 = smov 64  }
  0x38   :  { %v5173_v10 = vpack.c.bf16 %v109_v9, %v108_v8  ;;  %v110_v11 = vld [vmem:[%s6653_s1 + $0x20] sm:$0xff]  ;;  %v111_v12 = vld [vmem:[%s6653_s1 + $0x28] sm:$0xff]  ;;  %v112_v14 = vld [vmem:[%s6653_s1 + $0x30] sm:$0x3]  ;;  %vm226_vm7 = vcmask 261120   ;;  %vm655_vm8 = vcmask 257024  }
  0x39   :  { %5170 = vmatprep.subr.bf16.mxu0 %v5169_v7  ;;  %v5177_v13 = vpack.c.bf16 %v111_v12, %v110_v11  ;;  %v215_v15 = vld [vmem:[#allocation3] sm:$0xff]  ;;  %v216_v16 = vld [vmem:[#allocation3 + $0x8] sm:$0xff]  ;;  %v217_v17 = vld [vmem:[#allocation3 + $0x10] sm:$0xff]  ;;  %vm662_vm9 = vcmask 261124   ;;  %vm4320_vm10 = vcmask 259076   ;;  %vm4333_vm11 = vcmask 254976  }
  0x3a   :  { %5172 = vmatpush3.bf16.msra.mxu0 %v5169_v7  ;;  %v5181_v18 = vpack.c.bf16 %v216_v16, %v215_v15  ;;  %v218_v19 = vld [vmem:[#allocation3 + $0x18] sm:$0xff]  ;;  %v422_v26 = vld [vmem:[#allocation5] sm:$0xff]  ;;  %v423_v27 = vld [vmem:[#allocation5 + $0x8] sm:$0xff]  ;;  %vm4373_vm12 = vcmask 5124  }
  0x3b   :  { %92 = vperm.xlu1 %5441, %v79_v3   ;;  %86 = vperm.xlu0 %5440, %v77_v6   ;;  %v5185_v20 = vpack.c.bf16 %v218_v19, %v217_v17  ;;  %v5860_v32 = vpack.c.bf16 %v423_v27, %v422_v26  ;;  %v424_v34 = vld [vmem:[#allocation5 + $0x10] sm:$0xff]  ;;  %v425_v35 = vld [vmem:[#allocation5 + $0x18] sm:$0xff]  ;;  %v325_v39 = vld [vmem:[#allocation3 + $0x20] sm:$0xff] }
  0x3c   :  { %5174 = vmatprep.subr.bf16.mxu0 %v5173_v10  ;;  %5182 = vmatprep.subr.bf16.mxu1 %v5181_v18  ;;  %v5867_v37 = vpack.c.bf16 %v425_v35, %v424_v34  ;;  %v326_v40 = vld [vmem:[#allocation3 + $0x28] sm:$0xff]  ;;  %v4403_v42 = vld [vmem:[%s6657_s5] ss:$0 sm:$0xff]  ;;  %v4405_v43 = vld [vmem:[%s6657_s5 + $0x1] ss:$0 sm:$0xff] }
  0x3d   :  { %5184 = vmatpush3.bf16.msra.mxu1 %v5181_v18  ;;  %v5189_v41 = vpack.c.bf16 %v326_v40, %v325_v39  ;;  %v327_v44 = vld [vmem:[#allocation3 + $0x30] sm:$0xff]  ;;  %v328_v45 = vld [vmem:[#allocation3 + $0x38] sm:$0xff]  ;;  %v427_v51 = vld [vmem:[#allocation5 + $0x20] sm:$0xff] }
  0x3e   :  { %5176 = vmatpush3.bf16.msra.mxu0 %v5173_v10  ;;  %5186 = vmatprep.subr.bf16.mxu1 %v5185_v20  ;;  %v5193_v48 = vpack.c.bf16 %v328_v45, %v327_v44  ;;  %v428_v52 = vld [vmem:[#allocation5 + $0x28] sm:$0xff]  ;;  %v429_v56 = vld [vmem:[#allocation5 + $0x30] sm:$0xff]  ;;  %v430_v57 = vld [vmem:[#allocation5 + $0x38] sm:$0xff] }
  0x3f   :  { %5178 = vmatprep.subr.bf16.mxu0 %v5177_v13  ;;  %519 = vrot.lane.b32.xlu1 %v4403_v42, %s5715_s16  ;;  %v5898_v54 = vpack.c.bf16 %v428_v52, %v427_v51  ;;  %v5906_v60 = vpack.c.bf16 %v430_v57, %v429_v56  ;;  %v4390_v61 = vld [vmem:[%s6655_s3] ss:$0 sm:$0xff]  ;;  %v4396_v8 = vld [vmem:[%s6655_s3 + $0x1] ss:$0 sm:$0xff]  ;;  %s5716_s3 = smov 96  }
  0x40   :  { %627 = vrot.lane.b32.xlu0 %v4405_v43, %s5715_s16 }
  0x41   :  { %5188 = vmatpush3.bf16.msra.mxu1 %v5185_v20 }
  0x42   :  { %5180 = vmatpush3.bf16.msra.mxu0 %v5177_v13  ;;  %5190 = vmatprep.subr.bf16.mxu1 %v5189_v41 }
  0x43   :  { %4725 = vmatprep.subr.msk.mxu0 %vm126_vm0, %v112_v14 }
  0x46   :  { %4726 = vmatpush3.msk.msra.mxu0 %vm126_vm0, %v112_v14 }
  0x47   :  { %5197 = vmatprep.subr.bf16.mxu0 %v5712_v21 }
  0xb6   :  { %v90_v24 = vpop.permute.xlu1 %89  ;;  %v84_v25 = vpop.permute.xlu0 %83 }
  0xb7   :  { %vm94_vm2 = vcmp.eq.s32.totalorder %v84_v25, %v81_v23  ;;  %vm96_vm3 = vcmp.eq.s32.totalorder %v90_v24, %v81_v23 }
  0xb8   :  { %v4381_v29 = vsel %vm94_vm2, 1.0, %v5713_v28  ;;  %v4383_v33 = vsel %vm96_vm3, 1.0, %v5713_v28 }
  0xb9   :  { %4727 = vmatprep.mubr.msk.f32.mxu0 %vm113_vm1, %v4381_v29 }
  0xba   :  { %v93_v30 = vpop.permute.xlu1 %92  ;;  %v87_v31 = vpop.permute.xlu0 %86 }
  0xbb   :  { %vm95_vm4 = vcmp.eq.s32.totalorder %v87_v31, %v81_v23  ;;  %vm97_vm5 = vcmp.eq.s32.totalorder %v93_v30, %v81_v23 }
  0xbc   :  { %v4382_v36 = vsel %vm95_vm4, 1.0, %v5713_v28  ;;  %v4384_v38 = vsel %vm97_vm5, 1.0, %v5713_v28 }
  0xbd   :  { %4728 = vmatmul.mubr.msk.f32.vlgmr.msra.gmra.mrb[0].mxu0 %vm113_vm1, %v4382_v36 }
  0xbe   :  { %4730 = vmatprep.mubr.msk.f32.mxu0 %vm113_vm1, %v4383_v33  ;;  %5199 = vmatpush3.bf16.msra.mxu0 %v5860_v32  ;;  %v5894_v53 = vpop.permute.xlu1 %519  ;;  %v5942_v16 = vpop.permute.xlu0 %627 }
  0xbf   :  { %5200 = vmatprep.subr.bf16.mxu0 %v5712_v21 }
  0xc1   :  { %4731 = vmatmul.mubr.msk.f32.gmra.mrb[2].mxu0 %vm113_vm1, %v4384_v38 }
  0xc2   :  { %5202 = vmatpush3.bf16.msra.mxu0 %v5867_v37  ;;  %4769 = vmatprep.mubr.msk.f32.mxu0 %vm5714_vm6, %v5713_v28 }
  0xc3   :  { %5209 = vmatprep.subr.bf16.mxu0 %v5712_v21 }
  0xc5   :  { %4770 = vmatmul.mubr.f32.vlgmr.msra.gmra.mrb[4].mxu0 %v5713_v28 }
  0xc6   :  { %5211 = vmatpush3.bf16.msra.mxu0 %v5860_v32  ;;  %4791 = vmatprep.mubr.msk.f32.mxu0 %vm5714_vm6, %v5713_v28 }
  0xc7   :  { %5212 = vmatprep.subr.bf16.mxu0 %v5712_v21 }
  0xca   :  { %5214 = vmatpush3.bf16.msra.mxu0 %v5867_v37 }
  0xcb   :  { %5221 = vmatprep.subr.bf16.mxu0 %v5712_v21 }
 0x190   :  { %v4729_v46 = vpop.f32.mrb[0].mxu0 }
 0x191   :  { %v196_v47 = vpop.f32.mrb[1].mxu0 }
 0x192   :  { %4741 = vmatprep.mubr.msk.f32.mxu1 %vm226_vm7, %v196_v47 }
 0x193   :  { %4742 = vmatmul.mubr.msk.f32.vlgmr.msra.gmra.mrb[0].mxu1 %vm226_vm7, %v4729_v46 }
 0x194   :  { %5192 = vmatpush3.bf16.msra.mxu1 %v5189_v41  ;;  %v4732_v49 = vpop.f32.mrb[2].mxu0 }
 0x195   :  { %v206_v50 = vpop.f32.mrb[3].mxu0  ;;  %5194 = vmatprep.subr.bf16.mxu1 %v5193_v48 }
 0x196   :  { %4744 = vmatprep.mubr.msk.f32.mxu1 %vm226_vm7, %v206_v50 }
 0x197   :  { %4745 = vmatmul.mubr.msk.f32.gmra.mrb[2].mxu1 %vm226_vm7, %v4732_v49 }
 0x198   :  { %5196 = vmatpush3.bf16.msra.mxu1 %v5193_v48  ;;  %4755 = vmatprep.mubr.msk.f32.mxu1 %vm226_vm7, %v196_v47  ;;  %v503_v55 = vpop.f32.mrb[4].mxu0 }
 0x199   :  { %5203 = vmatprep.subr.bf16.mxu1 %v5712_v21  ;;  %v522_v58 = vadd.f32 %v5894_v53, %v503_v55  ;;  %v4771_v59 = vpop.f32.mrb[5].mxu0 }
 0x19b   :  { %4756 = vmatmul.mubr.msk.f32.vlgmr.msra.gmra.mrb[4].mxu1 %vm226_vm7, %v4729_v46  ;;  %524 = vrot.lane.b32.xlu1 %v522_v58, %s5715_s16 }
 0x19c   :  { %5205 = vmatpush3.bf16.msra.mxu1 %v5898_v54  ;;  %4758 = vmatprep.mubr.msk.f32.mxu1 %vm226_vm7, %v206_v50 }
 0x19d   :  { %5206 = vmatprep.subr.bf16.mxu1 %v5712_v21 }
 0x19f   :  { %4759 = vmatmul.mubr.msk.f32.gmra.mrb[6].mxu1 %vm226_vm7, %v4732_v49 }
 0x1a0   :  { %5208 = vmatpush3.bf16.msra.mxu1 %v5906_v60  ;;  %4780 = vmatprep.mubr.msk.f32.mxu1 %vm5714_vm6, %v5713_v28 }
 0x1a1   :  { %5215 = vmatprep.subr.bf16.mxu1 %v5712_v21 }
 0x1a3   :  { %4781 = vmatmul.mubr.f32.vlgmr.msra.gmra.mrb[8].mxu1 %v5713_v28 }
 0x1a4   :  { %5217 = vmatpush3.bf16.msra.mxu1 %v5898_v54  ;;  %4802 = vmatprep.mubr.msk.f32.mxu1 %vm5714_vm6, %v5713_v28 }
 0x1a5   :  { %5218 = vmatprep.subr.bf16.mxu1 %v5712_v21 }
 0x1a8   :  { %5220 = vmatpush3.bf16.msra.mxu1 %v5906_v60 }
 0x1a9   :  { %5227 = vmatprep.subr.bf16.mxu1 %v5712_v21 }
 0x20d   :  { %v525_v24 = vpop.permute.xlu1 %524 }
 0x266   :  { %v4743_v62 = vpop.f32.mrb[0].mxu1 }
 0x267   :  { %v5924_v63 = vadd.f32 %v4743_v62, %v4390_v61  ;;  %v305_v0 = vpop.f32.mrb[1].mxu1 }
 0x268   :  { %v5926_v1 = vadd.f32 %v4390_v61, %v305_v0 }
 0x26a   :  { %v507_v2 = vadd.f32 %v503_v55, %v5926_v1  ;;  %v4746_v3 = vpop.f32.mrb[2].mxu1 }
 0x26b   :  { %v5929_v4 = vadd.f32 %v4746_v3, %v4390_v61  ;;  %v315_v5 = vpop.f32.mrb[3].mxu1 }
 0x26c   :  { %v4402_v6 = vmul.f32 -1.442695, %v507_v2  ;;  %v5931_v7 = vadd.f32 %v4390_v61, %v315_v5 }
 0x26e   :  { %5442 = vpow2.f32 %v4402_v6  ;;  %v4757_v9 = vpop.f32.mrb[4].mxu1 }
 0x26f   :  { %v5936_v10 = vadd.f32 %v4757_v9, %v4396_v8  ;;  %v403_v11 = vpop.f32.mrb[5].mxu1 }
 0x270   :  { %v5938_v12 = vadd.f32 %v4396_v8, %v403_v11 }
 0x272   :  { %v4760_v13 = vpop.f32.mrb[6].mxu1 }
 0x273   :  { %v413_v14 = vpop.f32.mrb[7].mxu1  ;;  %v5947_v29 = vadd.f32 %v4760_v13, %v4396_v8 }
 0x274   :  { %v5940_v15 = vadd.f32 %v4396_v8, %v413_v14 }
 0x276   :  { %v608_v17 = vpop.f32.mrb[8].mxu1 }
 0x277   :  { %v4782_v18 = vpop.f32.mrb[9].mxu1  ;;  %v630_v19 = vadd.f32 %v5942_v16, %v608_v17  ;;  %v613_v27 = vrot.slane %v608_v17, 4 }
 0x278   :  { %v5443_v20 = vpop.eup %5442 }
 0x279   :  { %v511_v22 = vadd.f32 1.0, %v5443_v20  ;;  %v632_v23 = vrot.slane %v630_v19, 4  ;;  %v615_v30 = vadd.f32 %v613_v27, %v5947_v29 }
 0x27b   :  { %5444 = vrcp.f32 %v511_v22  ;;  %633 = vrot.lane.b32.xlu0 %v632_v23, %s5715_s16  ;;  %v4404_v31 = vmul.f32 -1.442695, %v615_v30 }
 0x27d   :  { %5446 = vpow2.f32 %v4404_v31 }
 0x285   :  { %v5445_v25 = vpop.eup %5444 }
 0x286   :  { %v527_v26 = vmul.f32 %v5445_v25, %v525_v24  ;;  %v534_v45 = vsub.f32 1.0, %v5445_v25  ;;  %v540_v47 = vmul.f32 0.0, %v5445_v25 }
 0x287   :  { %v5447_v33 = vpop.eup %5446 }
 0x288   :  { %529 = vrot.lane.b32.xlu1 %v527_v26, %s5715_s16  ;;  %v619_v34 = vadd.f32 1.0, %v5447_v33 }
 0x28a   :  { %5448 = vrcp.f32 %v619_v34 }
 0x294   :  { %v5449_v35 = vpop.eup %5448 }
 0x295   :  { %v643_v50 = vsub.f32 1.0, %v5449_v35  ;;  %v649_v52 = vmul.f32 0.0, %v5449_v35 }
 0x2ed   :  { %v634_v36 = vpop.permute.xlu0 %633 }
 0x2ee   :  { %v636_v38 = vmul.f32 %v5449_v35, %v634_v36 }
 0x2f0   :  { %638 = vrot.lane.b32.xlu0 %v636_v38, %s5715_s16 }
 0x2fa   :  { %v530_v39 = vpop.permute.xlu1 %529 }
 0x2fb   :  { %v532_v40 = vadd.f32 %v530_v39, %v5926_v1 }
 0x2fd   :  { %5450 = vtanh.f32 %v532_v40 }
 0x307   :  { %v5451_v41 = vpop.eup %5450 }
 0x308   :  { %536 = vrot.lane.b32.xlu1 %v5451_v41, %s5716_s3 }
 0x362   :  { %v639_v42 = vpop.permute.xlu0 %638 }
 0x363   :  { %v641_v43 = vadd.f32 %v639_v42, %v5947_v29 }
 0x365   :  { %5452 = vtanh.f32 %v641_v43 }
 0x36f   :  { %v5453_v44 = vpop.eup %5452 }
 0x370   :  { %645 = vrot.lane.b32.xlu0 %v5453_v44, %s5716_s3 }
 0x37a   :  { %v537_v46 = vpop.permute.xlu1 %536 }
 0x37b   :  { %v539_v48 = vmul.f32 %v537_v46, %v534_v45 }
 0x37d   :  { %v5955_v49 = vadd.f32 %v540_v47, %v539_v48 }
 0x37f   :  { %652 = vrot.lane.b32.xlu1 %v5955_v49, %s5716_s3  ;;  %v765_v38 = vrot.slane %v5955_v49, 4 }
 0x3e2   :  { %v646_v51 = vpop.permute.xlu0 %645 }
 0x3e3   :  { %v648_v55 = vmul.f32 %v646_v51, %v643_v50 }
 0x3e5   :  { %v5959_v56 = vadd.f32 %v649_v52, %v648_v55 }
 0x3e7   :  { %v769_v57 = vrot.slane %v5959_v56, 4 }
 0x3e9   :  { %770 = vrot.lane.b32.xlu0 %v769_v57, %s5716_s3 }
 0x3f1   :  { %v653_v58 = vpop.permute.xlu1 %652 }
 0x3f2   :  { %656 = vst.msk [vmem:[#allocation2] sm:$0xf] %vm655_vm8, %v653_v58  ;;  %4792 = vmatmul.mubr.msk.f32.vlgmr.msra.gmra.mrb[6].mxu0 %vm226_vm7, %v653_v58 }
 0x3f3   :  { %5223 = vmatpush3.bf16.msra.mxu0 %v5860_v32  ;;  %4813 = vmatprep.mubr.msk.f32.mxu0 %vm5714_vm6, %v5713_v28 }
 0x3f4   :  { %5224 = vmatprep.subr.bf16.mxu0 %v5712_v21 }
 0x3f7   :  { %5226 = vmatpush3.bf16.msra.mxu0 %v5867_v37 }
 0x3f8   :  { %5233 = vmatprep.subr.bf16.mxu0 %v5712_v21 }
 0x45b   :  { %v771_v59 = vpop.permute.xlu0 %770 }
 0x45c   :  { %4803 = vmatmul.mubr.msk.f32.vlgmr.msra.gmra.mrb[10].mxu1 %vm226_vm7, %v771_v59 }
 0x45d   :  { %5229 = vmatpush3.bf16.msra.mxu1 %v5898_v54  ;;  %4824 = vmatprep.mubr.msk.f32.mxu1 %vm5714_vm6, %v5713_v28 }
 0x45e   :  { %5230 = vmatprep.subr.bf16.mxu1 %v5712_v21 }
 0x461   :  { %5232 = vmatpush3.bf16.msra.mxu1 %v5906_v60 }
 0x462   :  { %5239 = vmatprep.subr.bf16.mxu1 %v5712_v21 }
 0x4c5   :  { %v732_v61 = vpop.f32.mrb[6].mxu0 }
 0x4c6   :  { %v746_v62 = vadd.f32 %v732_v61, %v5894_v53  ;;  %v4793_v0 = vpop.f32.mrb[7].mxu0  ;;  %v737_v3 = vrot.slane %v732_v61, 4 }
 0x4c8   :  { %v748_v2 = vrot.slane %v746_v62, 4  ;;  %v739_v5 = vadd.f32 %v737_v3, %v5926_v1 }
 0x4ca   :  { %749 = vrot.lane.b32.xlu1 %v748_v2, %s5715_s16  ;;  %v4407_v6 = vmul.f32 -1.442695, %v739_v5 }
 0x4cc   :  { %5454 = vpow2.f32 %v4407_v6 }
 0x4d6   :  { %v5455_v8 = vpop.eup %5454 }
 0x4d7   :  { %v743_v9 = vadd.f32 1.0, %v5455_v8 }
 0x4d9   :  { %5456 = vrcp.f32 %v743_v9 }
 0x4e3   :  { %v5457_v17 = vpop.eup %5456 }
 0x4e4   :  { %v759_v39 = vsub.f32 1.0, %v5457_v17  ;;  %v767_v41 = vmul.f32 %v5457_v17, %v765_v38 }
 0x52f   :  { %v840_v11 = vpop.f32.mrb[10].mxu1 }
 0x530   :  { %v851_v13 = vadd.f32 %v840_v11, %v5942_v16  ;;  %v4804_v14 = vpop.f32.mrb[11].mxu1  ;;  %v844_v20 = vadd.f32 %v840_v11, %v5947_v29 }
 0x532   :  { %853 = vrot.lane.b32.xlu0 %v851_v13, %s5715_s16  ;;  %v4409_v22 = vmul.f32 -1.442695, %v844_v20 }
 0x534   :  { %5458 = vpow2.f32 %v4409_v22 }
 0x53c   :  { %v750_v18 = vpop.permute.xlu1 %749 }
 0x53d   :  { %v752_v19 = vmul.f32 %v5457_v17, %v750_v18 }
 0x53e   :  { %v5459_v23 = vpop.eup %5458 }
 0x53f   :  { %754 = vrot.lane.b32.xlu1 %v752_v19, %s5715_s16  ;;  %v848_v24 = vadd.f32 1.0, %v5459_v23 }
 0x541   :  { %5460 = vrcp.f32 %v848_v24 }
 0x54b   :  { %v5461_v25 = vpop.eup %5460 }
 0x54c   :  { %v863_v44 = vsub.f32 1.0, %v5461_v25  ;;  %v870_v45 = vmul.f32 %v5461_v25, %v769_v57 }
 0x5a4   :  { %v854_v26 = vpop.permute.xlu0 %853 }
 0x5a5   :  { %v856_v27 = vmul.f32 %v5461_v25, %v854_v26 }
 0x5a7   :  { %858 = vrot.lane.b32.xlu0 %v856_v27, %s5715_s16 }
 0x5b1   :  { %v755_v30 = vpop.permute.xlu1 %754 }
 0x5b2   :  { %v757_v31 = vadd.f32 %v755_v30, %v5926_v1 }
 0x5b4   :  { %5462 = vtanh.f32 %v757_v31 }
 0x5be   :  { %v5463_v33 = vpop.eup %5462 }
 0x5bf   :  { %761 = vrot.lane.b32.xlu1 %v5463_v33, %s5716_s3 }
 0x619   :  { %v859_v34 = vpop.permute.xlu0 %858 }
 0x61a   :  { %v861_v35 = vadd.f32 %v859_v34, %v5947_v29 }
 0x61c   :  { %5464 = vtanh.f32 %v861_v35 }
 0x626   :  { %v5465_v36 = vpop.eup %5464 }
 0x627   :  { %865 = vrot.lane.b32.xlu0 %v5465_v36, %s5716_s3 }
 0x631   :  { %v762_v40 = vpop.permute.xlu1 %761 }
 0x632   :  { %v764_v42 = vmul.f32 %v762_v40, %v759_v39 }
 0x634   :  { %v5993_v43 = vadd.f32 %v767_v41, %v764_v42 }
 0x636   :  { %v882_v1 = vrot.slane %v5993_v43, 4 }
 0x638   :  { %883 = vrot.lane.b32.xlu1 %v882_v1, %s5716_s3 }
 0x699   :  { %v866_v29 = vpop.permute.xlu0 %865 }
 0x69a   :  { %v868_v46 = vmul.f32 %v866_v29, %v863_v44 }
 0x69c   :  { %v6001_v47 = vadd.f32 %v870_v45, %v868_v46 }
 0x69e   :  { %878 = vrot.lane.b32.xlu0 %v6001_v47, %s5716_s3  ;;  %v1086_v35 = vrot.slane %v6001_v47, 4 }
 0x6aa   :  { %v884_v48 = vpop.permute.xlu1 %883 }
 0x6ab   :  { %4814 = vmatmul.mubr.msk.f32.vlgmr.msra.gmra.mrb[8].mxu0 %vm226_vm7, %v884_v48 }
 0x6ac   :  { %5235 = vmatpush3.bf16.msra.mxu0 %v5860_v32  ;;  %4835 = vmatprep.mubr.msk.f32.mxu0 %vm5714_vm6, %v5713_v28 }
 0x6ad   :  { %5236 = vmatprep.subr.bf16.mxu0 %v5712_v21 }
 0x6b0   :  { %5238 = vmatpush3.bf16.msra.mxu0 %v5867_v37 }
 0x6b1   :  { %5245 = vmatprep.subr.bf16.mxu0 %v5712_v21 }
 0x710   :  { %v879_v49 = vpop.permute.xlu0 %878 }
 0x711   :  { %881 = vst.msk [vmem:[#allocation2 + $0x38] sm:$0xf] %vm655_vm8, %v879_v49  ;;  %4825 = vmatmul.mubr.msk.f32.vlgmr.msra.gmra.mrb[12].mxu1 %vm226_vm7, %v879_v49 }
 0x712   :  { %5241 = vmatpush3.bf16.msra.mxu1 %v5898_v54  ;;  %4846 = vmatprep.mubr.msk.f32.mxu1 %vm5714_vm6, %v5713_v28 }
 0x713   :  { %5242 = vmatprep.subr.bf16.mxu1 %v5712_v21 }
 0x716   :  { %5244 = vmatpush3.bf16.msra.mxu1 %v5906_v60 }
 0x717   :  { %5251 = vmatprep.subr.bf16.mxu1 %v5712_v21 }
 0x77e   :  { %v953_v50 = vpop.f32.mrb[8].mxu0 }
 0x77f   :  { %v964_v51 = vadd.f32 %v953_v50, %v5894_v53  ;;  %v4815_v52 = vpop.f32.mrb[9].mxu0  ;;  %v957_v55 = vadd.f32 %v953_v50, %v5924_v63 }
 0x781   :  { %966 = vrot.lane.b32.xlu1 %v964_v51, %s5715_s16  ;;  %v4411_v57 = vmul.f32 -1.442695, %v957_v55 }
 0x783   :  { %5466 = vpow2.f32 %v4411_v57 }
 0x78d   :  { %v5467_v58 = vpop.eup %5466 }
 0x78e   :  { %v961_v61 = vadd.f32 1.0, %v5467_v58 }
 0x790   :  { %5468 = vrcp.f32 %v961_v61 }
 0x79a   :  { %v5469_v3 = vpop.eup %5468 }
 0x79b   :  { %v976_v27 = vsub.f32 1.0, %v5469_v3  ;;  %v983_v31 = vmul.f32 %v5469_v3, %v882_v1 }
 0x7e4   :  { %v1053_v59 = vpop.f32.mrb[12].mxu1 }
 0x7e5   :  { %v1067_v62 = vadd.f32 %v1053_v59, %v5942_v16  ;;  %v4826_v0 = vpop.f32.mrb[13].mxu1  ;;  %v1058_v8 = vrot.slane %v1053_v59, 4 }
 0x7e7   :  { %v1069_v2 = vrot.slane %v1067_v62, 4  ;;  %v1060_v9 = vadd.f32 %v1058_v8, %v5940_v15 }
 0x7e9   :  { %1070 = vrot.lane.b32.xlu0 %v1069_v2, %s5715_s16  ;;  %v4413_v11 = vmul.f32 -1.442695, %v1060_v9 }
 0x7eb   :  { %5470 = vpow2.f32 %v4413_v11 }
 0x7f3   :  { %v967_v5 = vpop.permute.xlu1 %966 }
 0x7f4   :  { %v969_v6 = vmul.f32 %v5469_v3, %v967_v5 }
 0x7f5   :  { %v5471_v13 = vpop.eup %5470 }
 0x7f6   :  { %971 = vrot.lane.b32.xlu1 %v969_v6, %s5715_s16  ;;  %v1064_v14 = vadd.f32 1.0, %v5471_v13 }
 0x7f8   :  { %5472 = vrcp.f32 %v1064_v14 }
 0x802   :  { %v5473_v17 = vpop.eup %5472 }
 0x803   :  { %v1080_v36 = vsub.f32 1.0, %v5473_v17  ;;  %v1088_v39 = vmul.f32 %v5473_v17, %v1086_v35 }
 0x85b   :  { %v1071_v18 = vpop.permute.xlu0 %1070 }
 0x85c   :  { %v1073_v19 = vmul.f32 %v5473_v17, %v1071_v18 }
 0x85e   :  { %1075 = vrot.lane.b32.xlu0 %v1073_v19, %s5715_s16 }
 0x868   :  { %v972_v20 = vpop.permute.xlu1 %971 }
 0x869   :  { %v974_v22 = vadd.f32 %v972_v20, %v5924_v63 }
 0x86b   :  { %5474 = vtanh.f32 %v974_v22 }
 0x875   :  { %v5475_v23 = vpop.eup %5474 }
 0x876   :  { %978 = vrot.lane.b32.xlu1 %v5475_v23, %s5716_s3 }
 0x8d0   :  { %v1076_v24 = vpop.permute.xlu0 %1075 }
 0x8d1   :  { %v1078_v25 = vadd.f32 %v1076_v24, %v5940_v15 }
 0x8d3   :  { %5476 = vtanh.f32 %v1078_v25 }
 0x8dd   :  { %v5477_v26 = vpop.eup %5476 }
 0x8de   :  { %1082 = vrot.lane.b32.xlu0 %v5477_v26, %s5716_s3 }
 0x8e8   :  { %v979_v30 = vpop.permute.xlu1 %978 }
 0x8e9   :  { %v981_v33 = vmul.f32 %v979_v30, %v976_v27 }
 0x8eb   :  { %v6034_v34 = vadd.f32 %v983_v31, %v981_v33 }
 0x8ed   :  { %1091 = vrot.lane.b32.xlu1 %v6034_v34, %s5716_s3  ;;  %v1201_v20 = vrot.slane %v6034_v34, 4 }
 0x950   :  { %v1083_v38 = vpop.permute.xlu0 %1082 }
 0x951   :  { %v1085_v40 = vmul.f32 %v1083_v38, %v1080_v36 }
 0x953   :  { %v6039_v41 = vadd.f32 %v1088_v39, %v1085_v40 }
 0x955   :  { %v1205_v42 = vrot.slane %v6039_v41, 4 }
 0x957   :  { %1206 = vrot.lane.b32.xlu0 %v1205_v42, %s5716_s3 }
 0x95f   :  { %v1092_v1 = vpop.permute.xlu1 %1091 }
 0x960   :  { %1094 = vst.msk [vmem:[#allocation2 + $0x8] sm:$0xf] %vm655_vm8, %v1092_v1  ;;  %4836 = vmatmul.mubr.msk.f32.vlgmr.msra.gmra.mrb[10].mxu0 %vm226_vm7, %v1092_v1 }
 0x961   :  { %5247 = vmatpush3.bf16.msra.mxu0 %v5860_v32  ;;  %4857 = vmatprep.mubr.msk.f32.mxu0 %vm5714_vm6, %v5713_v28 }
 0x962   :  { %5248 = vmatprep.subr.bf16.mxu0 %v5712_v21 }
 0x965   :  { %5250 = vmatpush3.bf16.msra.mxu0 %v5867_v37 }
 0x966   :  { %5257 = vmatprep.subr.bf16.mxu0 %v5712_v21 }
 0x9c9   :  { %v1207_v44 = vpop.permute.xlu0 %1206 }
 0x9ca   :  { %4847 = vmatmul.mubr.msk.f32.vlgmr.msra.gmra.mrb[14].mxu1 %vm226_vm7, %v1207_v44 }
 0x9cb   :  { %5253 = vmatpush3.bf16.msra.mxu1 %v5898_v54  ;;  %4868 = vmatprep.mubr.msk.f32.mxu1 %vm5714_vm6, %v5713_v28 }
 0x9cc   :  { %5254 = vmatprep.subr.bf16.mxu1 %v5712_v21 }
 0x9cf   :  { %5256 = vmatpush3.bf16.msra.mxu1 %v5906_v60 }
 0x9d0   :  { %5263 = vmatprep.subr.bf16.mxu1 %v5712_v21 }
 0xa33   :  { %v1168_v29 = vpop.f32.mrb[10].mxu0 }
 0xa34   :  { %v1182_v45 = vadd.f32 %v1168_v29, %v5894_v53  ;;  %v4837_v46 = vpop.f32.mrb[11].mxu0  ;;  %v1173_v48 = vrot.slane %v1168_v29, 4 }
 0xa36   :  { %v1184_v47 = vrot.slane %v1182_v45, 4  ;;  %v1175_v49 = vadd.f32 %v1173_v48, %v5924_v63 }
 0xa38   :  { %1185 = vrot.lane.b32.xlu1 %v1184_v47, %s5715_s16  ;;  %v4415_v50 = vmul.f32 -1.442695, %v1175_v49 }
 0xa3a   :  { %5478 = vpow2.f32 %v4415_v50 }
 0xa44   :  { %v5479_v51 = vpop.eup %5478 }
 0xa45   :  { %v1179_v52 = vadd.f32 1.0, %v5479_v51 }
 0xa47   :  { %5480 = vrcp.f32 %v1179_v52 }
 0xa51   :  { %v5481_v59 = vpop.eup %5480 }
 0xa52   :  { %v1195_v22 = vsub.f32 1.0, %v5481_v59  ;;  %v1203_v24 = vmul.f32 %v5481_v59, %v1201_v20 }
 0xa9d   :  { %v1276_v55 = vpop.f32.mrb[14].mxu1 }
 0xa9e   :  { %v1287_v57 = vadd.f32 %v1276_v55, %v5942_v16  ;;  %v4848_v58 = vpop.f32.mrb[15].mxu1  ;;  %v1280_v0 = vadd.f32 %v1276_v55, %v5940_v15 }
 0xaa0   :  { %1289 = vrot.lane.b32.xlu0 %v1287_v57, %s5715_s16  ;;  %v4417_v2 = vmul.f32 -1.442695, %v1280_v0 }
 0xaa2   :  { %5482 = vpow2.f32 %v4417_v2 }
 0xaaa   :  { %v1186_v61 = vpop.permute.xlu1 %1185 }
 0xaab   :  { %v1188_v62 = vmul.f32 %v5481_v59, %v1186_v61 }
 0xaac   :  { %v5483_v3 = vpop.eup %5482 }
 0xaad   :  { %1190 = vrot.lane.b32.xlu1 %v1188_v62, %s5715_s16  ;;  %v1284_v5 = vadd.f32 1.0, %v5483_v3 }
 0xaaf   :  { %5484 = vrcp.f32 %v1284_v5 }
 0xab9   :  { %v5485_v6 = vpop.eup %5484 }
 0xaba   :  { %v1299_v27 = vsub.f32 1.0, %v5485_v6  ;;  %v1306_v30 = vmul.f32 %v5485_v6, %v1205_v42 }
 0xb12   :  { %v1290_v8 = vpop.permute.xlu0 %1289 }
 0xb13   :  { %v1292_v9 = vmul.f32 %v5485_v6, %v1290_v8 }
 0xb15   :  { %1294 = vrot.lane.b32.xlu0 %v1292_v9, %s5715_s16 }
 0xb1f   :  { %v1191_v11 = vpop.permute.xlu1 %1190 }
 0xb20   :  { %v1193_v13 = vadd.f32 %v1191_v11, %v5924_v63 }
 0xb22   :  { %5486 = vtanh.f32 %v1193_v13 }
 0xb2c   :  { %v5487_v14 = vpop.eup %5486 }
 0xb2d   :  { %1197 = vrot.lane.b32.xlu1 %v5487_v14, %s5716_s3 }
 0xb87   :  { %v1295_v17 = vpop.permute.xlu0 %1294 }
 0xb88   :  { %v1297_v18 = vadd.f32 %v1295_v17, %v5940_v15 }
 0xb8a   :  { %5488 = vtanh.f32 %v1297_v18 }
 0xb94   :  { %v5489_v19 = vpop.eup %5488 }
 0xb95   :  { %1301 = vrot.lane.b32.xlu0 %v5489_v19, %s5716_s3 }
 0xb9f   :  { %v1198_v23 = vpop.permute.xlu1 %1197 }
 0xba0   :  { %v1200_v25 = vmul.f32 %v1198_v23, %v1195_v22 }
 0xba2   :  { %v6073_v26 = vadd.f32 %v1203_v24, %v1200_v25 }
 0xba4   :  { %v1318_v63 = vrot.slane %v6073_v26, 4 }
 0xba6   :  { %1319 = vrot.lane.b32.xlu1 %v1318_v63, %s5716_s3 }
 0xc07   :  { %v1302_v15 = vpop.permute.xlu0 %1301 }
 0xc08   :  { %v1304_v31 = vmul.f32 %v1302_v15, %v1299_v27 }
 0xc0a   :  { %v6081_v33 = vadd.f32 %v1306_v30, %v1304_v31 }
 0xc0c   :  { %1314 = vrot.lane.b32.xlu0 %v6081_v33, %s5716_s3  ;;  %v1522_v18 = vrot.slane %v6081_v33, 4 }
 0xc18   :  { %v1320_v34 = vpop.permute.xlu1 %1319 }
 0xc19   :  { %4858 = vmatmul.mubr.msk.f32.vlgmr.msra.gmra.mrb[12].mxu0 %vm226_vm7, %v1320_v34 }
 0xc1a   :  { %5259 = vmatpush3.bf16.msra.mxu0 %v5860_v32  ;;  %4879 = vmatprep.mubr.msk.f32.mxu0 %vm5714_vm6, %v5713_v28 }
 0xc1b   :  { %5260 = vmatprep.subr.bf16.mxu0 %v5712_v21 }
 0xc1e   :  { %5262 = vmatpush3.bf16.msra.mxu0 %v5867_v37 }
 0xc1f   :  { %5269 = vmatprep.subr.bf16.mxu0 %v5712_v21 }
 0xc7e   :  { %v1315_v35 = vpop.permute.xlu0 %1314 }
 0xc7f   :  { %1317 = vst.msk [vmem:[#allocation2 + $0x30] sm:$0xf] %vm655_vm8, %v1315_v35  ;;  %4869 = vmatmul.mubr.msk.f32.vlgmr.msra.gmra.mrb[16].mxu1 %vm226_vm7, %v1315_v35 }
 0xc80   :  { %5265 = vmatpush3.bf16.msra.mxu1 %v5898_v54  ;;  %4890 = vmatprep.mubr.msk.f32.mxu1 %vm5714_vm6, %v5713_v28 }
 0xc81   :  { %5266 = vmatprep.subr.bf16.mxu1 %v5712_v21 }
 0xc84   :  { %5268 = vmatpush3.bf16.msra.mxu1 %v5906_v60 }
 0xc85   :  { %5275 = vmatprep.subr.bf16.mxu1 %v5712_v21 }
 0xcec   :  { %v1389_v36 = vpop.f32.mrb[12].mxu0 }
 0xced   :  { %v1400_v38 = vadd.f32 %v1389_v36, %v5894_v53  ;;  %v4859_v39 = vpop.f32.mrb[13].mxu0  ;;  %v1393_v40 = vadd.f32 %v1389_v36, %v5931_v7 }
 0xcef   :  { %1402 = vrot.lane.b32.xlu1 %v1400_v38, %s5715_s16  ;;  %v4419_v42 = vmul.f32 -1.442695, %v1393_v40 }
 0xcf1   :  { %5490 = vpow2.f32 %v4419_v42 }
 0xcfb   :  { %v5491_v1 = vpop.eup %5490 }
 0xcfc   :  { %v1397_v29 = vadd.f32 1.0, %v5491_v1 }
 0xcfe   :  { %5492 = vrcp.f32 %v1397_v29 }
 0xd08   :  { %v5493_v48 = vpop.eup %5492 }
 0xd09   :  { %v1412_v9 = vsub.f32 1.0, %v5493_v48  ;;  %v1419_v13 = vmul.f32 %v5493_v48, %v1318_v63 }
 0xd52   :  { %v1489_v44 = vpop.f32.mrb[16].mxu1 }
 0xd53   :  { %v1503_v45 = vadd.f32 %v1489_v44, %v5942_v16  ;;  %v4870_v46 = vpop.f32.mrb[17].mxu1  ;;  %v1494_v51 = vrot.slane %v1489_v44, 4 }
 0xd55   :  { %v1505_v47 = vrot.slane %v1503_v45, 4  ;;  %v1496_v52 = vadd.f32 %v1494_v51, %v5936_v10 }
 0xd57   :  { %1506 = vrot.lane.b32.xlu0 %v1505_v47, %s5715_s16  ;;  %v4421_v55 = vmul.f32 -1.442695, %v1496_v52 }
 0xd59   :  { %5494 = vpow2.f32 %v4421_v55 }
 0xd61   :  { %v1403_v49 = vpop.permute.xlu1 %1402 }
 0xd62   :  { %v1405_v50 = vmul.f32 %v5493_v48, %v1403_v49 }
 0xd63   :  { %v5495_v57 = vpop.eup %5494 }
 0xd64   :  { %1407 = vrot.lane.b32.xlu1 %v1405_v50, %s5715_s16  ;;  %v1500_v58 = vadd.f32 1.0, %v5495_v57 }
 0xd66   :  { %5496 = vrcp.f32 %v1500_v58 }
 0xd70   :  { %v5497_v59 = vpop.eup %5496 }
 0xd71   :  { %v1516_v19 = vsub.f32 1.0, %v5497_v59  ;;  %v1524_v22 = vmul.f32 %v5497_v59, %v1522_v18 }
 0xdc9   :  { %v1507_v61 = vpop.permute.xlu0 %1506 }
 0xdca   :  { %v1509_v62 = vmul.f32 %v5497_v59, %v1507_v61 }
 0xdcc   :  { %1511 = vrot.lane.b32.xlu0 %v1509_v62, %s5715_s16 }
 0xdd6   :  { %v1408_v0 = vpop.permute.xlu1 %1407 }
 0xdd7   :  { %v1410_v2 = vadd.f32 %v1408_v0, %v5931_v7 }
 0xdd9   :  { %5498 = vtanh.f32 %v1410_v2 }
 0xde3   :  { %v5499_v3 = vpop.eup %5498 }
 0xde4   :  { %1414 = vrot.lane.b32.xlu1 %v5499_v3, %s5716_s3 }
 0xe3e   :  { %v1512_v5 = vpop.permute.xlu0 %1511 }
 0xe3f   :  { %v1514_v6 = vadd.f32 %v1512_v5, %v5936_v10 }
 0xe41   :  { %5500 = vtanh.f32 %v1514_v6 }
 0xe4b   :  { %v5501_v8 = vpop.eup %5500 }
 0xe4c   :  { %1518 = vrot.lane.b32.xlu0 %v5501_v8, %s5716_s3 }
 0xe56   :  { %v1415_v11 = vpop.permute.xlu1 %1414 }
 0xe57   :  { %v1417_v14 = vmul.f32 %v1415_v11, %v1412_v9 }
 0xe59   :  { %v6114_v17 = vadd.f32 %v1419_v13, %v1417_v14 }
 0xe5b   :  { %1527 = vrot.lane.b32.xlu1 %v6114_v17, %s5716_s3  ;;  %v1637_v0 = vrot.slane %v6114_v17, 4 }
 0xebe   :  { %v1519_v20 = vpop.permute.xlu0 %1518 }
 0xebf   :  { %v1521_v23 = vmul.f32 %v1519_v20, %v1516_v19 }
 0xec1   :  { %v6119_v24 = vadd.f32 %v1524_v22, %v1521_v23 }
 0xec3   :  { %v1641_v25 = vrot.slane %v6119_v24, 4 }
 0xec5   :  { %1642 = vrot.lane.b32.xlu0 %v1641_v25, %s5716_s3 }
 0xecd   :  { %v1528_v63 = vpop.permute.xlu1 %1527 }
 0xece   :  { %1530 = vst.msk [vmem:[#allocation2 + $0x10] sm:$0xf] %vm655_vm8, %v1528_v63  ;;  %4880 = vmatmul.mubr.msk.f32.vlgmr.msra.gmra.mrb[14].mxu0 %vm226_vm7, %v1528_v63 }
 0xecf   :  { %5271 = vmatpush3.bf16.msra.mxu0 %v5860_v32  ;;  %4901 = vmatprep.mubr.msk.f32.mxu0 %vm5714_vm6, %v5713_v28 }
 0xed0   :  { %5272 = vmatprep.subr.bf16.mxu0 %v5712_v21 }
 0xed3   :  { %5274 = vmatpush3.bf16.msra.mxu0 %v5867_v37 }
 0xed4   :  { %5281 = vmatprep.subr.bf16.mxu0 %v5712_v21 }
 0xf37   :  { %v1643_v27 = vpop.permute.xlu0 %1642 }
 0xf38   :  { %4891 = vmatmul.mubr.msk.f32.vlgmr.msra.gmra.mrb[18].mxu1 %vm226_vm7, %v1643_v27 }
 0xf39   :  { %5277 = vmatpush3.bf16.msra.mxu1 %v5898_v54  ;;  %4912 = vmatprep.mubr.msk.f32.mxu1 %vm5714_vm6, %v5713_v28 }
 0xf3a   :  { %5278 = vmatprep.subr.bf16.mxu1 %v5712_v21 }
 0xf3d   :  { %5280 = vmatpush3.bf16.msra.mxu1 %v5906_v60 }
 0xf3e   :  { %5287 = vmatprep.subr.bf16.mxu1 %v5712_v21 }
 0xfa1   :  { %v1604_v15 = vpop.f32.mrb[14].mxu0 }
 0xfa2   :  { %v1618_v30 = vadd.f32 %v1604_v15, %v5894_v53  ;;  %v4881_v31 = vpop.f32.mrb[15].mxu0  ;;  %v1609_v34 = vrot.slane %v1604_v15, 4 }
 0xfa4   :  { %v1620_v33 = vrot.slane %v1618_v30, 4  ;;  %v1611_v35 = vadd.f32 %v1609_v34, %v5931_v7 }
 0xfa6   :  { %1621 = vrot.lane.b32.xlu1 %v1620_v33, %s5715_s16  ;;  %v4423_v36 = vmul.f32 -1.442695, %v1611_v35 }
 0xfa8   :  { %5502 = vpow2.f32 %v4423_v36 }
 0xfb2   :  { %v5503_v38 = vpop.eup %5502 }
 0xfb3   :  { %v1615_v39 = vadd.f32 1.0, %v5503_v38 }
 0xfb5   :  { %5504 = vrcp.f32 %v1615_v39 }
 0xfbf   :  { %v5505_v44 = vpop.eup %5504 }
 0xfc0   :  { %v1631_v2 = vsub.f32 1.0, %v5505_v44  ;;  %v1639_v6 = vmul.f32 %v5505_v44, %v1637_v0 }
0x100b   :  { %v1712_v40 = vpop.f32.mrb[18].mxu1 }
0x100c   :  { %v1723_v42 = vadd.f32 %v1712_v40, %v5942_v16  ;;  %v4892_v1 = vpop.f32.mrb[19].mxu1  ;;  %v1716_v46 = vadd.f32 %v1712_v40, %v5936_v10 }
0x100e   :  { %1725 = vrot.lane.b32.xlu0 %v1723_v42, %s5715_s16  ;;  %v4425_v47 = vmul.f32 -1.442695, %v1716_v46 }
0x1010   :  { %5506 = vpow2.f32 %v4425_v47 }
0x1018   :  { %v1622_v29 = vpop.permute.xlu1 %1621 }
0x1019   :  { %v1624_v45 = vmul.f32 %v5505_v44, %v1622_v29 }
0x101a   :  { %v5507_v48 = vpop.eup %5506 }
0x101b   :  { %1626 = vrot.lane.b32.xlu1 %v1624_v45, %s5715_s16  ;;  %v1720_v49 = vadd.f32 1.0, %v5507_v48 }
0x101d   :  { %5508 = vrcp.f32 %v1720_v49 }
0x1027   :  { %v5509_v50 = vpop.eup %5508 }
0x1028   :  { %v1735_v9 = vsub.f32 1.0, %v5509_v50  ;;  %v1742_v11 = vmul.f32 %v5509_v50, %v1641_v25 }
0x1080   :  { %v1726_v51 = vpop.permute.xlu0 %1725 }
0x1081   :  { %v1728_v52 = vmul.f32 %v5509_v50, %v1726_v51 }
0x1083   :  { %1730 = vrot.lane.b32.xlu0 %v1728_v52, %s5715_s16 }
0x108d   :  { %v1627_v55 = vpop.permute.xlu1 %1626 }
0x108e   :  { %v1629_v57 = vadd.f32 %v1627_v55, %v5931_v7 }
0x1090   :  { %5510 = vtanh.f32 %v1629_v57 }
0x109a   :  { %v5511_v58 = vpop.eup %5510 }
0x109b   :  { %1633 = vrot.lane.b32.xlu1 %v5511_v58, %s5716_s3 }
0x10f5   :  { %v1731_v59 = vpop.permute.xlu0 %1730 }
0x10f6   :  { %v1733_v61 = vadd.f32 %v1731_v59, %v5936_v10 }
0x10f8   :  { %5512 = vtanh.f32 %v1733_v61 }
0x1102   :  { %v5513_v62 = vpop.eup %5512 }
0x1103   :  { %1737 = vrot.lane.b32.xlu0 %v5513_v62, %s5716_s3 }
0x110d   :  { %v1634_v3 = vpop.permute.xlu1 %1633 }
0x110e   :  { %v1636_v5 = vmul.f32 %v1634_v3, %v1631_v2 }
0x1110   :  { %v6153_v8 = vadd.f32 %v1639_v6, %v1636_v5 }
0x1112   :  { %v1754_v7 = vrot.slane %v6153_v8, 4 }
0x1114   :  { %1755 = vrot.lane.b32.xlu1 %v1754_v7, %s5716_s3 }
0x1175   :  { %v1738_v10 = vpop.permute.xlu0 %1737 }
0x1176   :  { %v1740_v13 = vmul.f32 %v1738_v10, %v1735_v9 }
0x1178   :  { %v6161_v14 = vadd.f32 %v1742_v11, %v1740_v13 }
0x117a   :  { %1750 = vrot.lane.b32.xlu0 %v6161_v14, %s5716_s3  ;;  %v1958_v55 = vrot.slane %v6161_v14, 4 }
0x1186   :  { %v1756_v17 = vpop.permute.xlu1 %1755 }
0x1187   :  { %4902 = vmatmul.mubr.msk.f32.vlgmr.msra.gmra.mrb[16].mxu0 %vm226_vm7, %v1756_v17 }
0x1188   :  { %5283 = vmatpush3.bf16.msra.mxu0 %v5860_v32  ;;  %4923 = vmatprep.mubr.msk.f32.mxu0 %vm5714_vm6, %v5713_v28 }
0x1189   :  { %5284 = vmatprep.subr.bf16.mxu0 %v5712_v21 }
0x118c   :  { %5286 = vmatpush3.bf16.msra.mxu0 %v5867_v37 }
0x11ec   :  { %v1751_v18 = vpop.permute.xlu0 %1750 }
0x11ed   :  { %1753 = vst.msk [vmem:[#allocation2 + $0x28] sm:$0xf] %vm655_vm8, %v1751_v18  ;;  %4913 = vmatmul.mubr.msk.f32.vlgmr.msra.gmra.mrb[20].mxu1 %vm226_vm7, %v1751_v18 }
0x11ee   :  { %5289 = vmatpush3.bf16.msra.mxu1 %v5898_v54  ;;  %4934 = vmatprep.mubr.msk.f32.mxu1 %vm5714_vm6, %v5713_v28 }
0x11ef   :  { %5290 = vmatprep.subr.bf16.mxu1 %v5712_v21 }
0x11f2   :  { %5292 = vmatpush3.bf16.msra.mxu1 %v5906_v60 }
0x125a   :  { %v1825_v32 = vpop.f32.mrb[16].mxu0 }
0x125b   :  { %v1836_v19 = vadd.f32 %v1825_v32, %v5894_v53  ;;  %v4903_v20 = vpop.f32.mrb[17].mxu0  ;;  %v1829_v37 = vadd.f32 %v1825_v32, %v5929_v4 }
0x125d   :  { %1838 = vrot.lane.b32.xlu1 %v1836_v19, %s5715_s16  ;;  %v4427_v22 = vmul.f32 -1.442695, %v1829_v37 }
0x125f   :  { %5514 = vpow2.f32 %v4427_v22 }
0x1269   :  { %v5515_v23 = vpop.eup %5514 }
0x126a   :  { %v1833_v54 = vadd.f32 1.0, %v5515_v23 }
0x126c   :  { %5516 = vrcp.f32 %v1833_v54 }
0x1276   :  { %v5517_v60 = vpop.eup %5516 }
0x1277   :  { %v1848_v48 = vsub.f32 1.0, %v5517_v60  ;;  %v1855_v50 = vmul.f32 %v5517_v60, %v1754_v7 }
0x12c0   :  { %v1925_v25 = vpop.f32.mrb[20].mxu1 }
0x12c1   :  { %v1939_v63 = vadd.f32 %v1925_v25, %v5942_v16  ;;  %v4914_v27 = vpop.f32.mrb[21].mxu1  ;;  %v1930_v33 = vrot.slane %v1925_v25, 4 }
0x12c3   :  { %v1941_v15 = vrot.slane %v1939_v63, 4  ;;  %v1932_v34 = vadd.f32 %v1930_v33, %v5938_v12 }
0x12c5   :  { %1942 = vrot.lane.b32.xlu0 %v1941_v15, %s5715_s16  ;;  %v4429_v35 = vmul.f32 -1.442695, %v1932_v34 }
0x12c7   :  { %5518 = vpow2.f32 %v4429_v35 }
0x12cf   :  { %v1839_v30 = vpop.permute.xlu1 %1838 }
0x12d0   :  { %v1841_v31 = vmul.f32 %v5517_v60, %v1839_v30 }
0x12d1   :  { %v5519_v36 = vpop.eup %5518 }
0x12d2   :  { %1843 = vrot.lane.b32.xlu1 %v1841_v31, %s5715_s16  ;;  %v1936_v38 = vadd.f32 1.0, %v5519_v36 }
0x12d4   :  { %5520 = vrcp.f32 %v1936_v38 }
0x12de   :  { %v5521_v39 = vpop.eup %5520 }
0x12df   :  { %v1952_v57 = vsub.f32 1.0, %v5521_v39  ;;  %v1960_v59 = vmul.f32 %v5521_v39, %v1958_v55 }
0x1337   :  { %v1943_v40 = vpop.permute.xlu0 %1942 }
0x1338   :  { %v1945_v42 = vmul.f32 %v5521_v39, %v1943_v40  ;;  %v2202_v40 = vld [vmem:[%s6658_s6 + $0x20] sm:$0xff] }
0x133a   :  { %1947 = vrot.lane.b32.xlu0 %v1945_v42, %s5715_s16 }
0x1344   :  { %v1844_v1 = vpop.permute.xlu1 %1843 }
0x1345   :  { %v1846_v44 = vadd.f32 %v1844_v1, %v5929_v4 }
0x1347   :  { %5522 = vtanh.f32 %v1846_v44  ;;  %v4449_v44 = vld [vmem:[%s6658_s6 + $0x70] sm:$0xff] }
0x1351   :  { %v5523_v29 = vpop.eup %5522 }
0x1352   :  { %1850 = vrot.lane.b32.xlu1 %v5523_v29, %s5716_s3  ;;  %v4450_v29 = vld [vmem:[%s6658_s6 + $0x78] sm:$0xff] }
0x13ac   :  { %v1948_v45 = vpop.permute.xlu0 %1947 }
0x13ad   :  { %v1950_v46 = vadd.f32 %v1948_v45, %v5938_v12  ;;  %v2204_v45 = vld [vmem:[%s6658_s6 + $0x30] sm:$0xff] }
0x13af   :  { %5524 = vtanh.f32 %v1950_v46  ;;  %v5313_v46 = vpack.c.bf16 %v4450_v29, %v4449_v44 }
0x13b9   :  { %v5525_v47 = vpop.eup %5524 }
0x13ba   :  { %1954 = vrot.lane.b32.xlu0 %v5525_v47, %s5716_s3  ;;  %v2205_v47 = vld [vmem:[%s6658_s6 + $0x38] sm:$0xff] }
0x13c4   :  { %v1851_v49 = vpop.permute.xlu1 %1850 }
0x13c5   :  { %v1853_v51 = vmul.f32 %v1851_v49, %v1848_v48  ;;  %v5297_v48 = vpack.c.bf16 %v2205_v47, %v2204_v45  ;;  %v4443_v49 = vld [vmem:[%s6658_s6 + $0x40] sm:$0xff] }
0x13c7   :  { %v6192_v52 = vadd.f32 %v1855_v50, %v1853_v51  ;;  %v4444_v50 = vld [vmem:[%s6658_s6 + $0x48] sm:$0xff]  ;;  %v2198_v51 = vld [vmem:[%s6658_s6] sm:$0xff] }
0x13c8   :  { %v5317_v55 = vpack.c.bf16 %v4444_v50, %v4443_v49 }
0x13c9   :  { %1963 = vrot.lane.b32.xlu1 %v6192_v52, %s5716_s3 }
0x142c   :  { %v1955_v58 = vpop.permute.xlu0 %1954 }
0x142d   :  { %v1957_v61 = vmul.f32 %v1955_v58, %v1952_v57  ;;  %v2199_v57 = vld [vmem:[%s6658_s6 + $0x8] sm:$0xff] }
0x142f   :  { %v6197_v62 = vadd.f32 %v1960_v59, %v1957_v61  ;;  %v5301_v59 = vpack.c.bf16 %v2199_v57, %v2198_v51 }
0x1431   :  { %v2077_v0 = vrot.slane %v6197_v62, 4 }
0x1433   :  { %2078 = vrot.lane.b32.xlu0 %v2077_v0, %s5716_s3 }
0x143b   :  { %v1964_v2 = vpop.permute.xlu1 %1963 }
0x143c   :  { %1966 = vst.msk [vmem:[#allocation2 + $0x18] sm:$0xf] %vm655_vm8, %v1964_v2  ;;  %4924 = vmatmul.mubr.msk.f32.vlgmr.msra.gmra.mrb[18].mxu0 %vm226_vm7, %v1964_v2 }
0x14a5   :  { %v2079_v3 = vpop.permute.xlu0 %2078 }
0x14a6   :  { %4935 = vmatmul.mubr.msk.f32.vlgmr.msra.gmra.mrb[22].mxu1 %vm226_vm7, %v2079_v3 }
0x150f   :  { %v2040_v5 = vpop.f32.mrb[18].mxu0 }
0x1510   :  { %v2054_v6 = vadd.f32 %v2040_v5, %v5894_v53  ;;  %v4925_v7 = vpop.f32.mrb[19].mxu0  ;;  %v2045_v10 = vrot.slane %v2040_v5, 4 }
0x1511   :  { %v4463_v7 = vld [vmem:[%s6661_s9] ss:$0 sm:$0xff] }
0x1512   :  { %v2056_v9 = vrot.slane %v2054_v6, 4  ;;  %v2047_v11 = vadd.f32 %v2045_v10, %v5929_v4 }
0x1514   :  { %2057 = vrot.lane.b32.xlu1 %v2056_v9, %s5715_s16  ;;  %v4431_v13 = vmul.f32 -1.442695, %v2047_v11  ;;  %v4446_v11 = vld [vmem:[%s6658_s6 + $0x58] sm:$0xff] }
0x1516   :  { %5526 = vpow2.f32 %v4431_v13  ;;  %v2200_v13 = vld [vmem:[%s6658_s6 + $0x10] sm:$0xff] }
0x1520   :  { %v5527_v14 = vpop.eup %5526 }
0x1521   :  { %v2051_v17 = vadd.f32 1.0, %v5527_v14  ;;  %v2201_v14 = vld [vmem:[%s6658_s6 + $0x18] sm:$0xff] }
0x1523   :  { %5528 = vrcp.f32 %v2051_v17 }
0x152d   :  { %v5529_v20 = vpop.eup %5528 }
0x152e   :  { %v2067_v36 = vsub.f32 1.0, %v5529_v20 }
0x1579   :  { %v2148_v18 = vpop.f32.mrb[22].mxu1 }
0x157a   :  { %v2159_v32 = vadd.f32 %v2148_v18, %v5942_v16  ;;  %v4936_v19 = vpop.f32.mrb[23].mxu1  ;;  %v2152_v22 = vadd.f32 %v2148_v18, %v5938_v12 }
0x157b   :  { %v5305_v19 = vpack.c.bf16 %v2201_v14, %v2200_v13 }
0x157c   :  { %2161 = vrot.lane.b32.xlu0 %v2159_v32, %s5715_s16  ;;  %v4433_v23 = vmul.f32 -1.442695, %v2152_v22 }
0x157e   :  { %5530 = vpow2.f32 %v4433_v23 }
0x1586   :  { %v2058_v53 = vpop.permute.xlu1 %2057 }
0x1587   :  { %v2060_v37 = vmul.f32 %v5529_v20, %v2058_v53  ;;  %v2607_v53 = vld [vmem:[#allocation7 + $0x20] sm:$0xff] }
0x1588   :  { %v5531_v25 = vpop.eup %5530 }
0x1589   :  { %2062 = vrot.lane.b32.xlu1 %v2060_v37, %s5715_s16  ;;  %v2156_v54 = vadd.f32 1.0, %v5531_v25  ;;  %v2608_v37 = vld [vmem:[#allocation7 + $0x28] sm:$0xff]  ;;  %v2602_v25 = vld [vmem:[#allocation7] sm:$0xff] }
0x158b   :  { %5532 = vrcp.f32 %v2156_v54  ;;  %v2603_v54 = vld [vmem:[#allocation7 + $0x8] sm:$0xff] }
0x1595   :  { %v5533_v63 = vpop.eup %5532 }
0x1596   :  { %v2178_v61 = vmul.f32 %v5533_v63, %v2077_v0 }
0x15ee   :  { %v2162_v27 = vpop.permute.xlu0 %2161 }
0x15ef   :  { %v2164_v15 = vmul.f32 %v5533_v63, %v2162_v27  ;;  %v6316_v27 = vpack.c.bf16 %v2608_v37, %v2607_v53 }
0x15f1   :  { %2166 = vrot.lane.b32.xlu0 %v2164_v15, %s5715_s16  ;;  %v6318_v15 = vpack.c.bf16 %v2603_v54, %v2602_v25 }
0x15fb   :  { %v2063_v16 = vpop.permute.xlu1 %2062 }
0x15fc   :  { %v2065_v60 = vadd.f32 %v2063_v16, %v5929_v4  ;;  %v2073_v4 = vrot.slane %v6192_v52, 4  ;;  %v2171_v52 = vsub.f32 1.0, %v5533_v63  ;;  %v2609_v16 = vld [vmem:[#allocation7 + $0x30] sm:$0xff] }
0x15fe   :  { %5534 = vtanh.f32 %v2065_v60  ;;  %v2075_v39 = vmul.f32 %v5529_v20, %v2073_v4  ;;  %v2610_v60 = vld [vmem:[#allocation7 + $0x38] sm:$0xff] }
0x1608   :  { %v5535_v30 = vpop.eup %5534 }
0x1609   :  { %2069 = vrot.lane.b32.xlu1 %v5535_v30, %s5716_s3 }
0x1663   :  { %v2167_v31 = vpop.permute.xlu0 %2166 }
0x1664   :  { %v2169_v33 = vadd.f32 %v2167_v31, %v5938_v12  ;;  %v2604_v31 = vld [vmem:[#allocation7 + $0x10] sm:$0xff] }
0x1666   :  { %5536 = vtanh.f32 %v2169_v33  ;;  %v2605_v33 = vld [vmem:[#allocation7 + $0x18] sm:$0xff] }
0x1670   :  { %v5537_v34 = vpop.eup %5536 }
0x1671   :  { %2173 = vrot.lane.b32.xlu0 %v5537_v34, %s5716_s3 }
0x1675   :  { %1968 = vrot.lane.b32.xlu0 %v6197_v62, %s5716_s3 }
0x1679   :  { %1532 = vrot.lane.b32.xlu0 %v6119_v24, %s5716_s3  ;;  %v4447_v24 = vld [vmem:[%s6658_s6 + $0x60] sm:$0xff] }
0x167b   :  { %v2070_v35 = vpop.permute.xlu1 %2069 }
0x167c   :  { %v2072_v38 = vmul.f32 %v2070_v35, %v2067_v36  ;;  %v6328_v35 = vpack.c.bf16 %v2610_v60, %v2609_v16  ;;  %v6330_v36 = vpack.c.bf16 %v2605_v33, %v2604_v31 }
0x167d   :  { %658 = vrot.lane.b32.xlu0 %v5959_v56, %s5716_s3  ;;  %v4448_v56 = vld [vmem:[%s6658_s6 + $0x68] sm:$0xff] }
0x167e   :  { %v6227_v12 = vadd.f32 %v2075_v39, %v2072_v38  ;;  %v5309_v42 = vpack.c.bf16 %v4448_v56, %v4447_v24  ;;  %v4442_v39 = vld [vmem:[%s6659_s7] ss:$0 sm:$0xff]  ;;  %v4460_v24 = vld [vmem:[%s6659_s7 + $0x1] ss:$0 sm:$0xff] }
0x1680   :  { %5310 = vmatprep.subr.bf16.mxu1 %v5309_v42 }
0x1681   :  { %1309 = vrot.lane.b32.xlu0 %v6073_v26, %s5716_s3  ;;  %v2203_v26 = vld [vmem:[%s6658_s6 + $0x28] sm:$0xff]  ;;  %5312 = vmatpush3.bf16.msra.mxu1 %v5309_v42 }
0x1682   :  { %v5293_v1 = vpack.c.bf16 %v2203_v26, %v2202_v40  ;;  %5314 = vmatprep.subr.bf16.mxu1 %v5313_v46 }
0x1684   :  { %5294 = vmatprep.subr.bf16.mxu0 %v5293_v1 }
0x1685   :  { %2181 = vrot.lane.b32.xlu0 %v6227_v12, %s5716_s3  ;;  %5296 = vmatpush3.bf16.msra.mxu0 %v5293_v1 }
0x1686   :  { %5298 = vmatprep.subr.bf16.mxu0 %v5297_v48  ;;  %5316 = vmatpush3.bf16.msra.mxu1 %v5313_v46 }
0x1687   :  { %5318 = vmatprep.subr.bf16.mxu1 %v5317_v55 }
0x1689   :  { %5300 = vmatpush3.bf16.msra.mxu0 %v5297_v48  ;;  %2696 = vrot.lane.b32.xlu0 %v4463_v7, %s5715_s16 }
0x168a   :  { %5302 = vmatprep.subr.bf16.mxu0 %v5301_v59 }
0x16e3   :  { %v2174_v58 = vpop.permute.xlu0 %2173 }
0x16e4   :  { %v2176_v2 = vmul.f32 %v2174_v58, %v2171_v52 }
0x16e6   :  { %v6269_v3 = vadd.f32 %v2178_v61, %v2176_v2 }
0x16e7   :  { %v1969_v5 = vpop.permute.xlu0 %1968 }
0x16e8   :  { %1971 = vst.msk [vmem:[#allocation2 + $0x20] sm:$0xf0] %vm662_vm9, %v1969_v5  ;;  %2186 = vrot.lane.b32.xlu1 %v6269_v3, %s5716_s3 }
0x16eb   :  { %v1533_v6 = vpop.permute.xlu0 %1532 }
0x16ec   :  { %1535 = vst.msk [vmem:[#allocation2 + $0x28] sm:$0xf0] %vm662_vm9, %v1533_v6  ;;  %1096 = vrot.lane.b32.xlu1 %v6039_v41, %s5716_s3  ;;  %v4465_v41 = vld [vmem:[%s6661_s9 + $0x1] ss:$0 sm:$0xff] }
0x16ef   :  { %v659_v62 = vpop.permute.xlu0 %658 }
0x16f0   :  { %663 = vst.msk [vmem:[#allocation2 + $0x38] sm:$0xf0] %vm662_vm9, %v659_v62  ;;  %873 = vrot.lane.b32.xlu1 %v5993_v43, %s5716_s3 }
0x16f3   :  { %v1310_v0 = vpop.permute.xlu0 %1309  ;;  %v2195_v20 = vld [vmem:[#allocation2 + $0x28] sm:$0xff] }
0x16f4   :  { %1312 = vst.msk [vmem:[#allocation2 + $0x8] sm:$0xf0] %vm662_vm9, %v1310_v0  ;;  %1745 = vrot.lane.b32.xlu1 %v6153_v8, %s5716_s3  ;;  %v4445_v8 = vld [vmem:[%s6658_s6 + $0x50] sm:$0xff] }
0x16f5   :  { %v5321_v32 = vpack.c.bf16 %v4446_v11, %v4445_v8 }
0x16f7   :  { %v2182_v9 = vpop.permute.xlu0 %2181  ;;  %v2197_v63 = vld [vmem:[#allocation2 + $0x38] sm:$0xff] }
0x16f8   :  { %2184 = vst.msk [vmem:[#allocation2 + $0x18] sm:$0xf0] %vm662_vm9, %v2182_v9  ;;  %2804 = vrot.lane.b32.xlu1 %v4465_v41, %s5715_s16 }
0x16fb   :  { %v2191_v34 = vld [vmem:[#allocation2 + $0x8] sm:$0xff] }
0x16ff   :  { %v2193_v38 = vld [vmem:[#allocation2 + $0x18] sm:$0xff] }
0x175a   :  { %v2187_v43 = vpop.permute.xlu1 %2186 }
0x175b   :  { %2189 = vst.msk [vmem:[#allocation2 + $0x20] sm:$0xf] %vm655_vm8, %v2187_v43 }
0x175e   :  { %v1097_v10 = vpop.permute.xlu1 %1096 }
0x175f   :  { %1099 = vst.msk [vmem:[#allocation2 + $0x30] sm:$0xf0] %vm662_vm9, %v1097_v10 }
0x1762   :  { %v874_v17 = vpop.permute.xlu1 %873  ;;  %v2194_v18 = vld [vmem:[#allocation2 + $0x20] sm:$0xff] }
0x1763   :  { %876 = vst.msk [vmem:[#allocation2] sm:$0xf0] %vm662_vm9, %v874_v17  ;;  %4945 = vmatprep.mubr.msk.f32.mxu0 %vm226_vm7, %v2194_v18  ;;  %4973 = vmatprep.mubr.msk.f32.mxu1 %vm226_vm7, %v2194_v18 }
0x1764   :  { %4946 = vmatmul.mubr.msk.f32.vlgmr.msra.gmra.mrb[20].mxu0 %vm226_vm7, %v2195_v20  ;;  %4974 = vmatmul.mubr.msk.f32.vlgmr.msra.gmra.mrb[24].mxu1 %vm226_vm7, %v2195_v20 }
0x1765   :  { %5320 = vmatpush3.bf16.msra.mxu1 %v5317_v55  ;;  %5304 = vmatpush3.bf16.msra.mxu0 %v5301_v59  ;;  %v6380_v55 = vpop.permute.xlu0 %2696 }
0x1766   :  { %v1746_v22 = vpop.permute.xlu1 %1745  ;;  %v2196_v23 = vld [vmem:[#allocation2 + $0x30] sm:$0xff]  ;;  %5322 = vmatprep.subr.bf16.mxu1 %v5321_v32  ;;  %5306 = vmatprep.subr.bf16.mxu0 %v5305_v19 }
0x1767   :  { %1748 = vst.msk [vmem:[#allocation2 + $0x10] sm:$0xf0] %vm662_vm9, %v1746_v22  ;;  %4948 = vmatprep.mubr.msk.f32.mxu0 %vm226_vm7, %v2196_v23  ;;  %4976 = vmatprep.mubr.msk.f32.mxu1 %vm226_vm7, %v2196_v23 }
0x1768   :  { %4949 = vmatmul.mubr.msk.f32.gmra.mrb[22].mxu0 %vm226_vm7, %v2197_v63  ;;  %4977 = vmatmul.mubr.msk.f32.gmra.mrb[26].mxu1 %vm226_vm7, %v2197_v63 }
0x1769   :  { %5324 = vmatpush3.bf16.msra.mxu1 %v5321_v32  ;;  %5308 = vmatpush3.bf16.msra.mxu0 %v5305_v19 }
0x176a   :  { %v2190_v30 = vld [vmem:[#allocation2] sm:$0xff]  ;;  %5331 = vmatprep.subr.bf16.mxu1 %v5712_v21  ;;  %5325 = vmatprep.subr.bf16.mxu0 %v5712_v21  ;;  %v6378_v52 = vpop.permute.xlu1 %2804 }
0x176b   :  { %4959 = vmatprep.mubr.msk.f32.mxu0 %vm226_vm7, %v2190_v30  ;;  %4987 = vmatprep.mubr.msk.f32.mxu1 %vm226_vm7, %v2190_v30 }
0x176c   :  { %4960 = vmatmul.mubr.msk.f32.vlgmr.msra.gmra.mrb[20].mxu0 %vm226_vm7, %v2191_v34  ;;  %4988 = vmatmul.mubr.msk.f32.vlgmr.msra.gmra.mrb[24].mxu1 %vm226_vm7, %v2191_v34 }
0x176d   :  { %5333 = vmatpush3.bf16.msra.mxu1 %v6316_v27  ;;  %5327 = vmatpush3.bf16.msra.mxu0 %v6318_v15 }
0x176e   :  { %v2192_v4 = vld [vmem:[#allocation2 + $0x10] sm:$0xff]  ;;  %5334 = vmatprep.subr.bf16.mxu1 %v5712_v21  ;;  %5328 = vmatprep.subr.bf16.mxu0 %v5712_v21 }
0x176f   :  { %4962 = vmatprep.mubr.msk.f32.mxu0 %vm226_vm7, %v2192_v4  ;;  %4990 = vmatprep.mubr.msk.f32.mxu1 %vm226_vm7, %v2192_v4 }
0x1770   :  { %4963 = vmatmul.mubr.msk.f32.gmra.mrb[22].mxu0 %vm226_vm7, %v2193_v38  ;;  %4991 = vmatmul.mubr.msk.f32.gmra.mrb[26].mxu1 %vm226_vm7, %v2193_v38 }
0x1771   :  { %5336 = vmatpush3.bf16.msra.mxu1 %v6328_v35  ;;  %5330 = vmatpush3.bf16.msra.mxu0 %v6330_v36 }
0x1772   :  { %5001 = vmatprep.mubr.msk.f32.mxu0 %vm5714_vm6, %v5713_v28  ;;  %5012 = vmatprep.mubr.msk.f32.mxu1 %vm5714_vm6, %v5713_v28 }
0x1773   :  { %5337 = vmatprep.subr.bf16.mxu0 %v5712_v21  ;;  %5343 = vmatprep.subr.bf16.mxu1 %v5712_v21 }
0x1774   :  { %5002 = vmatmul.mubr.f32.vlgmr.msra.gmra.mrb[24].mxu0 %v5713_v28  ;;  %5013 = vmatmul.mubr.f32.vlgmr.msra.gmra.mrb[28].mxu1 %v5713_v28 }
0x1775   :  { %5339 = vmatpush3.bf16.msra.mxu0 %v6318_v15  ;;  %5345 = vmatpush3.bf16.msra.mxu1 %v6316_v27 }
0x1776   :  { %5340 = vmatprep.subr.bf16.mxu0 %v5712_v21  ;;  %5023 = vmatprep.mubr.msk.f32.mxu0 %vm5714_vm6, %v5713_v28 }
0x1777   :  { %5346 = vmatprep.subr.bf16.mxu1 %v5712_v21  ;;  %5034 = vmatprep.mubr.msk.f32.mxu1 %vm5714_vm6, %v5713_v28 }
0x1779   :  { %5342 = vmatpush3.bf16.msra.mxu0 %v6330_v36  ;;  %5348 = vmatpush3.bf16.msra.mxu1 %v6328_v35 }
0x177a   :  { %5349 = vmatprep.subr.bf16.mxu0 %v5712_v21  ;;  %5355 = vmatprep.subr.bf16.mxu1 %v5712_v21 }
0x183f   :  { %v4961_v56 = vpop.f32.mrb[20].mxu0  ;;  %v4989_v40 = vpop.f32.mrb[24].mxu1 }
0x1840   :  { %v6366_v42 = vadd.f32 %v4961_v56, %v4442_v39  ;;  %v6368_v26 = vadd.f32 %v4989_v40, %v4460_v24  ;;  %v2381_v1 = vpop.f32.mrb[21].mxu0  ;;  %v2571_v44 = vpop.f32.mrb[25].mxu1 }
0x1841   :  { %v6370_v29 = vadd.f32 %v4460_v24, %v2571_v44  ;;  %v6386_v62 = vadd.f32 %v4442_v39, %v2381_v1 }
0x1843   :  { %v4964_v45 = vpop.f32.mrb[22].mxu0  ;;  %v4992_v46 = vpop.f32.mrb[26].mxu1 }
0x1844   :  { %v6372_v47 = vadd.f32 %v4964_v45, %v4442_v39  ;;  %v2391_v48 = vpop.f32.mrb[23].mxu0  ;;  %v2581_v49 = vpop.f32.mrb[27].mxu1  ;;  %v6388_v7 = vadd.f32 %v4992_v46, %v4460_v24 }
0x1845   :  { %v6374_v50 = vadd.f32 %v4442_v39, %v2391_v48  ;;  %v6376_v51 = vadd.f32 %v4460_v24, %v2581_v49 }
0x1847   :  { %v2680_v57 = vpop.f32.mrb[24].mxu0  ;;  %v2785_v58 = vpop.f32.mrb[28].mxu1 }
0x1848   :  { %v2807_v59 = vadd.f32 %v6378_v52, %v2785_v58  ;;  %v5014_v61 = vpop.f32.mrb[29].mxu1  ;;  %v5003_v2 = vpop.f32.mrb[25].mxu0  ;;  %v2699_v5 = vadd.f32 %v6380_v55, %v2680_v57  ;;  %v2790_v0 = vrot.slane %v2785_v58, 4  ;;  %v2684_v41 = vadd.f32 %v2680_v57, %v6386_v62 }
0x184a   :  { %v2809_v6 = vrot.slane %v2807_v59, 4  ;;  %2701 = vrot.lane.b32.xlu1 %v2699_v5, %s5715_s16  ;;  %v2792_v9 = vadd.f32 %v2790_v0, %v6388_v7  ;;  %v4462_v43 = vmul.f32 -1.442695, %v2684_v41 }
0x184c   :  { %2810 = vrot.lane.b32.xlu0 %v2809_v6, %s5715_s16  ;;  %v4464_v10 = vmul.f32 -1.442695, %v2792_v9  ;;  %5538 = vpow2.f32 %v4462_v43 }
0x184e   :  { %5540 = vpow2.f32 %v4464_v10 }
0x1856   :  { %v5539_v8 = vpop.eup %5538 }
0x1857   :  { %v2688_v13 = vadd.f32 1.0, %v5539_v8 }
0x1858   :  { %v5541_v11 = vpop.eup %5540 }
0x1859   :  { %v2796_v14 = vadd.f32 1.0, %v5541_v11  ;;  %5542 = vrcp.f32 %v2688_v13 }
0x185b   :  { %5544 = vrcp.f32 %v2796_v14 }
0x1863   :  { %v5543_v17 = vpop.eup %5542 }
0x1864   :  { %v2711_v16 = vsub.f32 1.0, %v5543_v17  ;;  %v2717_v30 = vmul.f32 0.0, %v5543_v17 }
0x1865   :  { %v5545_v19 = vpop.eup %5544 }
0x1866   :  { %v2820_v33 = vsub.f32 1.0, %v5545_v19  ;;  %v2826_v38 = vmul.f32 0.0, %v5545_v19 }
0x18bc   :  { %v2702_v18 = vpop.permute.xlu1 %2701 }
0x18bd   :  { %v2704_v32 = vmul.f32 %v5543_v17, %v2702_v18 }
0x18be   :  { %v2811_v20 = vpop.permute.xlu0 %2810 }
0x18bf   :  { %v2813_v53 = vmul.f32 %v5545_v19, %v2811_v20  ;;  %2706 = vrot.lane.b32.xlu1 %v2704_v32, %s5715_s16 }
0x18c1   :  { %2815 = vrot.lane.b32.xlu0 %v2813_v53, %s5715_s16 }
0x1931   :  { %v2707_v37 = vpop.permute.xlu1 %2706 }
0x1932   :  { %v2709_v22 = vadd.f32 %v2707_v37, %v6386_v62 }
0x1933   :  { %v2816_v23 = vpop.permute.xlu0 %2815 }
0x1934   :  { %5546 = vtanh.f32 %v2709_v22  ;;  %v2818_v25 = vadd.f32 %v2816_v23, %v6388_v7 }
0x1936   :  { %5548 = vtanh.f32 %v2818_v25 }
0x193e   :  { %v5547_v54 = vpop.eup %5546 }
0x193f   :  { %2713 = vrot.lane.b32.xlu1 %v5547_v54, %s5716_s3 }
0x1940   :  { %v5549_v63 = vpop.eup %5548 }
0x1941   :  { %2822 = vrot.lane.b32.xlu0 %v5549_v63, %s5716_s3 }
0x19b1   :  { %v2714_v60 = vpop.permute.xlu1 %2713 }
0x19b2   :  { %v2716_v31 = vmul.f32 %v2714_v60, %v2711_v16 }
0x19b3   :  { %v2823_v34 = vpop.permute.xlu0 %2822 }
0x19b4   :  { %v6398_v4 = vadd.f32 %v2717_v30, %v2716_v31  ;;  %v2825_v39 = vmul.f32 %v2823_v34, %v2820_v33 }
0x19b6   :  { %v6400_v24 = vadd.f32 %v2826_v38, %v2825_v39  ;;  %2829 = vrot.lane.b32.xlu1 %v6398_v4, %s5716_s3  ;;  %v2932_v22 = vrot.slane %v6398_v4, 4 }
0x19b8   :  { %v2937_v56 = vrot.slane %v6400_v24, 4 }
0x19ba   :  { %2938 = vrot.lane.b32.xlu0 %v2937_v56, %s5716_s3 }
0x1a28   :  { %v2830_v40 = vpop.permute.xlu1 %2829 }
0x1a29   :  { %5024 = vmatmul.mubr.msk.f32.vlgmr.msra.gmra.mrb[26].mxu0 %vm226_vm7, %v2830_v40 }
0x1a2a   :  { %5351 = vmatpush3.bf16.msra.mxu0 %v6318_v15  ;;  %5045 = vmatprep.mubr.msk.f32.mxu0 %vm5714_vm6, %v5713_v28 }
0x1a2b   :  { %5352 = vmatprep.subr.bf16.mxu0 %v5712_v21 }
0x1a2c   :  { %v2939_v1 = vpop.permute.xlu0 %2938 }
0x1a2d   :  { %5035 = vmatmul.mubr.msk.f32.vlgmr.msra.gmra.mrb[30].mxu1 %vm226_vm7, %v2939_v1 }
0x1a2e   :  { %5357 = vmatpush3.bf16.msra.mxu1 %v6316_v27  ;;  %5354 = vmatpush3.bf16.msra.mxu0 %v6330_v36 }
0x1a2f   :  { %5358 = vmatprep.subr.bf16.mxu1 %v5712_v21  ;;  %5056 = vmatprep.mubr.msk.f32.mxu1 %vm5714_vm6, %v5713_v28 }
0x1a30   :  { %5361 = vmatprep.subr.bf16.mxu0 %v5712_v21 }
0x1a32   :  { %5360 = vmatpush3.bf16.msra.mxu1 %v6328_v35 }
0x1a33   :  { %5367 = vmatprep.subr.bf16.mxu1 %v5712_v21 }
0x1afc   :  { %v2899_v44 = vpop.f32.mrb[26].mxu0 }
0x1afd   :  { %v2913_v45 = vadd.f32 %v2899_v44, %v6380_v55  ;;  %v5025_v46 = vpop.f32.mrb[27].mxu0  ;;  %v2904_v59 = vrot.slane %v2899_v44, 4 }
0x1aff   :  { %v2915_v48 = vrot.slane %v2913_v45, 4  ;;  %v2906_v61 = vadd.f32 %v2904_v59, %v6386_v62 }
0x1b00   :  { %v3008_v49 = vpop.f32.mrb[30].mxu1 }
0x1b01   :  { %v3019_v57 = vadd.f32 %v3008_v49, %v6378_v52  ;;  %2916 = vrot.lane.b32.xlu1 %v2915_v48, %s5715_s16  ;;  %v5036_v58 = vpop.f32.mrb[31].mxu1  ;;  %v3012_v2 = vadd.f32 %v3008_v49, %v6388_v7  ;;  %v4467_v5 = vmul.f32 -1.442695, %v2906_v61 }
0x1b03   :  { %3021 = vrot.lane.b32.xlu0 %v3019_v57, %s5715_s16  ;;  %v4469_v6 = vmul.f32 -1.442695, %v3012_v2  ;;  %5550 = vpow2.f32 %v4467_v5 }
0x1b05   :  { %5552 = vpow2.f32 %v4469_v6 }
0x1b0d   :  { %v5551_v0 = vpop.eup %5550 }
0x1b0e   :  { %v2910_v9 = vadd.f32 1.0, %v5551_v0 }
0x1b0f   :  { %v5553_v41 = vpop.eup %5552 }
0x1b10   :  { %v3016_v43 = vadd.f32 1.0, %v5553_v41  ;;  %5554 = vrcp.f32 %v2910_v9 }
0x1b12   :  { %5556 = vrcp.f32 %v3016_v43 }
0x1b1a   :  { %v5555_v10 = vpop.eup %5554 }
0x1b1b   :  { %v2926_v23 = vsub.f32 1.0, %v5555_v10  ;;  %v2934_v63 = vmul.f32 %v5555_v10, %v2932_v22 }
0x1b1c   :  { %v5557_v13 = vpop.eup %5556 }
0x1b1d   :  { %v3031_v16 = vsub.f32 1.0, %v5557_v13 }
0x1b73   :  { %v2917_v8 = vpop.permute.xlu1 %2916 }
0x1b74   :  { %v2919_v11 = vmul.f32 %v5555_v10, %v2917_v8 }
0x1b75   :  { %v3022_v14 = vpop.permute.xlu0 %3021 }
0x1b76   :  { %v3024_v17 = vmul.f32 %v5557_v13, %v3022_v14  ;;  %2921 = vrot.lane.b32.xlu1 %v2919_v11, %s5715_s16 }
0x1b78   :  { %3026 = vrot.lane.b32.xlu0 %v3024_v17, %s5715_s16 }
0x1be8   :  { %v2922_v18 = vpop.permute.xlu1 %2921 }
0x1be9   :  { %v2924_v32 = vadd.f32 %v2922_v18, %v6386_v62 }
0x1bea   :  { %v3027_v19 = vpop.permute.xlu0 %3026 }
0x1beb   :  { %5558 = vtanh.f32 %v2924_v32  ;;  %v3029_v20 = vadd.f32 %v3027_v19, %v6388_v7  ;;  %v3038_v7 = vmul.f32 %v5557_v13, %v2937_v56 }
0x1bed   :  { %5560 = vtanh.f32 %v3029_v20 }
0x1bf5   :  { %v5559_v53 = vpop.eup %5558 }
0x1bf6   :  { %2928 = vrot.lane.b32.xlu1 %v5559_v53, %s5716_s3 }
0x1bf7   :  { %v5561_v37 = vpop.eup %5560 }
0x1bf8   :  { %3033 = vrot.lane.b32.xlu0 %v5561_v37, %s5716_s3 }
0x1c68   :  { %v2929_v25 = vpop.permute.xlu1 %2928 }
0x1c69   :  { %v2931_v54 = vmul.f32 %v2929_v25, %v2926_v23 }
0x1c6a   :  { %v3034_v60 = vpop.permute.xlu0 %3033 }
0x1c6b   :  { %v6435_v62 = vadd.f32 %v2934_v63, %v2931_v54  ;;  %v3036_v30 = vmul.f32 %v3034_v60, %v3031_v16 }
0x1c6d   :  { %v3041_v31 = vrot.slane %v6435_v62, 4  ;;  %v6440_v33 = vadd.f32 %v3038_v7, %v3036_v30 }
0x1c6f   :  { %3042 = vrot.lane.b32.xlu0 %v3041_v31, %s5716_s3  ;;  %3145 = vrot.lane.b32.xlu1 %v6440_v33, %s5716_s3  ;;  %v3248_v19 = vrot.slane %v6440_v33, 4 }
0x1ce1   :  { %v3146_v34 = vpop.permute.xlu1 %3145  ;;  %v3043_v4 = vpop.permute.xlu0 %3042 }
0x1ce2   :  { %5046 = vmatmul.mubr.msk.f32.vlgmr.msra.gmra.mrb[28].mxu0 %vm226_vm7, %v3043_v4  ;;  %5057 = vmatmul.mubr.msk.f32.vlgmr.msra.gmra.mrb[32].mxu1 %vm226_vm7, %v3146_v34 }
0x1ce3   :  { %5363 = vmatpush3.bf16.msra.mxu0 %v6318_v15  ;;  %5369 = vmatpush3.bf16.msra.mxu1 %v6316_v27 }
0x1ce4   :  { %5364 = vmatprep.subr.bf16.mxu0 %v5712_v21  ;;  %5067 = vmatprep.mubr.msk.f32.mxu0 %vm5714_vm6, %v5713_v28 }
0x1ce5   :  { %5370 = vmatprep.subr.bf16.mxu1 %v5712_v21  ;;  %5078 = vmatprep.mubr.msk.f32.mxu1 %vm5714_vm6, %v5713_v28 }
0x1ce7   :  { %5366 = vmatpush3.bf16.msra.mxu0 %v6330_v36  ;;  %5372 = vmatpush3.bf16.msra.mxu1 %v6328_v35 }
0x1ce8   :  { %5373 = vmatprep.subr.bf16.mxu0 %v5712_v21  ;;  %5379 = vmatprep.subr.bf16.mxu1 %v5712_v21 }
0x1db5   :  { %v3112_v38 = vpop.f32.mrb[28].mxu0  ;;  %v3215_v39 = vpop.f32.mrb[32].mxu1 }
0x1db6   :  { %v3123_v24 = vadd.f32 %v3112_v38, %v6380_v55  ;;  %v3229_v56 = vadd.f32 %v3215_v39, %v6378_v52  ;;  %v5047_v40 = vpop.f32.mrb[29].mxu0  ;;  %v5058_v1 = vpop.f32.mrb[33].mxu1  ;;  %v3220_v45 = vrot.slane %v3215_v39, 4  ;;  %v3116_v46 = vadd.f32 %v3112_v38, %v6366_v42 }
0x1db8   :  { %v3231_v44 = vrot.slane %v3229_v56, 4  ;;  %3125 = vrot.lane.b32.xlu1 %v3123_v24, %s5715_s16  ;;  %v3222_v48 = vadd.f32 %v3220_v45, %v6376_v51  ;;  %v4471_v49 = vmul.f32 -1.442695, %v3116_v46 }
0x1dba   :  { %3232 = vrot.lane.b32.xlu0 %v3231_v44, %s5715_s16  ;;  %v4473_v57 = vmul.f32 -1.442695, %v3222_v48  ;;  %5562 = vpow2.f32 %v4471_v49 }
0x1dbc   :  { %5564 = vpow2.f32 %v4473_v57 }
0x1dc4   :  { %v5563_v58 = vpop.eup %5562 }
0x1dc5   :  { %v3120_v61 = vadd.f32 1.0, %v5563_v58 }
0x1dc6   :  { %v5565_v59 = vpop.eup %5564 }
0x1dc7   :  { %v3226_v2 = vadd.f32 1.0, %v5565_v59  ;;  %5566 = vrcp.f32 %v3120_v61 }
0x1dc9   :  { %5568 = vrcp.f32 %v3226_v2 }
0x1dd1   :  { %v5567_v5 = vpop.eup %5566 }
0x1dd2   :  { %v3135_v18 = vsub.f32 1.0, %v5567_v5  ;;  %v3142_v20 = vmul.f32 %v5567_v5, %v3041_v31 }
0x1dd3   :  { %v5569_v41 = vpop.eup %5568 }
0x1dd4   :  { %v3242_v37 = vsub.f32 1.0, %v5569_v41  ;;  %v3250_v25 = vmul.f32 %v5569_v41, %v3248_v19 }
0x1e2a   :  { %v3126_v6 = vpop.permute.xlu1 %3125 }
0x1e2b   :  { %v3128_v0 = vmul.f32 %v5567_v5, %v3126_v6 }
0x1e2c   :  { %v3233_v9 = vpop.permute.xlu0 %3232 }
0x1e2d   :  { %v3235_v43 = vmul.f32 %v5569_v41, %v3233_v9  ;;  %3130 = vrot.lane.b32.xlu1 %v3128_v0, %s5715_s16 }
0x1e2f   :  { %3237 = vrot.lane.b32.xlu0 %v3235_v43, %s5715_s16 }
0x1e9f   :  { %v3131_v10 = vpop.permute.xlu1 %3130 }
0x1ea0   :  { %v3133_v8 = vadd.f32 %v3131_v10, %v6366_v42 }
0x1ea1   :  { %v3238_v11 = vpop.permute.xlu0 %3237 }
0x1ea2   :  { %5570 = vtanh.f32 %v3133_v8  ;;  %v3240_v13 = vadd.f32 %v3238_v11, %v6376_v51 }
0x1ea4   :  { %5572 = vtanh.f32 %v3240_v13 }
0x1eac   :  { %v5571_v14 = vpop.eup %5570 }
0x1ead   :  { %3137 = vrot.lane.b32.xlu1 %v5571_v14, %s5716_s3 }
0x1eae   :  { %v5573_v17 = vpop.eup %5572 }
0x1eaf   :  { %3244 = vrot.lane.b32.xlu0 %v5573_v17, %s5716_s3 }
0x1f1f   :  { %v3138_v32 = vpop.permute.xlu1 %3137 }
0x1f20   :  { %v3140_v53 = vmul.f32 %v3138_v32, %v3135_v18 }
0x1f21   :  { %v3245_v22 = vpop.permute.xlu0 %3244 }
0x1f22   :  { %v6472_v23 = vadd.f32 %v3142_v20, %v3140_v53  ;;  %v3247_v54 = vmul.f32 %v3245_v22, %v3242_v37 }
0x1f24   :  { %v6474_v63 = vadd.f32 %v3250_v25, %v3247_v54  ;;  %3253 = vrot.lane.b32.xlu1 %v6472_v23, %s5716_s3  ;;  %v3356_v10 = vrot.slane %v6472_v23, 4 }
0x1f26   :  { %v3361_v16 = vrot.slane %v6474_v63, 4 }
0x1f28   :  { %3362 = vrot.lane.b32.xlu0 %v3361_v16, %s5716_s3 }
0x1f96   :  { %v3254_v60 = vpop.permute.xlu1 %3253 }
0x1f97   :  { %5068 = vmatmul.mubr.msk.f32.vlgmr.msra.gmra.mrb[30].mxu0 %vm226_vm7, %v3254_v60 }
0x1f98   :  { %5375 = vmatpush3.bf16.msra.mxu0 %v6318_v15  ;;  %5089 = vmatprep.mubr.msk.f32.mxu0 %vm5714_vm6, %v5713_v28 }
0x1f99   :  { %5376 = vmatprep.subr.bf16.mxu0 %v5712_v21 }
0x1f9a   :  { %v3363_v62 = vpop.permute.xlu0 %3362 }
0x1f9b   :  { %5079 = vmatmul.mubr.msk.f32.vlgmr.msra.gmra.mrb[34].mxu1 %vm226_vm7, %v3363_v62 }
0x1f9c   :  { %5381 = vmatpush3.bf16.msra.mxu1 %v6316_v27  ;;  %5378 = vmatpush3.bf16.msra.mxu0 %v6330_v36 }
0x1f9d   :  { %5382 = vmatprep.subr.bf16.mxu1 %v5712_v21  ;;  %5100 = vmatprep.mubr.msk.f32.mxu1 %vm5714_vm6, %v5713_v28 }
0x1f9e   :  { %5385 = vmatprep.subr.bf16.mxu0 %v5712_v21 }
0x1fa0   :  { %5384 = vmatpush3.bf16.msra.mxu1 %v6328_v35 }
0x1fa1   :  { %5391 = vmatprep.subr.bf16.mxu1 %v5712_v21 }
0x206a   :  { %v3323_v7 = vpop.f32.mrb[30].mxu0 }
0x206b   :  { %v3337_v30 = vadd.f32 %v3323_v7, %v6380_v55  ;;  %v5069_v31 = vpop.f32.mrb[31].mxu0  ;;  %v3328_v39 = vrot.slane %v3323_v7, 4 }
0x206d   :  { %v3339_v33 = vrot.slane %v3337_v30, 4  ;;  %v3330_v24 = vadd.f32 %v3328_v39, %v6366_v42 }
0x206e   :  { %v3432_v34 = vpop.f32.mrb[34].mxu1 }
0x206f   :  { %v3443_v4 = vadd.f32 %v3432_v34, %v6378_v52  ;;  %3340 = vrot.lane.b32.xlu1 %v3339_v33, %s5715_s16  ;;  %v5080_v38 = vpop.f32.mrb[35].mxu1  ;;  %v3436_v56 = vadd.f32 %v3432_v34, %v6376_v51  ;;  %v4475_v40 = vmul.f32 -1.442695, %v3330_v24 }
0x2071   :  { %3445 = vrot.lane.b32.xlu0 %v3443_v4, %s5715_s16  ;;  %v4477_v1 = vmul.f32 -1.442695, %v3436_v56  ;;  %5574 = vpow2.f32 %v4475_v40 }
0x2073   :  { %5576 = vpow2.f32 %v4477_v1 }
0x207b   :  { %v5575_v44 = vpop.eup %5574 }
0x207c   :  { %v3334_v46 = vadd.f32 1.0, %v5575_v44 }
0x207d   :  { %v5577_v45 = vpop.eup %5576 }
0x207e   :  { %v3440_v48 = vadd.f32 1.0, %v5577_v45  ;;  %5578 = vrcp.f32 %v3334_v46 }
0x2080   :  { %5580 = vrcp.f32 %v3440_v48 }
0x2088   :  { %v5579_v49 = vpop.eup %5578 }
0x2089   :  { %v3350_v8 = vsub.f32 1.0, %v5579_v49  ;;  %v3358_v13 = vmul.f32 %v5579_v49, %v3356_v10 }
0x208a   :  { %v5581_v59 = vpop.eup %5580 }
0x208b   :  { %v3455_v17 = vsub.f32 1.0, %v5581_v59 }
0x20e1   :  { %v3341_v57 = vpop.permute.xlu1 %3340 }
0x20e2   :  { %v3343_v58 = vmul.f32 %v5579_v49, %v3341_v57 }
0x20e3   :  { %v3446_v61 = vpop.permute.xlu0 %3445 }
0x20e4   :  { %v3448_v2 = vmul.f32 %v5581_v59, %v3446_v61  ;;  %3345 = vrot.lane.b32.xlu1 %v3343_v58, %s5715_s16 }
0x20e6   :  { %3450 = vrot.lane.b32.xlu0 %v3448_v2, %s5715_s16 }
0x2156   :  { %v3346_v5 = vpop.permute.xlu1 %3345 }
0x2157   :  { %v3348_v6 = vadd.f32 %v3346_v5, %v6366_v42 }
0x2158   :  { %v3451_v0 = vpop.permute.xlu0 %3450 }
0x2159   :  { %5582 = vtanh.f32 %v3348_v6  ;;  %v3453_v41 = vadd.f32 %v3451_v0, %v6376_v51  ;;  %v3462_v51 = vmul.f32 %v5581_v59, %v3361_v16 }
0x215b   :  { %5584 = vtanh.f32 %v3453_v41 }
0x2163   :  { %v5583_v9 = vpop.eup %5582 }
0x2164   :  { %3352 = vrot.lane.b32.xlu1 %v5583_v9, %s5716_s3 }
0x2165   :  { %v5585_v43 = vpop.eup %5584 }
0x2166   :  { %3457 = vrot.lane.b32.xlu0 %v5585_v43, %s5716_s3 }
0x21d6   :  { %v3353_v11 = vpop.permute.xlu1 %3352 }
0x21d7   :  { %v3355_v14 = vmul.f32 %v3353_v11, %v3350_v8 }
0x21d8   :  { %v3458_v18 = vpop.permute.xlu0 %3457 }
0x21d9   :  { %v6509_v42 = vadd.f32 %v3358_v13, %v3355_v14  ;;  %v3460_v32 = vmul.f32 %v3458_v18, %v3455_v17 }
0x21db   :  { %v3465_v19 = vrot.slane %v6509_v42, 4  ;;  %v6514_v20 = vadd.f32 %v3462_v51, %v3460_v32 }
0x21dd   :  { %3466 = vrot.lane.b32.xlu0 %v3465_v19, %s5716_s3  ;;  %3569 = vrot.lane.b32.xlu1 %v6514_v20, %s5716_s3  ;;  %v3672_v5 = vrot.slane %v6514_v20, 4 }
0x224f   :  { %v3570_v53 = vpop.permute.xlu1 %3569  ;;  %v3467_v37 = vpop.permute.xlu0 %3466 }
0x2250   :  { %5090 = vmatmul.mubr.msk.f32.vlgmr.msra.gmra.mrb[32].mxu0 %vm226_vm7, %v3467_v37  ;;  %5101 = vmatmul.mubr.msk.f32.vlgmr.msra.gmra.mrb[36].mxu1 %vm226_vm7, %v3570_v53 }
0x2251   :  { %5387 = vmatpush3.bf16.msra.mxu0 %v6318_v15  ;;  %5393 = vmatpush3.bf16.msra.mxu1 %v6316_v27 }
0x2252   :  { %5388 = vmatprep.subr.bf16.mxu0 %v5712_v21  ;;  %5111 = vmatprep.mubr.msk.f32.mxu0 %vm5714_vm6, %v5713_v28 }
0x2253   :  { %5394 = vmatprep.subr.bf16.mxu1 %v5712_v21  ;;  %5122 = vmatprep.mubr.msk.f32.mxu1 %vm5714_vm6, %v5713_v28 }
0x2255   :  { %5390 = vmatpush3.bf16.msra.mxu0 %v6330_v36  ;;  %5396 = vmatpush3.bf16.msra.mxu1 %v6328_v35 }
0x2256   :  { %5397 = vmatprep.subr.bf16.mxu0 %v5712_v21  ;;  %5403 = vmatprep.subr.bf16.mxu1 %v5712_v21 }
0x2323   :  { %v3536_v22 = vpop.f32.mrb[32].mxu0  ;;  %v3639_v23 = vpop.f32.mrb[36].mxu1 }
0x2324   :  { %v3547_v25 = vadd.f32 %v3536_v22, %v6380_v55  ;;  %v3653_v54 = vadd.f32 %v3639_v23, %v6378_v52  ;;  %v5091_v63 = vpop.f32.mrb[33].mxu0  ;;  %v5102_v16 = vpop.f32.mrb[37].mxu1  ;;  %v3644_v62 = vrot.slane %v3639_v23, 4  ;;  %v3540_v7 = vadd.f32 %v3536_v22, %v6374_v50 }
0x2326   :  { %v3655_v60 = vrot.slane %v3653_v54, 4  ;;  %3549 = vrot.lane.b32.xlu1 %v3547_v25, %s5715_s16  ;;  %v3646_v30 = vadd.f32 %v3644_v62, %v6368_v26  ;;  %v4479_v31 = vmul.f32 -1.442695, %v3540_v7 }
0x2328   :  { %3656 = vrot.lane.b32.xlu0 %v3655_v60, %s5715_s16  ;;  %v4481_v33 = vmul.f32 -1.442695, %v3646_v30  ;;  %5586 = vpow2.f32 %v4479_v31 }
0x232a   :  { %5588 = vpow2.f32 %v4481_v33 }
0x2332   :  { %v5587_v34 = vpop.eup %5586 }
0x2333   :  { %v3544_v38 = vadd.f32 1.0, %v5587_v34 }
0x2334   :  { %v5589_v4 = vpop.eup %5588 }
0x2335   :  { %v3650_v39 = vadd.f32 1.0, %v5589_v4  ;;  %5590 = vrcp.f32 %v3544_v38 }
0x2337   :  { %5592 = vrcp.f32 %v3650_v39 }
0x233f   :  { %v5591_v24 = vpop.eup %5590 }
0x2340   :  { %v3559_v61 = vsub.f32 1.0, %v5591_v24  ;;  %v3566_v6 = vmul.f32 %v5591_v24, %v3465_v19 }
0x2341   :  { %v5593_v1 = vpop.eup %5592 }
0x2342   :  { %v3666_v41 = vsub.f32 1.0, %v5593_v1  ;;  %v3674_v10 = vmul.f32 %v5593_v1, %v3672_v5 }
0x2398   :  { %v3550_v56 = vpop.permute.xlu1 %3549 }
0x2399   :  { %v3552_v40 = vmul.f32 %v5591_v24, %v3550_v56 }
0x239a   :  { %v3657_v44 = vpop.permute.xlu0 %3656 }
0x239b   :  { %v3659_v45 = vmul.f32 %v5593_v1, %v3657_v44  ;;  %3554 = vrot.lane.b32.xlu1 %v3552_v40, %s5715_s16 }
0x239d   :  { %3661 = vrot.lane.b32.xlu0 %v3659_v45, %s5715_s16 }
0x240d   :  { %v3555_v46 = vpop.permute.xlu1 %3554 }
0x240e   :  { %v3557_v48 = vadd.f32 %v3555_v46, %v6374_v50 }
0x240f   :  { %v3662_v49 = vpop.permute.xlu0 %3661 }
0x2410   :  { %5594 = vtanh.f32 %v3557_v48  ;;  %v3664_v57 = vadd.f32 %v3662_v49, %v6368_v26 }
0x2412   :  { %5596 = vtanh.f32 %v3664_v57 }
0x241a   :  { %v5595_v58 = vpop.eup %5594 }
0x241b   :  { %3561 = vrot.lane.b32.xlu1 %v5595_v58, %s5716_s3 }
0x241c   :  { %v5597_v59 = vpop.eup %5596 }
0x241d   :  { %3668 = vrot.lane.b32.xlu0 %v5597_v59, %s5716_s3 }
0x248d   :  { %v3562_v2 = vpop.permute.xlu1 %3561 }
0x248e   :  { %v3564_v0 = vmul.f32 %v3562_v2, %v3559_v61 }
0x248f   :  { %v3669_v9 = vpop.permute.xlu0 %3668 }
0x2490   :  { %v6546_v43 = vadd.f32 %v3566_v6, %v3564_v0  ;;  %v3671_v8 = vmul.f32 %v3669_v9, %v3666_v41 }
0x2492   :  { %v6548_v11 = vadd.f32 %v3674_v10, %v3671_v8  ;;  %3677 = vrot.lane.b32.xlu1 %v6546_v43, %s5716_s3  ;;  %v3780_v44 = vrot.slane %v6546_v43, 4 }
0x2494   :  { %v3785_v13 = vrot.slane %v6548_v11, 4 }
0x2496   :  { %3786 = vrot.lane.b32.xlu0 %v3785_v13, %s5716_s3 }
0x2504   :  { %v3678_v14 = vpop.permute.xlu1 %3677 }
0x2505   :  { %5112 = vmatmul.mubr.msk.f32.vlgmr.msra.gmra.mrb[34].mxu0 %vm226_vm7, %v3678_v14 }
0x2506   :  { %5399 = vmatpush3.bf16.msra.mxu0 %v6318_v15  ;;  %5133 = vmatprep.mubr.msk.f32.mxu0 %vm5714_vm6, %v5713_v28 }
0x2507   :  { %5400 = vmatprep.subr.bf16.mxu0 %v5712_v21 }
0x2508   :  { %v3787_v17 = vpop.permute.xlu0 %3786 }
0x2509   :  { %5123 = vmatmul.mubr.msk.f32.vlgmr.msra.gmra.mrb[38].mxu1 %vm226_vm7, %v3787_v17 }
0x250a   :  { %5405 = vmatpush3.bf16.msra.mxu1 %v6316_v27  ;;  %5402 = vmatpush3.bf16.msra.mxu0 %v6330_v36 }
0x250b   :  { %5406 = vmatprep.subr.bf16.mxu1 %v5712_v21  ;;  %5144 = vmatprep.mubr.msk.f32.mxu1 %vm5714_vm6, %v5713_v28 }
0x250c   :  { %5409 = vmatprep.subr.bf16.mxu0 %v5712_v21 }
0x250e   :  { %5408 = vmatpush3.bf16.msra.mxu1 %v6328_v35 }
0x250f   :  { %5415 = vmatprep.subr.bf16.mxu1 %v5712_v21 }
0x25d8   :  { %v3747_v18 = vpop.f32.mrb[34].mxu0 }
0x25d9   :  { %v3761_v42 = vadd.f32 %v3747_v18, %v6380_v55  ;;  %v5113_v51 = vpop.f32.mrb[35].mxu0  ;;  %v3752_v37 = vrot.slane %v3747_v18, 4 }
0x25db   :  { %v3763_v32 = vrot.slane %v3761_v42, 4  ;;  %v3754_v22 = vadd.f32 %v3752_v37, %v6374_v50 }
0x25dc   :  { %v3856_v19 = vpop.f32.mrb[38].mxu1 }
0x25dd   :  { %v3867_v20 = vadd.f32 %v3856_v19, %v6378_v52  ;;  %3764 = vrot.lane.b32.xlu1 %v3763_v32, %s5715_s16  ;;  %v5124_v53 = vpop.f32.mrb[39].mxu1  ;;  %v3860_v23 = vadd.f32 %v3856_v19, %v6368_v26  ;;  %v4483_v25 = vmul.f32 -1.442695, %v3754_v22 }
0x25df   :  { %3869 = vrot.lane.b32.xlu0 %v3867_v20, %s5715_s16  ;;  %v4485_v54 = vmul.f32 -1.442695, %v3860_v23  ;;  %5598 = vpow2.f32 %v4483_v25 }
0x25e1   :  { %5600 = vpow2.f32 %v4485_v54 }
0x25e9   :  { %v5599_v63 = vpop.eup %5598 }
0x25ea   :  { %v3758_v60 = vadd.f32 1.0, %v5599_v63 }
0x25eb   :  { %v5601_v16 = vpop.eup %5600 }
0x25ec   :  { %v3864_v62 = vadd.f32 1.0, %v5601_v16  ;;  %5602 = vrcp.f32 %v3758_v60 }
0x25ee   :  { %5604 = vrcp.f32 %v3864_v62 }
0x25f6   :  { %v5603_v7 = vpop.eup %5602 }
0x25f7   :  { %v3774_v45 = vsub.f32 1.0, %v5603_v7  ;;  %v3782_v48 = vmul.f32 %v5603_v7, %v3780_v44 }
0x25f8   :  { %v5605_v33 = vpop.eup %5604 }
0x25f9   :  { %v3879_v57 = vsub.f32 1.0, %v5605_v33 }
0x264f   :  { %v3765_v30 = vpop.permute.xlu1 %3764 }
0x2650   :  { %v3767_v31 = vmul.f32 %v5603_v7, %v3765_v30 }
0x2651   :  { %v3870_v34 = vpop.permute.xlu0 %3869 }
0x2652   :  { %v3872_v4 = vmul.f32 %v5605_v33, %v3870_v34  ;;  %3769 = vrot.lane.b32.xlu1 %v3767_v31, %s5715_s16 }
0x2654   :  { %3874 = vrot.lane.b32.xlu0 %v3872_v4, %s5715_s16 }
0x26c4   :  { %v3770_v38 = vpop.permute.xlu1 %3769 }
0x26c5   :  { %v3772_v39 = vadd.f32 %v3770_v38, %v6374_v50 }
0x26c6   :  { %v3875_v24 = vpop.permute.xlu0 %3874 }
0x26c7   :  { %5606 = vtanh.f32 %v3772_v39  ;;  %v3877_v56 = vadd.f32 %v3875_v24, %v6368_v26  ;;  %v3886_v26 = vmul.f32 %v5605_v33, %v3785_v13 }
0x26c9   :  { %5608 = vtanh.f32 %v3877_v56 }
0x26d1   :  { %v5607_v40 = vpop.eup %5606 }
0x26d2   :  { %3776 = vrot.lane.b32.xlu1 %v5607_v40, %s5716_s3 }
0x26d3   :  { %v5609_v1 = vpop.eup %5608 }
0x26d4   :  { %3881 = vrot.lane.b32.xlu0 %v5609_v1, %s5716_s3 }
0x2744   :  { %v3777_v46 = vpop.permute.xlu1 %3776 }
0x2745   :  { %v3779_v49 = vmul.f32 %v3777_v46, %v3774_v45 }
0x2746   :  { %v3882_v58 = vpop.permute.xlu0 %3881 }
0x2747   :  { %v6583_v50 = vadd.f32 %v3782_v48, %v3779_v49  ;;  %v3884_v59 = vmul.f32 %v3882_v58, %v3879_v57 }
0x2749   :  { %v3889_v61 = vrot.slane %v6583_v50, 4  ;;  %v6588_v2 = vadd.f32 %v3886_v26, %v3884_v59 }
0x274b   :  { %3890 = vrot.lane.b32.xlu0 %v3889_v61, %s5716_s3  ;;  %3993 = vrot.lane.b32.xlu1 %v6588_v2, %s5716_s3  ;;  %v4096_v60 = vrot.slane %v6588_v2, 4 }
0x27bd   :  { %v3994_v5 = vpop.permute.xlu1 %3993  ;;  %v3891_v6 = vpop.permute.xlu0 %3890 }
0x27be   :  { %5134 = vmatmul.mubr.msk.f32.vlgmr.msra.gmra.mrb[36].mxu0 %vm226_vm7, %v3891_v6  ;;  %5145 = vmatmul.mubr.msk.f32.vlgmr.msra.gmra.mrb[40].mxu1 %vm226_vm7, %v3994_v5 }
0x27bf   :  { %5411 = vmatpush3.bf16.msra.mxu0 %v6318_v15  ;;  %5417 = vmatpush3.bf16.msra.mxu1 %v6316_v27 }
0x27c0   :  { %5412 = vmatprep.subr.bf16.mxu0 %v5712_v21  ;;  %5155 = vmatprep.mubr.msk.f32.mxu0 %vm5714_vm6, %v5713_v28 }
0x27c1   :  { %5418 = vmatprep.subr.bf16.mxu1 %v5712_v21  ;;  %5166 = vmatprep.mubr.msk.f32.mxu1 %vm5714_vm6, %v5713_v28 }
0x27c3   :  { %5414 = vmatpush3.bf16.msra.mxu0 %v6330_v36  ;;  %5420 = vmatpush3.bf16.msra.mxu1 %v6328_v35 }
0x2891   :  { %v3960_v0 = vpop.f32.mrb[36].mxu0  ;;  %v4063_v41 = vpop.f32.mrb[40].mxu1 }
0x2892   :  { %v3971_v15 = vadd.f32 %v3960_v0, %v6380_v55  ;;  %v4077_v27 = vadd.f32 %v4063_v41, %v6378_v52  ;;  %v5135_v9 = vpop.f32.mrb[37].mxu0  ;;  %v5146_v43 = vpop.f32.mrb[41].mxu1  ;;  %v4068_v21 = vrot.slane %v4063_v41, 4  ;;  %v3964_v28 = vadd.f32 %v3960_v0, %v6372_v47 }
0x2894   :  { %v4079_v10 = vrot.slane %v4077_v27, 4  ;;  %3973 = vrot.lane.b32.xlu1 %v3971_v15, %s5715_s16  ;;  %v4070_v36 = vadd.f32 %v4068_v21, %v6370_v29  ;;  %v4487_v8 = vmul.f32 -1.442695, %v3964_v28  ;;  %v4325_v28 = vrot.slane %v6269_v3, 2 }
0x2896   :  { %4080 = vrot.lane.b32.xlu0 %v4079_v10, %s5715_s16  ;;  %v4489_v35 = vmul.f32 -1.442695, %v4070_v36  ;;  %5610 = vpow2.f32 %v4487_v8  ;;  %v4312_v36 = vrot.slane %v6227_v12, 2  ;;  %v4327_v8 = vsub.f32 %v6269_v3, %v4325_v28 }
0x2898   :  { %5612 = vpow2.f32 %v4489_v35 }
0x28a0   :  { %v5611_v11 = vpop.eup %5610 }
0x28a1   :  { %v3968_v14 = vadd.f32 1.0, %v5611_v11  ;;  %v4314_v11 = vsub.f32 %v6227_v12, %v4312_v36 }
0x28a2   :  { %v5613_v13 = vpop.eup %5612 }
0x28a3   :  { %v4074_v17 = vadd.f32 1.0, %v5613_v13  ;;  %5614 = vrcp.f32 %v3968_v14  ;;  %v4315_v14 = vand.u32 2147483647, %v4314_v11 }
0x28a5   :  { %5616 = vrcp.f32 %v4074_v17 }
0x28ad   :  { %v5615_v18 = vpop.eup %5614 }
0x28ae   :  { %v3983_v63 = vsub.f32 1.0, %v5615_v18  ;;  %v3990_v62 = vmul.f32 %v5615_v18, %v3889_v61 }
0x28af   :  { %v5617_v32 = vpop.eup %5616 }
0x28b0   :  { %v4090_v30 = vsub.f32 1.0, %v5617_v32  ;;  %v4098_v34 = vmul.f32 %v5617_v32, %v4096_v60 }
0x2906   :  { %v3974_v42 = vpop.permute.xlu1 %3973 }
0x2907   :  { %v3976_v51 = vmul.f32 %v5615_v18, %v3974_v42 }
0x2908   :  { %v4081_v19 = vpop.permute.xlu0 %4080 }
0x2909   :  { %v4083_v20 = vmul.f32 %v5617_v32, %v4081_v19  ;;  %3978 = vrot.lane.b32.xlu1 %v3976_v51, %s5715_s16 }
0x290b   :  { %4085 = vrot.lane.b32.xlu0 %v4083_v20, %s5715_s16 }
0x297b   :  { %v3979_v53 = vpop.permute.xlu1 %3978 }
0x297c   :  { %v3981_v37 = vadd.f32 %v3979_v53, %v6372_v47 }
0x297d   :  { %v4086_v22 = vpop.permute.xlu0 %4085 }
0x297e   :  { %5618 = vtanh.f32 %v3981_v37  ;;  %v4088_v23 = vadd.f32 %v4086_v22, %v6370_v29 }
0x2980   :  { %5620 = vtanh.f32 %v4088_v23 }
0x2988   :  { %v5619_v25 = vpop.eup %5618 }
0x2989   :  { %3985 = vrot.lane.b32.xlu1 %v5619_v25, %s5716_s3 }
0x298a   :  { %v5621_v54 = vpop.eup %5620 }
0x298b   :  { %4092 = vrot.lane.b32.xlu0 %v5621_v54, %s5716_s3 }
0x29fb   :  { %v3986_v16 = vpop.permute.xlu1 %3985 }
0x29fc   :  { %v3988_v7 = vmul.f32 %v3986_v16, %v3983_v63 }
0x29fd   :  { %v4093_v31 = vpop.permute.xlu0 %4092 }
0x29fe   :  { %v6618_v33 = vadd.f32 %v3990_v62, %v3988_v7  ;;  %v4095_v4 = vmul.f32 %v4093_v31, %v4090_v30 }
0x2a00   :  { %v6620_v38 = vadd.f32 %v4098_v34, %v4095_v4  ;;  %4101 = vrot.lane.b32.xlu1 %v6618_v33, %s5716_s3 }
0x2a02   :  { %v4209_v39 = vrot.slane %v6620_v38, 4 }
0x2a04   :  { %4210 = vrot.lane.b32.xlu0 %v4209_v39, %s5716_s3 }
0x2a72   :  { %v4102_v24 = vpop.permute.xlu1 %4101 }
0x2a73   :  { %5156 = vmatmul.mubr.msk.f32.vlgmr.msra.gmra.mrb[38].mxu0 %vm226_vm7, %v4102_v24 }
0x2a76   :  { %v4211_v56 = vpop.permute.xlu0 %4210 }
0x2a77   :  { %5167 = vmatmul.mubr.msk.f32.vlgmr.msra.gmra.mrb[42].mxu1 %vm226_vm7, %v4211_v56 }
0x2b46   :  { %v4171_v40 = vpop.f32.mrb[38].mxu0 }
0x2b47   :  { %v4185_v1 = vadd.f32 %v4171_v40, %v6380_v55  ;;  %v5157_v44 = vpop.f32.mrb[39].mxu0  ;;  %v4176_v57 = vrot.slane %v4171_v40, 4 }
0x2b49   :  { %v4187_v45 = vrot.slane %v4185_v1, 4  ;;  %v4178_v58 = vadd.f32 %v4176_v57, %v6372_v47 }
0x2b4a   :  { %v4280_v46 = vpop.f32.mrb[42].mxu1 }
0x2b4b   :  { %v4291_v48 = vadd.f32 %v4280_v46, %v6378_v52  ;;  %4188 = vrot.lane.b32.xlu1 %v4187_v45, %s5715_s16  ;;  %v5168_v49 = vpop.f32.mrb[43].mxu1  ;;  %v4284_v50 = vadd.f32 %v4280_v46, %v6370_v29  ;;  %v4491_v26 = vmul.f32 -1.442695, %v4178_v58 }
0x2b4d   :  { %4293 = vrot.lane.b32.xlu0 %v4291_v48, %s5715_s16  ;;  %v4493_v59 = vmul.f32 -1.442695, %v4284_v50  ;;  %5622 = vpow2.f32 %v4491_v26 }
0x2b4f   :  { %5624 = vpow2.f32 %v4493_v59 }
0x2b57   :  { %v5623_v55 = vpop.eup %5622 }
0x2b58   :  { %v4182_v2 = vadd.f32 1.0, %v5623_v55 }
0x2b59   :  { %v5625_v61 = vpop.eup %5624 }
0x2b5a   :  { %v4288_v5 = vadd.f32 1.0, %v5625_v61  ;;  %5626 = vrcp.f32 %v4182_v2 }
0x2b5c   :  { %5628 = vrcp.f32 %v4288_v5 }
0x2b64   :  { %v5627_v52 = vpop.eup %5626 }
0x2b65   :  { %v4198_v17 = vsub.f32 1.0, %v5627_v52 }
0x2b66   :  { %v5629_v41 = vpop.eup %5628 }
0x2b67   :  { %v4303_v51 = vsub.f32 1.0, %v5629_v41  ;;  %v4310_v19 = vmul.f32 %v5629_v41, %v4209_v39 }
0x2bbd   :  { %v4189_v6 = vpop.permute.xlu1 %4188 }
0x2bbe   :  { %v4191_v0 = vmul.f32 %v5627_v52, %v4189_v6 }
0x2bbf   :  { %v4294_v15 = vpop.permute.xlu0 %4293 }
0x2bc0   :  { %v4296_v27 = vmul.f32 %v5629_v41, %v4294_v15  ;;  %4193 = vrot.lane.b32.xlu1 %v4191_v0, %s5715_s16 }
0x2bc2   :  { %4298 = vrot.lane.b32.xlu0 %v4296_v27, %s5715_s16 }
0x2c32   :  { %v4194_v9 = vpop.permute.xlu1 %4193 }
0x2c33   :  { %v4196_v43 = vadd.f32 %v4194_v9, %v6372_v47  ;;  %v4328_v47 = vand.u32 2147483647, %v4327_v8 }
0x2c34   :  { %v4299_v10 = vpop.permute.xlu0 %4298 }
0x2c35   :  { %5630 = vtanh.f32 %v4196_v43  ;;  %v4301_v21 = vadd.f32 %v4299_v10, %v6370_v29  ;;  %v4204_v29 = vrot.slane %v6618_v33, 4 }
0x2c37   :  { %5632 = vtanh.f32 %v4301_v21  ;;  %v4206_v42 = vmul.f32 %v5627_v52, %v4204_v29 }
0x2c3f   :  { %v5631_v35 = vpop.eup %5630 }
0x2c40   :  { %4200 = vrot.lane.b32.xlu1 %v5631_v35, %s5716_s3 }
0x2c41   :  { %v5633_v13 = vpop.eup %5632 }
0x2c42   :  { %4305 = vrot.lane.b32.xlu0 %v5633_v13, %s5716_s3 }
0x2c44   :  { %4330 = vrot.lane.b32.xlu1 %v4328_v47, %s5716_s3 }
0x2c46   :  { %4317 = vrot.lane.b32.xlu0 %v4315_v14, %s5716_s3 }
0x2cb2   :  { %v4201_v18 = vpop.permute.xlu1 %4200 }
0x2cb3   :  { %v4203_v3 = vmul.f32 %v4201_v18, %v4198_v17 }
0x2cb4   :  { %v4306_v32 = vpop.permute.xlu0 %4305 }
0x2cb5   :  { %v4207_v12 = vadd.f32 %v4206_v42, %v4203_v3  ;;  %v4308_v20 = vmul.f32 %v4306_v32, %v4303_v51 }
0x2cb6   :  { %v4331_v60 = vpop.permute.xlu1 %4330 }
0x2cb7   :  { %v4342_v53 = vrot.slane %v4207_v12, 2  ;;  %v4311_v37 = vadd.f32 %v4310_v19, %v4308_v20  ;;  %v4334_v7 = vsel %vm4333_vm11, %v4331_v60, 0.0 }
0x2cb8   :  { %v4318_v16 = vpop.permute.xlu0 %4317 }
0x2cb9   :  { %v4344_v22 = vsub.f32 %v4207_v12, %v4342_v53  ;;  %v4355_v23 = vrot.slane %v4311_v37, 2  ;;  %v4321_v62 = vsel %vm4320_vm10, %v4318_v16, 0.0 }
0x2cbb   :  { %v4345_v25 = vand.u32 2147483647, %v4344_v22  ;;  %v4357_v54 = vsub.f32 %v4311_v37, %v4355_v23 }
0x2cbd   :  { %v4358_v63 = vand.u32 2147483647, %v4357_v54  ;;  %4347 = vrot.lane.b32.xlu1 %v4345_v25, %s5716_s3 }
0x2cbf   :  { %4360 = vrot.lane.b32.xlu0 %v4358_v63, %s5716_s3 }
0x2cde   :  { %4322 = vadd.xlane.f32.xlu0 %v4321_v62 }
0x2ce1   :  { %4335 = vadd.xlane.f32.xlu1 %v4334_v7 }
0x2d2f   :  { %v4348_v30 = vpop.permute.xlu1 %4347 }
0x2d30   :  { %v4350_v31 = vsel %vm4320_vm10, %v4348_v30, 0.0 }
0x2d31   :  { %4351 = vadd.xlane.f32.xlu0 %v4350_v31  ;;  %v4361_v33 = vpop.permute.xlu0 %4360 }
0x2d32   :  { %v4363_v34 = vsel %vm4333_vm11, %v4361_v33, 0.0 }
0x2d33   :  { %4364 = vadd.xlane.f32.xlu1 %v4363_v34 }
0x2d6b   :  { %v4323_v38 = vpop.xlane.xlu0 %4322 }
0x2d6e   :  { %v4336_v4 = vpop.xlane.xlu1 %4335 }
0x2d6f   :  { %v4338_v39 = vrot.slane %v4336_v4, 4 }
0x2d71   :  { %v4340_v56 = vadd.f32 %v4338_v39, %v4323_v38 }
0x2dbe   :  { %v4352_v24 = vpop.xlane.xlu0 %4351 }
0x2dbf   :  { %v4353_v1 = vadd.f32 %v4352_v24, %v4340_v56 }
0x2dc0   :  { %v4365_v40 = vpop.xlane.xlu1 %4364 }
0x2dc1   :  { %v4367_v44 = vrot.slane %v4365_v40, 4 }
0x2dc3   :  { %v4369_v45 = vadd.f32 %v4367_v44, %v4353_v1 }
0x2dc5   :  { %v4370_v46 = vsub.f32 0.0, %v4369_v45 }
0x2dc7   :  { %v4371_v48 = vmul.f32 1.442695, %v4370_v46 }
0x2dc9   :  { %5634 = vpow2.f32 %v4371_v48 }
0x2dd3   :  { %v5635_v49 = vpop.eup %5634 }
0x2dd4   :  { %4374 = vst.msk [vmem:[%s6662_s10 - $0x4] sm:$0x30] %vm4373_vm12, %v5635_v49 }
0x2dd5   :  { %4379 = vsyncpa [#allocation4], 1 }
0x2dd6   :  { %4380 = vsyncpa [#allocation6], 1 }

</bundles_post_ra>
